<compile_context>
chip_gen: v6e
topology: v6e:2x2x1
jax: 0.10.0
libtpu: 0.0.40
codegen_flags: <defaults>
</compile_context>

<pallas_src>
import jax
import jax.numpy as jnp
from jax import lax
from jax.experimental import pallas as pl
from jax.experimental.pallas import tpu as pltpu


def _round_up(x, m):
    return (x + m - 1) // m * m


def lstm_sentiment_kernel(emb_ref, wih0_ref, whh0_ref, b0_ref,
                          w1_ref, b1_ref, fcw_ref, fcb_ref,
                          h_init_ref, c_init_ref,
                          sig_ref, h_out_ref, c_out_ref,
                          gi0_s, xh_s, c0_s, c1_s, b1b_s):
    TB = emb_ref.shape[0]
    Bp = h_init_ref.shape[1]
    Hp = h_init_ref.shape[2]
    T = TB // Bp

    # ---- hoisted layer-0 input projection: one big MXU matmul over the whole sequence ----
    gi0_s[...] = (jnp.dot(emb_ref[...], wih0_ref[...],
                          preferred_element_type=jnp.float32) + b0_ref[...])
    # layer-1 bias pre-broadcast once (JAX does not CSE broadcast_in_dim per iteration)
    b1b_s[...] = jnp.broadcast_to(b1_ref[...], b1b_s.shape)

    # ---- initial state: xh_s = [h0 | h1] slab (lane-aligned halves of width Hp) ----
    xh_s[:, :Hp] = h_init_ref[0]
    xh_s[:, Hp:] = h_init_ref[1]
    c0_s[...] = c_init_ref[0]
    c1_s[...] = c_init_ref[1]

    def gates_to_hc(gates, c):
        # PyTorch gate order [i, f, g, o]; Hp is a multiple of 128 -> lane-aligned slices.
        i = jax.nn.sigmoid(gates[:, 0 * Hp:1 * Hp])
        f = jax.nn.sigmoid(gates[:, 1 * Hp:2 * Hp])
        g = jnp.tanh(gates[:, 2 * Hp:3 * Hp])
        o = jax.nn.sigmoid(gates[:, 3 * Hp:4 * Hp])
        c_new = f * c + i * g
        h_new = o * jnp.tanh(c_new)
        return h_new, c_new

    def body(t, carry):
        row = pl.multiple_of(t * Bp, Bp)
        # layer 0: precomputed input projection + ONE recurrent matmul
        h0 = xh_s[:, :Hp]
        gates0 = gi0_s[pl.ds(row, Bp), :] + jnp.dot(
            h0.astype(whh0_ref.dtype), whh0_ref[...],
            preferred_element_type=jnp.float32)
        h0_new, c0_new = gates_to_hc(gates0, c0_s[...])
        xh_s[:, :Hp] = h0_new
        c0_s[...] = c0_new
        # layer 1: fused [h0_new | h1_old] @ [W_ih1; W_hh1]  (single matmul per step)
        gates1 = jnp.dot(xh_s[...].astype(w1_ref.dtype), w1_ref[...],
                         preferred_element_type=jnp.float32) + b1b_s[...]
        h1_new, c1_new = gates_to_hc(gates1, c1_s[...])
        xh_s[:, Hp:] = h1_new
        c1_s[...] = c1_new
        return carry

    lax.fori_loop(0, T, body, 0, unroll=True)

    # TODO(synk): nn.Dropout(0.3) is identity in eval mode; training-mode random mask not implemented.
    h1 = xh_s[:, Hp:]
    logits = jnp.dot(h1.astype(fcw_ref.dtype), fcw_ref[...],
                     preferred_element_type=jnp.float32) + fcb_ref[...]
    sig_ref[...] = jax.nn.sigmoid(logits)               # lane-dense (Bp, 128) store

    h_out_ref[0] = xh_s[:, :Hp]
    h_out_ref[1] = xh_s[:, Hp:]
    c_out_ref[0] = c0_s[...]
    c_out_ref[1] = c1_s[...]


def _pad_gate_mat(w, k_pad, H, H_pad):
    # w: (K, 4H) with gate blocks of width H on the last axis -> (k_pad, 4*H_pad),
    # each gate block zero-padded to H_pad lanes so gate slices are lane-aligned in-kernel.
    K = w.shape[0]
    w4 = w.reshape(K, 4, H)
    w4 = jnp.pad(w4, ((0, k_pad - K), (0, 0), (0, H_pad - H)))
    return w4.reshape(k_pad, 4 * H_pad)


def _pad_gate_vec(b, H, H_pad):
    b4 = b.reshape(1, 4, H)
    b4 = jnp.pad(b4, ((0, 0), (0, 0), (0, H_pad - H)))
    return b4.reshape(1, 4 * H_pad)


@jax.jit
def sentiment_rnn_forward(x_tokens, params, hidden):
    """x_tokens: (B, T) int32; hidden: ((2,B,H), (2,B,H)). Returns (sig_out (B,), (h, c))."""
    h_in, c_in = hidden
    B, T = x_tokens.shape
    H = params["w_hh0"].shape[0]
    E = params["w_ih0"].shape[0]

    SUB, LANE = 8, 128
    Bp = _round_up(B, SUB)           # sublane tile
    Hp = _round_up(H, LANE)          # lane tile (gate slices become lane-aligned)
    Ep = _round_up(E, LANE)
    Gp = 4 * Hp
    FCP = LANE                       # lane-dense FC output; column 0 is the real logit

    # --- glue: embedding gather + pad to TPU tiles, time-major flatten to (T*Bp, Ep) ---
    emb = jnp.take(params["embedding"], x_tokens, axis=0)             # (B, T, E)
    emb = jnp.pad(emb, ((0, Bp - B), (0, 0), (0, Ep - E)))
    emb_flat = (jnp.transpose(emb, (1, 0, 2))
                .reshape(T * Bp, Ep).astype(jnp.bfloat16))

    # --- weight prep: gate-aligned zero-padding, layer-1 fusion, bf16 MXU operands ---
    # (in production this prep is done once, not per call)
    wih0 = _pad_gate_mat(params["w_ih0"], Ep, H, Hp).astype(jnp.bfloat16)
    whh0 = _pad_gate_mat(params["w_hh0"], Hp, H, Hp).astype(jnp.bfloat16)
    b0 = _pad_gate_vec(params["b0"], H, Hp)
    w1 = jnp.concatenate([_pad_gate_mat(params["w_ih1"], Hp, H, Hp),
                          _pad_gate_mat(params["w_hh1"], Hp, H, Hp)],
                         axis=0).astype(jnp.bfloat16)                 # (2Hp, 4Hp)
    b1 = _pad_gate_vec(params["b1"], H, Hp)
    fcw = jnp.pad(params["fc_w"], ((0, Hp - H), (0, FCP - 1))).astype(jnp.bfloat16)
    fcb = jnp.pad(params["fc_b"], ((0, 0), (0, FCP - 1)))

    h_init = jnp.pad(h_in, ((0, 0), (0, Bp - B), (0, Hp - H)))
    c_init = jnp.pad(c_in, ((0, 0), (0, Bp - B), (0, Hp - H)))

    inputs = (emb_flat, wih0, whh0, b0, w1, b1, fcw, fcb, h_init, c_init)

    flops = int(2 * T * Bp * Ep * Gp             # hoisted layer-0 input projection
                + T * 2 * Bp * Hp * Gp           # layer-0 recurrent matmul
                + T * 2 * Bp * (2 * Hp) * Gp     # layer-1 fused matmul
                + 2 * Bp * Hp * FCP)             # fc
    transcendentals = int(T * 2 * 5 * Bp * Hp + Bp * FCP)
    out_bytes = (Bp * FCP + 2 * 2 * Bp * Hp) * 4
    in_bytes = int(sum(int(a.size) * a.dtype.itemsize for a in inputs))
    scratch_bytes = (T * Bp * Gp + Bp * 2 * Hp + 2 * Bp * Hp + Bp * Gp) * 4
    vmem_limit = int(min(max(4 * (in_bytes + out_bytes + scratch_bytes), 16 << 20), 48 << 20))

    vmem = pl.BlockSpec(memory_space=pltpu.MemorySpace.VMEM)
    # TODO(synk): for large T*B*E stream the embedding / gi0 via a grid over T (or manual
    # double-buffer from pl.ANY) instead of whole-array VMEM residency; for padded B >= 16
    # add a 'parallel' batch grid axis to shard across the two v7x TensorCores.
    sig, h_out, c_out = pl.pallas_call(
        lstm_sentiment_kernel,
        out_shape=(
            jax.ShapeDtypeStruct((Bp, FCP), jnp.float32),
            jax.ShapeDtypeStruct((2, Bp, Hp), jnp.float32),
            jax.ShapeDtypeStruct((2, Bp, Hp), jnp.float32),
        ),
        in_specs=[vmem] * len(inputs),
        out_specs=(vmem, vmem, vmem),
        scratch_shapes=[
            pltpu.VMEM((T * Bp, Gp), jnp.float32),     # gi0: hoisted layer-0 projection
            pltpu.VMEM((Bp, 2 * Hp), jnp.float32),     # [h0 | h1] state slab
            pltpu.VMEM((Bp, Hp), jnp.float32),         # c0
            pltpu.VMEM((Bp, Hp), jnp.float32),         # c1
            pltpu.VMEM((Bp, Gp), jnp.float32),         # pre-broadcast layer-1 bias
        ],
        input_output_aliases={8: 1, 9: 2},             # h_init -> h_out, c_init -> c_out
        compiler_params=pltpu.CompilerParams(vmem_limit_bytes=vmem_limit),
        cost_estimate=pl.CostEstimate(flops=flops, transcendentals=transcendentals,
                                      bytes_accessed=int(in_bytes + out_bytes)),
    )(*inputs)

    # matches sigmoid(fc(lstm_out)).view(B, -1)[:, -1] (fc of the final layer-2 hidden state)
    sig_out = sig[:B, 0]
    return sig_out, (h_out[:, :B, :H], c_out[:, :B, :H])


def init_params(key, vocab_size, embedding_dim, hidden_dim):
    ks = jax.random.split(key, 10)
    H, E = hidden_dim, embedding_dim
    k0 = 1.0 / jnp.sqrt(jnp.float32(H))

    def uni(k, shape):
        return jax.random.uniform(k, shape, jnp.float32, -k0, k0)

    # PyTorch shapes: W_ih (4H, in), W_hh (4H, H), biases (4H,), fc.weight (1, H);
    # stored transposed for the kernel (x @ W layout).
    params = {
        "embedding": jax.random.normal(ks[0], (vocab_size, E), jnp.float32) * 0.1,
        "w_ih0": uni(ks[1], (E, 4 * H)),
        "w_hh0": uni(ks[2], (H, 4 * H)),
        "b0": (uni(ks[3], (1, 4 * H)) + uni(ks[4], (1, 4 * H))),   # b_ih + b_hh
        "w_ih1": uni(ks[5], (H, 4 * H)),
        "w_hh1": uni(ks[6], (H, 4 * H)),
        "b1": (uni(ks[7], (1, 4 * H)) + uni(ks[8], (1, 4 * H))),
        "fc_w": uni(ks[9], (H, 1)),
        "fc_b": jnp.zeros((1, 1), jnp.float32),
    }
    return params


def reference_forward(x_tokens, params, hidden):
    """Pure-JAX f32 reference mirroring the PyTorch forward (eval mode)."""
    h, c = hidden
    emb = jnp.take(params["embedding"], x_tokens, axis=0)   # (B, T, E)
    H = params["w_hh0"].shape[0]

    def cell(x, h, c, wih, whh, b):
        g = x @ wih + h @ whh + b
        i, f, gg, o = (jax.nn.sigmoid(g[:, :H]), jax.nn.sigmoid(g[:, H:2 * H]),
                       jnp.tanh(g[:, 2 * H:3 * H]), jax.nn.sigmoid(g[:, 3 * H:]))
        c_new = f * c + i * gg
        return o * jnp.tanh(c_new), c_new

    h0, c0, h1, c1 = h[0], c[0], h[1], c[1]
    for t in range(x_tokens.shape[1]):
        h0, c0 = cell(emb[:, t, :], h0, c0, params["w_ih0"], params["w_hh0"], params["b0"])
        h1, c1 = cell(h0, h1, c1, params["w_ih1"], params["w_hh1"], params["b1"])
    sig = jax.nn.sigmoid(h1 @ params["fc_w"] + params["fc_b"])
    return sig[:, -1], (jnp.stack([h0, h1]), jnp.stack([c0, c1]))


if __name__ == "__main__":
    # small shapes consistent with the module (batch, seq, embed, hidden)
    B, T, E, H, VOCAB = 2, 8, 32, 32, 51
    NO_LAYERS = 2

    key = jax.random.PRNGKey(0)
    pkey, xkey = jax.random.split(key)
    params = init_params(pkey, VOCAB, E, H)

    x = jax.random.randint(xkey, (B, T), 1, VOCAB, dtype=jnp.int32)
    hidden = (jnp.zeros((NO_LAYERS, B, H), jnp.float32),
              jnp.zeros((NO_LAYERS, B, H), jnp.float32))

    sig_out, (h_n, c_n) = sentiment_rnn_forward(x, params, hidden)
    jax.block_until_ready((sig_out, h_n, c_n))

    ref_sig, (ref_h, ref_c) = reference_forward(x, params, hidden)
    assert sig_out.shape == (B,)
    assert h_n.shape == (NO_LAYERS, B, H) and c_n.shape == (NO_LAYERS, B, H)
    # bf16 MXU operands (f32 accumulation / state) -> compare at bf16-level tolerance.
    assert jnp.allclose(sig_out, ref_sig, atol=1e-2, rtol=1e-2)
    assert jnp.allclose(h_n, ref_h, atol=1e-2, rtol=1e-2)
    assert jnp.allclose(c_n, ref_c, atol=1e-2, rtol=1e-2)

    print("KERNEL_OK")
</pallas_src>

<mosaic_0001>
module attributes {stable_mosaic.version = 11 : i64} {
  func.func @lstm_sentiment_kernel(%arg0: memref<64x128xbf16, #tpu.memory_space<vmem>>, %arg1: memref<128x512xbf16, #tpu.memory_space<vmem>>, %arg2: memref<128x512xbf16, #tpu.memory_space<vmem>>, %arg3: memref<1x512xf32, #tpu.memory_space<vmem>>, %arg4: memref<256x512xbf16, #tpu.memory_space<vmem>>, %arg5: memref<1x512xf32, #tpu.memory_space<vmem>>, %arg6: memref<128x128xbf16, #tpu.memory_space<vmem>>, %arg7: memref<1x128xf32, #tpu.memory_space<vmem>>, %arg8: memref<2x8x128xf32, #tpu.memory_space<vmem>>, %arg9: memref<2x8x128xf32, #tpu.memory_space<vmem>>, %arg10: memref<8x128xf32, #tpu.memory_space<vmem>>, %arg11: memref<2x8x128xf32, #tpu.memory_space<vmem>>, %arg12: memref<2x8x128xf32, #tpu.memory_space<vmem>>, %arg13: memref<64x512xf32, #tpu.memory_space<vmem>>, %arg14: memref<8x256xf32, #tpu.memory_space<vmem>>, %arg15: memref<8x128xf32, #tpu.memory_space<vmem>>, %arg16: memref<8x128xf32, #tpu.memory_space<vmem>>, %arg17: memref<8x512xf32, #tpu.memory_space<vmem>>) attributes {dimension_semantics = [], scalar_prefetch = 0 : i64, scratch_operands = 5 : i64, tpu.core_type = #tpu.core_type<tc>} {
    %c0 = arith.constant 0 : index
    %c0_0 = arith.constant 0 : index
    %0 = vector.load %arg0[%c0, %c0_0] : memref<64x128xbf16, #tpu.memory_space<vmem>>, vector<64x128xbf16>
    %c0_1 = arith.constant 0 : index
    %c0_2 = arith.constant 0 : index
    %1 = vector.load %arg1[%c0_1, %c0_2] : memref<128x512xbf16, #tpu.memory_space<vmem>>, vector<128x512xbf16>
    %cst = arith.constant dense<0.000000e+00> : vector<64x512xf32>
    %2 = tpu.matmul %0, %1, %cst {dimension_numbers = #tpu.dot_dimension_numbers<[1], [0], [0], [1], [0, 0, 1, 1], [], []>} : vector<64x128xbf16>, vector<128x512xbf16>, vector<64x512xf32> -> vector<64x512xf32>
    %c0_3 = arith.constant 0 : index
    %c0_4 = arith.constant 0 : index
    %3 = vector.load %arg3[%c0_3, %c0_4] : memref<1x512xf32, #tpu.memory_space<vmem>>, vector<1x512xf32>
    %4 = vector.broadcast %3 : vector<1x512xf32> to vector<64x512xf32>
    %5 = arith.addf %2, %4 : vector<64x512xf32>
    %c0_5 = arith.constant 0 : index
    %c0_6 = arith.constant 0 : index
    %6 = vector.load %arg13[%c0_5, %c0_6] : memref<64x512xf32, #tpu.memory_space<vmem>>, vector<64x512xf32>
    tpu.vector_store %arg13[%c0_5, %c0_6], %5 {strides = array<i32>} : memref<64x512xf32, #tpu.memory_space<vmem>>, vector<64x512xf32>,
    %c0_7 = arith.constant 0 : index
    %c0_8 = arith.constant 0 : index
    %7 = vector.load %arg5[%c0_7, %c0_8] : memref<1x512xf32, #tpu.memory_space<vmem>>, vector<1x512xf32>
    %8 = vector.shape_cast %7 : vector<1x512xf32> to vector<1x512xf32>
    %9 = vector.broadcast %8 : vector<1x512xf32> to vector<8x512xf32>
    %c0_9 = arith.constant 0 : index
    %c0_10 = arith.constant 0 : index
    %10 = vector.load %arg17[%c0_9, %c0_10] : memref<8x512xf32, #tpu.memory_space<vmem>>, vector<8x512xf32>
    tpu.vector_store %arg17[%c0_9, %c0_10], %9 {strides = array<i32>} : memref<8x512xf32, #tpu.memory_space<vmem>>, vector<8x512xf32>,
    %c0_11 = arith.constant 0 : index
    %c0_12 = arith.constant 0 : index
    %c0_13 = arith.constant 0 : index
    %11 = vector.load %arg8[%c0_11, %c0_12, %c0_13] : memref<2x8x128xf32, #tpu.memory_space<vmem>>, vector<1x8x128xf32>
    %12 = vector.shape_cast %11 : vector<1x8x128xf32> to vector<8x128xf32>
    %c0_14 = arith.constant 0 : index
    %c0_15 = arith.constant 0 : index
    %13 = vector.load %arg14[%c0_14, %c0_15] : memref<8x256xf32, #tpu.memory_space<vmem>>, vector<8x128xf32>
    tpu.vector_store %arg14[%c0_14, %c0_15], %12 {strides = array<i32>} : memref<8x256xf32, #tpu.memory_space<vmem>>, vector<8x128xf32>,
    %c1 = arith.constant 1 : index
    %c0_16 = arith.constant 0 : index
    %c0_17 = arith.constant 0 : index
    %14 = vector.load %arg8[%c1, %c0_16, %c0_17] : memref<2x8x128xf32, #tpu.memory_space<vmem>>, vector<1x8x128xf32>
    %15 = vector.shape_cast %14 : vector<1x8x128xf32> to vector<8x128xf32>
    %c0_18 = arith.constant 0 : index
    %c128 = arith.constant 128 : index
    %16 = vector.load %arg14[%c0_18, %c128] : memref<8x256xf32, #tpu.memory_space<vmem>>, vector<8x128xf32>
    tpu.vector_store %arg14[%c0_18, %c128], %15 {strides = array<i32>} : memref<8x256xf32, #tpu.memory_space<vmem>>, vector<8x128xf32>,
    %c0_19 = arith.constant 0 : index
    %c0_20 = arith.constant 0 : index
    %c0_21 = arith.constant 0 : index
    %17 = vector.load %arg9[%c0_19, %c0_20, %c0_21] : memref<2x8x128xf32, #tpu.memory_space<vmem>>, vector<1x8x128xf32>
    %18 = vector.shape_cast %17 : vector<1x8x128xf32> to vector<8x128xf32>
    %c0_22 = arith.constant 0 : index
    %c0_23 = arith.constant 0 : index
    %19 = vector.load %arg15[%c0_22, %c0_23] : memref<8x128xf32, #tpu.memory_space<vmem>>, vector<8x128xf32>
    tpu.vector_store %arg15[%c0_22, %c0_23], %18 {strides = array<i32>} : memref<8x128xf32, #tpu.memory_space<vmem>>, vector<8x128xf32>,
    %c1_24 = arith.constant 1 : index
    %c0_25 = arith.constant 0 : index
    %c0_26 = arith.constant 0 : index
    %20 = vector.load %arg9[%c1_24, %c0_25, %c0_26] : memref<2x8x128xf32, #tpu.memory_space<vmem>>, vector<1x8x128xf32>
    %21 = vector.shape_cast %20 : vector<1x8x128xf32> to vector<8x128xf32>
    %c0_27 = arith.constant 0 : index
    %c0_28 = arith.constant 0 : index
    %22 = vector.load %arg16[%c0_27, %c0_28] : memref<8x128xf32, #tpu.memory_space<vmem>>, vector<8x128xf32>
    tpu.vector_store %arg16[%c0_27, %c0_28], %21 {strides = array<i32>} : memref<8x128xf32, #tpu.memory_space<vmem>>, vector<8x128xf32>,
    %c0_i32 = arith.constant 0 : i32
    %c8_i32 = arith.constant 8 : i32
    %23 = arith.muli %c0_i32, %c8_i32 : i32
    %24 = tpu.assume_multiple %23, 8 : i32
    %c0_29 = arith.constant 0 : index
    %c0_30 = arith.constant 0 : index
    %25 = vector.load %arg14[%c0_29, %c0_30] : memref<8x256xf32, #tpu.memory_space<vmem>>, vector<8x128xf32>
    %26 = arith.index_cast %24 : i32 to index
    %c0_31 = arith.constant 0 : index
    %27 = vector.load %arg13[%26, %c0_31] : memref<64x512xf32, #tpu.memory_space<vmem>>, vector<8x512xf32>
    %28 = arith.truncf %25 : vector<8x128xf32> to vector<8x128xbf16>
    %c0_32 = arith.constant 0 : index
    %c0_33 = arith.constant 0 : index
    %29 = vector.load %arg2[%c0_32, %c0_33] : memref<128x512xbf16, #tpu.memory_space<vmem>>, vector<128x512xbf16>
    %cst_34 = arith.constant dense<0.000000e+00> : vector<8x512xf32>
    %30 = tpu.matmul %28, %29, %cst_34 {dimension_numbers = #tpu.dot_dimension_numbers<[1], [0], [0], [1], [0, 0, 1, 1], [], []>} : vector<8x128xbf16>, vector<128x512xbf16>, vector<8x512xf32> -> vector<8x512xf32>
    %31 = arith.addf %27, %30 : vector<8x512xf32>
    %c0_35 = arith.constant 0 : index
    %c0_36 = arith.constant 0 : index
    %32 = vector.load %arg15[%c0_35, %c0_36] : memref<8x128xf32, #tpu.memory_space<vmem>>, vector<8x128xf32>
    %33 = vector.extract_strided_slice %31 {offsets = [0, 0], sizes = [8, 128], strides = [1, 1]} : vector<8x512xf32> to vector<8x128xf32>
    %34 = arith.negf %33 : vector<8x128xf32>
    %35 = math.exp %34 : vector<8x128xf32>
    %cst_37 = arith.constant 1.000000e+00 : f32
    %36 = vector.broadcast %cst_37 : f32 to vector<8x128xf32>
    %37 = arith.addf %36, %35 : vector<8x128xf32>
    %38 = arith.divf %36, %37 : vector<8x128xf32>
    %39 = vector.extract_strided_slice %31 {offsets = [0, 128], sizes = [8, 128], strides = [1, 1]} : vector<8x512xf32> to vector<8x128xf32>
    %40 = arith.negf %39 : vector<8x128xf32>
    %41 = math.exp %40 : vector<8x128xf32>
    %cst_38 = arith.constant 1.000000e+00 : f32
    %42 = vector.broadcast %cst_38 : f32 to vector<8x128xf32>
    %43 = arith.addf %42, %41 : vector<8x128xf32>
    %44 = arith.divf %42, %43 : vector<8x128xf32>
    %45 = vector.extract_strided_slice %31 {offsets = [0, 256], sizes = [8, 128], strides = [1, 1]} : vector<8x512xf32> to vector<8x128xf32>
    %46 = math.tanh %45 : vector<8x128xf32>
    %47 = vector.extract_strided_slice %31 {offsets = [0, 384], sizes = [8, 128], strides = [1, 1]} : vector<8x512xf32> to vector<8x128xf32>
    %48 = arith.negf %47 : vector<8x128xf32>
    %49 = math.exp %48 : vector<8x128xf32>
    %cst_39 = arith.constant 1.000000e+00 : f32
    %50 = vector.broadcast %cst_39 : f32 to vector<8x128xf32>
    %51 = arith.addf %50, %49 : vector<8x128xf32>
    %52 = arith.divf %50, %51 : vector<8x128xf32>
    %53 = arith.mulf %44, %32 : vector<8x128xf32>
    %54 = arith.mulf %38, %46 : vector<8x128xf32>
    %55 = arith.addf %53, %54 : vector<8x128xf32>
    %56 = math.tanh %55 : vector<8x128xf32>
    %57 = arith.mulf %52, %56 : vector<8x128xf32>
    %c0_40 = arith.constant 0 : index
    %c0_41 = arith.constant 0 : index
    %58 = vector.load %arg14[%c0_40, %c0_41] : memref<8x256xf32, #tpu.memory_space<vmem>>, vector<8x128xf32>
    tpu.vector_store %arg14[%c0_40, %c0_41], %57 {strides = array<i32>} : memref<8x256xf32, #tpu.memory_space<vmem>>, vector<8x128xf32>,
    %c0_42 = arith.constant 0 : index
    %c0_43 = arith.constant 0 : index
    %59 = vector.load %arg15[%c0_42, %c0_43] : memref<8x128xf32, #tpu.memory_space<vmem>>, vector<8x128xf32>
    tpu.vector_store %arg15[%c0_42, %c0_43], %55 {strides = array<i32>} : memref<8x128xf32, #tpu.memory_space<vmem>>, vector<8x128xf32>,
    %c0_44 = arith.constant 0 : index
    %c0_45 = arith.constant 0 : index
    %60 = vector.load %arg14[%c0_44, %c0_45] : memref<8x256xf32, #tpu.memory_space<vmem>>, vector<8x256xf32>
    %61 = arith.truncf %60 : vector<8x256xf32> to vector<8x256xbf16>
    %c0_46 = arith.constant 0 : index
    %c0_47 = arith.constant 0 : index
    %62 = vector.load %arg4[%c0_46, %c0_47] : memref<256x512xbf16, #tpu.memory_space<vmem>>, vector<256x512xbf16>
    %cst_48 = arith.constant dense<0.000000e+00> : vector<8x512xf32>
    %63 = tpu.matmul %61, %62, %cst_48 {dimension_numbers = #tpu.dot_dimension_numbers<[1], [0], [0], [1], [0, 0, 1, 1], [], []>} : vector<8x256xbf16>, vector<256x512xbf16>, vector<8x512xf32> -> vector<8x512xf32>
    %c0_49 = arith.constant 0 : index
    %c0_50 = arith.constant 0 : index
    %64 = vector.load %arg17[%c0_49, %c0_50] : memref<8x512xf32, #tpu.memory_space<vmem>>, vector<8x512xf32>
    %65 = arith.addf %63, %64 : vector<8x512xf32>
    %c0_51 = arith.constant 0 : index
    %c0_52 = arith.constant 0 : index
    %66 = vector.load %arg16[%c0_51, %c0_52] : memref<8x128xf32, #tpu.memory_space<vmem>>, vector<8x128xf32>
    %67 = vector.extract_strided_slice %65 {offsets = [0, 0], sizes = [8, 128], strides = [1, 1]} : vector<8x512xf32> to vector<8x128xf32>
    %68 = arith.negf %67 : vector<8x128xf32>
    %69 = math.exp %68 : vector<8x128xf32>
    %cst_53 = arith.constant 1.000000e+00 : f32
    %70 = vector.broadcast %cst_53 : f32 to vector<8x128xf32>
    %71 = arith.addf %70, %69 : vector<8x128xf32>
    %72 = arith.divf %70, %71 : vector<8x128xf32>
    %73 = vector.extract_strided_slice %65 {offsets = [0, 128], sizes = [8, 128], strides = [1, 1]} : vector<8x512xf32> to vector<8x128xf32>
    %74 = arith.negf %73 : vector<8x128xf32>
    %75 = math.exp %74 : vector<8x128xf32>
    %cst_54 = arith.constant 1.000000e+00 : f32
    %76 = vector.broadcast %cst_54 : f32 to vector<8x128xf32>
    %77 = arith.addf %76, %75 : vector<8x128xf32>
    %78 = arith.divf %76, %77 : vector<8x128xf32>
    %79 = vector.extract_strided_slice %65 {offsets = [0, 256], sizes = [8, 128], strides = [1, 1]} : vector<8x512xf32> to vector<8x128xf32>
    %80 = math.tanh %79 : vector<8x128xf32>
    %81 = vector.extract_strided_slice %65 {offsets = [0, 384], sizes = [8, 128], strides = [1, 1]} : vector<8x512xf32> to vector<8x128xf32>
    %82 = arith.negf %81 : vector<8x128xf32>
    %83 = math.exp %82 : vector<8x128xf32>
    %cst_55 = arith.constant 1.000000e+00 : f32
    %84 = vector.broadcast %cst_55 : f32 to vector<8x128xf32>
    %85 = arith.addf %84, %83 : vector<8x128xf32>
    %86 = arith.divf %84, %85 : vector<8x128xf32>
    %87 = arith.mulf %78, %66 : vector<8x128xf32>
    %88 = arith.mulf %72, %80 : vector<8x128xf32>
    %89 = arith.addf %87, %88 : vector<8x128xf32>
    %90 = math.tanh %89 : vector<8x128xf32>
    %91 = arith.mulf %86, %90 : vector<8x128xf32>
    %c0_56 = arith.constant 0 : index
    %c128_57 = arith.constant 128 : index
    %92 = vector.load %arg14[%c0_56, %c128_57] : memref<8x256xf32, #tpu.memory_space<vmem>>, vector<8x128xf32>
    tpu.vector_store %arg14[%c0_56, %c128_57], %91 {strides = array<i32>} : memref<8x256xf32, #tpu.memory_space<vmem>>, vector<8x128xf32>,
    %c0_58 = arith.constant 0 : index
    %c0_59 = arith.constant 0 : index
    %93 = vector.load %arg16[%c0_58, %c0_59] : memref<8x128xf32, #tpu.memory_space<vmem>>, vector<8x128xf32>
    tpu.vector_store %arg16[%c0_58, %c0_59], %89 {strides = array<i32>} : memref<8x128xf32, #tpu.memory_space<vmem>>, vector<8x128xf32>,
    %c1_i32 = arith.constant 1 : i32
    %c8_i32_60 = arith.constant 8 : i32
    %94 = arith.muli %c1_i32, %c8_i32_60 : i32
    %95 = tpu.assume_multiple %94, 8 : i32
    %c0_61 = arith.constant 0 : index
    %c0_62 = arith.constant 0 : index
    %96 = vector.load %arg14[%c0_61, %c0_62] : memref<8x256xf32, #tpu.memory_space<vmem>>, vector<8x128xf32>
    %97 = arith.index_cast %95 : i32 to index
    %c0_63 = arith.constant 0 : index
    %98 = vector.load %arg13[%97, %c0_63] : memref<64x512xf32, #tpu.memory_space<vmem>>, vector<8x512xf32>
    %99 = arith.truncf %96 : vector<8x128xf32> to vector<8x128xbf16>
    %c0_64 = arith.constant 0 : index
    %c0_65 = arith.constant 0 : index
    %100 = vector.load %arg2[%c0_64, %c0_65] : memref<128x512xbf16, #tpu.memory_space<vmem>>, vector<128x512xbf16>
    %cst_66 = arith.constant dense<0.000000e+00> : vector<8x512xf32>
    %101 = tpu.matmul %99, %100, %cst_66 {dimension_numbers = #tpu.dot_dimension_numbers<[1], [0], [0], [1], [0, 0, 1, 1], [], []>} : vector<8x128xbf16>, vector<128x512xbf16>, vector<8x512xf32> -> vector<8x512xf32>
    %102 = arith.addf %98, %101 : vector<8x512xf32>
    %c0_67 = arith.constant 0 : index
    %c0_68 = arith.constant 0 : index
    %103 = vector.load %arg15[%c0_67, %c0_68] : memref<8x128xf32, #tpu.memory_space<vmem>>, vector<8x128xf32>
    %104 = vector.extract_strided_slice %102 {offsets = [0, 0], sizes = [8, 128], strides = [1, 1]} : vector<8x512xf32> to vector<8x128xf32>
    %105 = arith.negf %104 : vector<8x128xf32>
    %106 = math.exp %105 : vector<8x128xf32>
    %cst_69 = arith.constant 1.000000e+00 : f32
    %107 = vector.broadcast %cst_69 : f32 to vector<8x128xf32>
    %108 = arith.addf %107, %106 : vector<8x128xf32>
    %109 = arith.divf %107, %108 : vector<8x128xf32>
    %110 = vector.extract_strided_slice %102 {offsets = [0, 128], sizes = [8, 128], strides = [1, 1]} : vector<8x512xf32> to vector<8x128xf32>
    %111 = arith.negf %110 : vector<8x128xf32>
    %112 = math.exp %111 : vector<8x128xf32>
    %cst_70 = arith.constant 1.000000e+00 : f32
    %113 = vector.broadcast %cst_70 : f32 to vector<8x128xf32>
    %114 = arith.addf %113, %112 : vector<8x128xf32>
    %115 = arith.divf %113, %114 : vector<8x128xf32>
    %116 = vector.extract_strided_slice %102 {offsets = [0, 256], sizes = [8, 128], strides = [1, 1]} : vector<8x512xf32> to vector<8x128xf32>
    %117 = math.tanh %116 : vector<8x128xf32>
    %118 = vector.extract_strided_slice %102 {offsets = [0, 384], sizes = [8, 128], strides = [1, 1]} : vector<8x512xf32> to vector<8x128xf32>
    %119 = arith.negf %118 : vector<8x128xf32>
    %120 = math.exp %119 : vector<8x128xf32>
    %cst_71 = arith.constant 1.000000e+00 : f32
    %121 = vector.broadcast %cst_71 : f32 to vector<8x128xf32>
    %122 = arith.addf %121, %120 : vector<8x128xf32>
    %123 = arith.divf %121, %122 : vector<8x128xf32>
    %124 = arith.mulf %115, %103 : vector<8x128xf32>
    %125 = arith.mulf %109, %117 : vector<8x128xf32>
    %126 = arith.addf %124, %125 : vector<8x128xf32>
    %127 = math.tanh %126 : vector<8x128xf32>
    %128 = arith.mulf %123, %127 : vector<8x128xf32>
    %c0_72 = arith.constant 0 : index
    %c0_73 = arith.constant 0 : index
    %129 = vector.load %arg14[%c0_72, %c0_73] : memref<8x256xf32, #tpu.memory_space<vmem>>, vector<8x128xf32>
    tpu.vector_store %arg14[%c0_72, %c0_73], %128 {strides = array<i32>} : memref<8x256xf32, #tpu.memory_space<vmem>>, vector<8x128xf32>,
    %c0_74 = arith.constant 0 : index
    %c0_75 = arith.constant 0 : index
    %130 = vector.load %arg15[%c0_74, %c0_75] : memref<8x128xf32, #tpu.memory_space<vmem>>, vector<8x128xf32>
    tpu.vector_store %arg15[%c0_74, %c0_75], %126 {strides = array<i32>} : memref<8x128xf32, #tpu.memory_space<vmem>>, vector<8x128xf32>,
    %c0_76 = arith.constant 0 : index
    %c0_77 = arith.constant 0 : index
    %131 = vector.load %arg14[%c0_76, %c0_77] : memref<8x256xf32, #tpu.memory_space<vmem>>, vector<8x256xf32>
    %132 = arith.truncf %131 : vector<8x256xf32> to vector<8x256xbf16>
    %c0_78 = arith.constant 0 : index
    %c0_79 = arith.constant 0 : index
    %133 = vector.load %arg4[%c0_78, %c0_79] : memref<256x512xbf16, #tpu.memory_space<vmem>>, vector<256x512xbf16>
    %cst_80 = arith.constant dense<0.000000e+00> : vector<8x512xf32>
    %134 = tpu.matmul %132, %133, %cst_80 {dimension_numbers = #tpu.dot_dimension_numbers<[1], [0], [0], [1], [0, 0, 1, 1], [], []>} : vector<8x256xbf16>, vector<256x512xbf16>, vector<8x512xf32> -> vector<8x512xf32>
    %c0_81 = arith.constant 0 : index
    %c0_82 = arith.constant 0 : index
    %135 = vector.load %arg17[%c0_81, %c0_82] : memref<8x512xf32, #tpu.memory_space<vmem>>, vector<8x512xf32>
    %136 = arith.addf %134, %135 : vector<8x512xf32>
    %c0_83 = arith.constant 0 : index
    %c0_84 = arith.constant 0 : index
    %137 = vector.load %arg16[%c0_83, %c0_84] : memref<8x128xf32, #tpu.memory_space<vmem>>, vector<8x128xf32>
    %138 = vector.extract_strided_slice %136 {offsets = [0, 0], sizes = [8, 128], strides = [1, 1]} : vector<8x512xf32> to vector<8x128xf32>
    %139 = arith.negf %138 : vector<8x128xf32>
    %140 = math.exp %139 : vector<8x128xf32>
    %cst_85 = arith.constant 1.000000e+00 : f32
    %141 = vector.broadcast %cst_85 : f32 to vector<8x128xf32>
    %142 = arith.addf %141, %140 : vector<8x128xf32>
    %143 = arith.divf %141, %142 : vector<8x128xf32>
    %144 = vector.extract_strided_slice %136 {offsets = [0, 128], sizes = [8, 128], strides = [1, 1]} : vector<8x512xf32> to vector<8x128xf32>
    %145 = arith.negf %144 : vector<8x128xf32>
    %146 = math.exp %145 : vector<8x128xf32>
    %cst_86 = arith.constant 1.000000e+00 : f32
    %147 = vector.broadcast %cst_86 : f32 to vector<8x128xf32>
    %148 = arith.addf %147, %146 : vector<8x128xf32>
    %149 = arith.divf %147, %148 : vector<8x128xf32>
    %150 = vector.extract_strided_slice %136 {offsets = [0, 256], sizes = [8, 128], strides = [1, 1]} : vector<8x512xf32> to vector<8x128xf32>
    %151 = math.tanh %150 : vector<8x128xf32>
    %152 = vector.extract_strided_slice %136 {offsets = [0, 384], sizes = [8, 128], strides = [1, 1]} : vector<8x512xf32> to vector<8x128xf32>
    %153 = arith.negf %152 : vector<8x128xf32>
    %154 = math.exp %153 : vector<8x128xf32>
    %cst_87 = arith.constant 1.000000e+00 : f32
    %155 = vector.broadcast %cst_87 : f32 to vector<8x128xf32>
    %156 = arith.addf %155, %154 : vector<8x128xf32>
    %157 = arith.divf %155, %156 : vector<8x128xf32>
    %158 = arith.mulf %149, %137 : vector<8x128xf32>
    %159 = arith.mulf %143, %151 : vector<8x128xf32>
    %160 = arith.addf %158, %159 : vector<8x128xf32>
    %161 = math.tanh %160 : vector<8x128xf32>
    %162 = arith.mulf %157, %161 : vector<8x128xf32>
    %c0_88 = arith.constant 0 : index
    %c128_89 = arith.constant 128 : index
    %163 = vector.load %arg14[%c0_88, %c128_89] : memref<8x256xf32, #tpu.memory_space<vmem>>, vector<8x128xf32>
    tpu.vector_store %arg14[%c0_88, %c128_89], %162 {strides = array<i32>} : memref<8x256xf32, #tpu.memory_space<vmem>>, vector<8x128xf32>,
    %c0_90 = arith.constant 0 : index
    %c0_91 = arith.constant 0 : index
    %164 = vector.load %arg16[%c0_90, %c0_91] : memref<8x128xf32, #tpu.memory_space<vmem>>, vector<8x128xf32>
    tpu.vector_store %arg16[%c0_90, %c0_91], %160 {strides = array<i32>} : memref<8x128xf32, #tpu.memory_space<vmem>>, vector<8x128xf32>,
    %c2_i32 = arith.constant 2 : i32
    %c8_i32_92 = arith.constant 8 : i32
    %165 = arith.muli %c2_i32, %c8_i32_92 : i32
    %166 = tpu.assume_multiple %165, 8 : i32
    %c0_93 = arith.constant 0 : index
    %c0_94 = arith.constant 0 : index
    %167 = vector.load %arg14[%c0_93, %c0_94] : memref<8x256xf32, #tpu.memory_space<vmem>>, vector<8x128xf32>
    %168 = arith.index_cast %166 : i32 to index
    %c0_95 = arith.constant 0 : index
    %169 = vector.load %arg13[%168, %c0_95] : memref<64x512xf32, #tpu.memory_space<vmem>>, vector<8x512xf32>
    %170 = arith.truncf %167 : vector<8x128xf32> to vector<8x128xbf16>
    %c0_96 = arith.constant 0 : index
    %c0_97 = arith.constant 0 : index
    %171 = vector.load %arg2[%c0_96, %c0_97] : memref<128x512xbf16, #tpu.memory_space<vmem>>, vector<128x512xbf16>
    %cst_98 = arith.constant dense<0.000000e+00> : vector<8x512xf32>
    %172 = tpu.matmul %170, %171, %cst_98 {dimension_numbers = #tpu.dot_dimension_numbers<[1], [0], [0], [1], [0, 0, 1, 1], [], []>} : vector<8x128xbf16>, vector<128x512xbf16>, vector<8x512xf32> -> vector<8x512xf32>
    %173 = arith.addf %169, %172 : vector<8x512xf32>
    %c0_99 = arith.constant 0 : index
    %c0_100 = arith.constant 0 : index
    %174 = vector.load %arg15[%c0_99, %c0_100] : memref<8x128xf32, #tpu.memory_space<vmem>>, vector<8x128xf32>
    %175 = vector.extract_strided_slice %173 {offsets = [0, 0], sizes = [8, 128], strides = [1, 1]} : vector<8x512xf32> to vector<8x128xf32>
    %176 = arith.negf %175 : vector<8x128xf32>
    %177 = math.exp %176 : vector<8x128xf32>
    %cst_101 = arith.constant 1.000000e+00 : f32
    %178 = vector.broadcast %cst_101 : f32 to vector<8x128xf32>
    %179 = arith.addf %178, %177 : vector<8x128xf32>
    %180 = arith.divf %178, %179 : vector<8x128xf32>
    %181 = vector.extract_strided_slice %173 {offsets = [0, 128], sizes = [8, 128], strides = [1, 1]} : vector<8x512xf32> to vector<8x128xf32>
    %182 = arith.negf %181 : vector<8x128xf32>
    %183 = math.exp %182 : vector<8x128xf32>
    %cst_102 = arith.constant 1.000000e+00 : f32
    %184 = vector.broadcast %cst_102 : f32 to vector<8x128xf32>
    %185 = arith.addf %184, %183 : vector<8x128xf32>
    %186 = arith.divf %184, %185 : vector<8x128xf32>
    %187 = vector.extract_strided_slice %173 {offsets = [0, 256], sizes = [8, 128], strides = [1, 1]} : vector<8x512xf32> to vector<8x128xf32>
    %188 = math.tanh %187 : vector<8x128xf32>
    %189 = vector.extract_strided_slice %173 {offsets = [0, 384], sizes = [8, 128], strides = [1, 1]} : vector<8x512xf32> to vector<8x128xf32>
    %190 = arith.negf %189 : vector<8x128xf32>
    %191 = math.exp %190 : vector<8x128xf32>
    %cst_103 = arith.constant 1.000000e+00 : f32
    %192 = vector.broadcast %cst_103 : f32 to vector<8x128xf32>
    %193 = arith.addf %192, %191 : vector<8x128xf32>
    %194 = arith.divf %192, %193 : vector<8x128xf32>
    %195 = arith.mulf %186, %174 : vector<8x128xf32>
    %196 = arith.mulf %180, %188 : vector<8x128xf32>
    %197 = arith.addf %195, %196 : vector<8x128xf32>
    %198 = math.tanh %197 : vector<8x128xf32>
    %199 = arith.mulf %194, %198 : vector<8x128xf32>
    %c0_104 = arith.constant 0 : index
    %c0_105 = arith.constant 0 : index
    %200 = vector.load %arg14[%c0_104, %c0_105] : memref<8x256xf32, #tpu.memory_space<vmem>>, vector<8x128xf32>
    tpu.vector_store %arg14[%c0_104, %c0_105], %199 {strides = array<i32>} : memref<8x256xf32, #tpu.memory_space<vmem>>, vector<8x128xf32>,
    %c0_106 = arith.constant 0 : index
    %c0_107 = arith.constant 0 : index
    %201 = vector.load %arg15[%c0_106, %c0_107] : memref<8x128xf32, #tpu.memory_space<vmem>>, vector<8x128xf32>
    tpu.vector_store %arg15[%c0_106, %c0_107], %197 {strides = array<i32>} : memref<8x128xf32, #tpu.memory_space<vmem>>, vector<8x128xf32>,
    %c0_108 = arith.constant 0 : index
    %c0_109 = arith.constant 0 : index
    %202 = vector.load %arg14[%c0_108, %c0_109] : memref<8x256xf32, #tpu.memory_space<vmem>>, vector<8x256xf32>
    %203 = arith.truncf %202 : vector<8x256xf32> to vector<8x256xbf16>
    %c0_110 = arith.constant 0 : index
    %c0_111 = arith.constant 0 : index
    %204 = vector.load %arg4[%c0_110, %c0_111] : memref<256x512xbf16, #tpu.memory_space<vmem>>, vector<256x512xbf16>
    %cst_112 = arith.constant dense<0.000000e+00> : vector<8x512xf32>
    %205 = tpu.matmul %203, %204, %cst_112 {dimension_numbers = #tpu.dot_dimension_numbers<[1], [0], [0], [1], [0, 0, 1, 1], [], []>} : vector<8x256xbf16>, vector<256x512xbf16>, vector<8x512xf32> -> vector<8x512xf32>
    %c0_113 = arith.constant 0 : index
    %c0_114 = arith.constant 0 : index
    %206 = vector.load %arg17[%c0_113, %c0_114] : memref<8x512xf32, #tpu.memory_space<vmem>>, vector<8x512xf32>
    %207 = arith.addf %205, %206 : vector<8x512xf32>
    %c0_115 = arith.constant 0 : index
    %c0_116 = arith.constant 0 : index
    %208 = vector.load %arg16[%c0_115, %c0_116] : memref<8x128xf32, #tpu.memory_space<vmem>>, vector<8x128xf32>
    %209 = vector.extract_strided_slice %207 {offsets = [0, 0], sizes = [8, 128], strides = [1, 1]} : vector<8x512xf32> to vector<8x128xf32>
    %210 = arith.negf %209 : vector<8x128xf32>
    %211 = math.exp %210 : vector<8x128xf32>
    %cst_117 = arith.constant 1.000000e+00 : f32
    %212 = vector.broadcast %cst_117 : f32 to vector<8x128xf32>
    %213 = arith.addf %212, %211 : vector<8x128xf32>
    %214 = arith.divf %212, %213 : vector<8x128xf32>
    %215 = vector.extract_strided_slice %207 {offsets = [0, 128], sizes = [8, 128], strides = [1, 1]} : vector<8x512xf32> to vector<8x128xf32>
    %216 = arith.negf %215 : vector<8x128xf32>
    %217 = math.exp %216 : vector<8x128xf32>
    %cst_118 = arith.constant 1.000000e+00 : f32
    %218 = vector.broadcast %cst_118 : f32 to vector<8x128xf32>
    %219 = arith.addf %218, %217 : vector<8x128xf32>
    %220 = arith.divf %218, %219 : vector<8x128xf32>
    %221 = vector.extract_strided_slice %207 {offsets = [0, 256], sizes = [8, 128], strides = [1, 1]} : vector<8x512xf32> to vector<8x128xf32>
    %222 = math.tanh %221 : vector<8x128xf32>
    %223 = vector.extract_strided_slice %207 {offsets = [0, 384], sizes = [8, 128], strides = [1, 1]} : vector<8x512xf32> to vector<8x128xf32>
    %224 = arith.negf %223 : vector<8x128xf32>
    %225 = math.exp %224 : vector<8x128xf32>
    %cst_119 = arith.constant 1.000000e+00 : f32
    %226 = vector.broadcast %cst_119 : f32 to vector<8x128xf32>
    %227 = arith.addf %226, %225 : vector<8x128xf32>
    %228 = arith.divf %226, %227 : vector<8x128xf32>
    %229 = arith.mulf %220, %208 : vector<8x128xf32>
    %230 = arith.mulf %214, %222 : vector<8x128xf32>
    %231 = arith.addf %229, %230 : vector<8x128xf32>
    %232 = math.tanh %231 : vector<8x128xf32>
    %233 = arith.mulf %228, %232 : vector<8x128xf32>
    %c0_120 = arith.constant 0 : index
    %c128_121 = arith.constant 128 : index
    %234 = vector.load %arg14[%c0_120, %c128_121] : memref<8x256xf32, #tpu.memory_space<vmem>>, vector<8x128xf32>
    tpu.vector_store %arg14[%c0_120, %c128_121], %233 {strides = array<i32>} : memref<8x256xf32, #tpu.memory_space<vmem>>, vector<8x128xf32>,
    %c0_122 = arith.constant 0 : index
    %c0_123 = arith.constant 0 : index
    %235 = vector.load %arg16[%c0_122, %c0_123] : memref<8x128xf32, #tpu.memory_space<vmem>>, vector<8x128xf32>
    tpu.vector_store %arg16[%c0_122, %c0_123], %231 {strides = array<i32>} : memref<8x128xf32, #tpu.memory_space<vmem>>, vector<8x128xf32>,
    %c3_i32 = arith.constant 3 : i32
    %c8_i32_124 = arith.constant 8 : i32
    %236 = arith.muli %c3_i32, %c8_i32_124 : i32
    %237 = tpu.assume_multiple %236, 8 : i32
    %c0_125 = arith.constant 0 : index
    %c0_126 = arith.constant 0 : index
    %238 = vector.load %arg14[%c0_125, %c0_126] : memref<8x256xf32, #tpu.memory_space<vmem>>, vector<8x128xf32>
    %239 = arith.index_cast %237 : i32 to index
    %c0_127 = arith.constant 0 : index
    %240 = vector.load %arg13[%239, %c0_127] : memref<64x512xf32, #tpu.memory_space<vmem>>, vector<8x512xf32>
    %241 = arith.truncf %238 : vector<8x128xf32> to vector<8x128xbf16>
    %c0_128 = arith.constant 0 : index
    %c0_129 = arith.constant 0 : index
    %242 = vector.load %arg2[%c0_128, %c0_129] : memref<128x512xbf16, #tpu.memory_space<vmem>>, vector<128x512xbf16>
    %cst_130 = arith.constant dense<0.000000e+00> : vector<8x512xf32>
    %243 = tpu.matmul %241, %242, %cst_130 {dimension_numbers = #tpu.dot_dimension_numbers<[1], [0], [0], [1], [0, 0, 1, 1], [], []>} : vector<8x128xbf16>, vector<128x512xbf16>, vector<8x512xf32> -> vector<8x512xf32>
    %244 = arith.addf %240, %243 : vector<8x512xf32>
    %c0_131 = arith.constant 0 : index
    %c0_132 = arith.constant 0 : index
    %245 = vector.load %arg15[%c0_131, %c0_132] : memref<8x128xf32, #tpu.memory_space<vmem>>, vector<8x128xf32>
    %246 = vector.extract_strided_slice %244 {offsets = [0, 0], sizes = [8, 128], strides = [1, 1]} : vector<8x512xf32> to vector<8x128xf32>
    %247 = arith.negf %246 : vector<8x128xf32>
    %248 = math.exp %247 : vector<8x128xf32>
    %cst_133 = arith.constant 1.000000e+00 : f32
    %249 = vector.broadcast %cst_133 : f32 to vector<8x128xf32>
    %250 = arith.addf %249, %248 : vector<8x128xf32>
    %251 = arith.divf %249, %250 : vector<8x128xf32>
    %252 = vector.extract_strided_slice %244 {offsets = [0, 128], sizes = [8, 128], strides = [1, 1]} : vector<8x512xf32> to vector<8x128xf32>
    %253 = arith.negf %252 : vector<8x128xf32>
    %254 = math.exp %253 : vector<8x128xf32>
    %cst_134 = arith.constant 1.000000e+00 : f32
    %255 = vector.broadcast %cst_134 : f32 to vector<8x128xf32>
    %256 = arith.addf %255, %254 : vector<8x128xf32>
    %257 = arith.divf %255, %256 : vector<8x128xf32>
    %258 = vector.extract_strided_slice %244 {offsets = [0, 256], sizes = [8, 128], strides = [1, 1]} : vector<8x512xf32> to vector<8x128xf32>
    %259 = math.tanh %258 : vector<8x128xf32>
    %260 = vector.extract_strided_slice %244 {offsets = [0, 384], sizes = [8, 128], strides = [1, 1]} : vector<8x512xf32> to vector<8x128xf32>
    %261 = arith.negf %260 : vector<8x128xf32>
    %262 = math.exp %261 : vector<8x128xf32>
    %cst_135 = arith.constant 1.000000e+00 : f32
    %263 = vector.broadcast %cst_135 : f32 to vector<8x128xf32>
    %264 = arith.addf %263, %262 : vector<8x128xf32>
    %265 = arith.divf %263, %264 : vector<8x128xf32>
    %266 = arith.mulf %257, %245 : vector<8x128xf32>
    %267 = arith.mulf %251, %259 : vector<8x128xf32>
    %268 = arith.addf %266, %267 : vector<8x128xf32>
    %269 = math.tanh %268 : vector<8x128xf32>
    %270 = arith.mulf %265, %269 : vector<8x128xf32>
    %c0_136 = arith.constant 0 : index
    %c0_137 = arith.constant 0 : index
    %271 = vector.load %arg14[%c0_136, %c0_137] : memref<8x256xf32, #tpu.memory_space<vmem>>, vector<8x128xf32>
    tpu.vector_store %arg14[%c0_136, %c0_137], %270 {strides = array<i32>} : memref<8x256xf32, #tpu.memory_space<vmem>>, vector<8x128xf32>,
    %c0_138 = arith.constant 0 : index
    %c0_139 = arith.constant 0 : index
    %272 = vector.load %arg15[%c0_138, %c0_139] : memref<8x128xf32, #tpu.memory_space<vmem>>, vector<8x128xf32>
    tpu.vector_store %arg15[%c0_138, %c0_139], %268 {strides = array<i32>} : memref<8x128xf32, #tpu.memory_space<vmem>>, vector<8x128xf32>,
    %c0_140 = arith.constant 0 : index
    %c0_141 = arith.constant 0 : index
    %273 = vector.load %arg14[%c0_140, %c0_141] : memref<8x256xf32, #tpu.memory_space<vmem>>, vector<8x256xf32>
    %274 = arith.truncf %273 : vector<8x256xf32> to vector<8x256xbf16>
    %c0_142 = arith.constant 0 : index
    %c0_143 = arith.constant 0 : index
    %275 = vector.load %arg4[%c0_142, %c0_143] : memref<256x512xbf16, #tpu.memory_space<vmem>>, vector<256x512xbf16>
    %cst_144 = arith.constant dense<0.000000e+00> : vector<8x512xf32>
    %276 = tpu.matmul %274, %275, %cst_144 {dimension_numbers = #tpu.dot_dimension_numbers<[1], [0], [0], [1], [0, 0, 1, 1], [], []>} : vector<8x256xbf16>, vector<256x512xbf16>, vector<8x512xf32> -> vector<8x512xf32>
    %c0_145 = arith.constant 0 : index
    %c0_146 = arith.constant 0 : index
    %277 = vector.load %arg17[%c0_145, %c0_146] : memref<8x512xf32, #tpu.memory_space<vmem>>, vector<8x512xf32>
    %278 = arith.addf %276, %277 : vector<8x512xf32>
    %c0_147 = arith.constant 0 : index
    %c0_148 = arith.constant 0 : index
    %279 = vector.load %arg16[%c0_147, %c0_148] : memref<8x128xf32, #tpu.memory_space<vmem>>, vector<8x128xf32>
    %280 = vector.extract_strided_slice %278 {offsets = [0, 0], sizes = [8, 128], strides = [1, 1]} : vector<8x512xf32> to vector<8x128xf32>
    %281 = arith.negf %280 : vector<8x128xf32>
    %282 = math.exp %281 : vector<8x128xf32>
    %cst_149 = arith.constant 1.000000e+00 : f32
    %283 = vector.broadcast %cst_149 : f32 to vector<8x128xf32>
    %284 = arith.addf %283, %282 : vector<8x128xf32>
    %285 = arith.divf %283, %284 : vector<8x128xf32>
    %286 = vector.extract_strided_slice %278 {offsets = [0, 128], sizes = [8, 128], strides = [1, 1]} : vector<8x512xf32> to vector<8x128xf32>
    %287 = arith.negf %286 : vector<8x128xf32>
    %288 = math.exp %287 : vector<8x128xf32>
    %cst_150 = arith.constant 1.000000e+00 : f32
    %289 = vector.broadcast %cst_150 : f32 to vector<8x128xf32>
    %290 = arith.addf %289, %288 : vector<8x128xf32>
    %291 = arith.divf %289, %290 : vector<8x128xf32>
    %292 = vector.extract_strided_slice %278 {offsets = [0, 256], sizes = [8, 128], strides = [1, 1]} : vector<8x512xf32> to vector<8x128xf32>
    %293 = math.tanh %292 : vector<8x128xf32>
    %294 = vector.extract_strided_slice %278 {offsets = [0, 384], sizes = [8, 128], strides = [1, 1]} : vector<8x512xf32> to vector<8x128xf32>
    %295 = arith.negf %294 : vector<8x128xf32>
    %296 = math.exp %295 : vector<8x128xf32>
    %cst_151 = arith.constant 1.000000e+00 : f32
    %297 = vector.broadcast %cst_151 : f32 to vector<8x128xf32>
    %298 = arith.addf %297, %296 : vector<8x128xf32>
    %299 = arith.divf %297, %298 : vector<8x128xf32>
    %300 = arith.mulf %291, %279 : vector<8x128xf32>
    %301 = arith.mulf %285, %293 : vector<8x128xf32>
    %302 = arith.addf %300, %301 : vector<8x128xf32>
    %303 = math.tanh %302 : vector<8x128xf32>
    %304 = arith.mulf %299, %303 : vector<8x128xf32>
    %c0_152 = arith.constant 0 : index
    %c128_153 = arith.constant 128 : index
    %305 = vector.load %arg14[%c0_152, %c128_153] : memref<8x256xf32, #tpu.memory_space<vmem>>, vector<8x128xf32>
    tpu.vector_store %arg14[%c0_152, %c128_153], %304 {strides = array<i32>} : memref<8x256xf32, #tpu.memory_space<vmem>>, vector<8x128xf32>,
    %c0_154 = arith.constant 0 : index
    %c0_155 = arith.constant 0 : index
    %306 = vector.load %arg16[%c0_154, %c0_155] : memref<8x128xf32, #tpu.memory_space<vmem>>, vector<8x128xf32>
    tpu.vector_store %arg16[%c0_154, %c0_155], %302 {strides = array<i32>} : memref<8x128xf32, #tpu.memory_space<vmem>>, vector<8x128xf32>,
    %c4_i32 = arith.constant 4 : i32
    %c8_i32_156 = arith.constant 8 : i32
    %307 = arith.muli %c4_i32, %c8_i32_156 : i32
    %308 = tpu.assume_multiple %307, 8 : i32
    %c0_157 = arith.constant 0 : index
    %c0_158 = arith.constant 0 : index
    %309 = vector.load %arg14[%c0_157, %c0_158] : memref<8x256xf32, #tpu.memory_space<vmem>>, vector<8x128xf32>
    %310 = arith.index_cast %308 : i32 to index
    %c0_159 = arith.constant 0 : index
    %311 = vector.load %arg13[%310, %c0_159] : memref<64x512xf32, #tpu.memory_space<vmem>>, vector<8x512xf32>
    %312 = arith.truncf %309 : vector<8x128xf32> to vector<8x128xbf16>
    %c0_160 = arith.constant 0 : index
    %c0_161 = arith.constant 0 : index
    %313 = vector.load %arg2[%c0_160, %c0_161] : memref<128x512xbf16, #tpu.memory_space<vmem>>, vector<128x512xbf16>
    %cst_162 = arith.constant dense<0.000000e+00> : vector<8x512xf32>
    %314 = tpu.matmul %312, %313, %cst_162 {dimension_numbers = #tpu.dot_dimension_numbers<[1], [0], [0], [1], [0, 0, 1, 1], [], []>} : vector<8x128xbf16>, vector<128x512xbf16>, vector<8x512xf32> -> vector<8x512xf32>
    %315 = arith.addf %311, %314 : vector<8x512xf32>
    %c0_163 = arith.constant 0 : index
    %c0_164 = arith.constant 0 : index
    %316 = vector.load %arg15[%c0_163, %c0_164] : memref<8x128xf32, #tpu.memory_space<vmem>>, vector<8x128xf32>
    %317 = vector.extract_strided_slice %315 {offsets = [0, 0], sizes = [8, 128], strides = [1, 1]} : vector<8x512xf32> to vector<8x128xf32>
    %318 = arith.negf %317 : vector<8x128xf32>
    %319 = math.exp %318 : vector<8x128xf32>
    %cst_165 = arith.constant 1.000000e+00 : f32
    %320 = vector.broadcast %cst_165 : f32 to vector<8x128xf32>
    %321 = arith.addf %320, %319 : vector<8x128xf32>
    %322 = arith.divf %320, %321 : vector<8x128xf32>
    %323 = vector.extract_strided_slice %315 {offsets = [0, 128], sizes = [8, 128], strides = [1, 1]} : vector<8x512xf32> to vector<8x128xf32>
    %324 = arith.negf %323 : vector<8x128xf32>
    %325 = math.exp %324 : vector<8x128xf32>
    %cst_166 = arith.constant 1.000000e+00 : f32
    %326 = vector.broadcast %cst_166 : f32 to vector<8x128xf32>
    %327 = arith.addf %326, %325 : vector<8x128xf32>
    %328 = arith.divf %326, %327 : vector<8x128xf32>
    %329 = vector.extract_strided_slice %315 {offsets = [0, 256], sizes = [8, 128], strides = [1, 1]} : vector<8x512xf32> to vector<8x128xf32>
    %330 = math.tanh %329 : vector<8x128xf32>
    %331 = vector.extract_strided_slice %315 {offsets = [0, 384], sizes = [8, 128], strides = [1, 1]} : vector<8x512xf32> to vector<8x128xf32>
    %332 = arith.negf %331 : vector<8x128xf32>
    %333 = math.exp %332 : vector<8x128xf32>
    %cst_167 = arith.constant 1.000000e+00 : f32
    %334 = vector.broadcast %cst_167 : f32 to vector<8x128xf32>
    %335 = arith.addf %334, %333 : vector<8x128xf32>
    %336 = arith.divf %334, %335 : vector<8x128xf32>
    %337 = arith.mulf %328, %316 : vector<8x128xf32>
    %338 = arith.mulf %322, %330 : vector<8x128xf32>
    %339 = arith.addf %337, %338 : vector<8x128xf32>
    %340 = math.tanh %339 : vector<8x128xf32>
    %341 = arith.mulf %336, %340 : vector<8x128xf32>
    %c0_168 = arith.constant 0 : index
    %c0_169 = arith.constant 0 : index
    %342 = vector.load %arg14[%c0_168, %c0_169] : memref<8x256xf32, #tpu.memory_space<vmem>>, vector<8x128xf32>
    tpu.vector_store %arg14[%c0_168, %c0_169], %341 {strides = array<i32>} : memref<8x256xf32, #tpu.memory_space<vmem>>, vector<8x128xf32>,
    %c0_170 = arith.constant 0 : index
    %c0_171 = arith.constant 0 : index
    %343 = vector.load %arg15[%c0_170, %c0_171] : memref<8x128xf32, #tpu.memory_space<vmem>>, vector<8x128xf32>
    tpu.vector_store %arg15[%c0_170, %c0_171], %339 {strides = array<i32>} : memref<8x128xf32, #tpu.memory_space<vmem>>, vector<8x128xf32>,
    %c0_172 = arith.constant 0 : index
    %c0_173 = arith.constant 0 : index
    %344 = vector.load %arg14[%c0_172, %c0_173] : memref<8x256xf32, #tpu.memory_space<vmem>>, vector<8x256xf32>
    %345 = arith.truncf %344 : vector<8x256xf32> to vector<8x256xbf16>
    %c0_174 = arith.constant 0 : index
    %c0_175 = arith.constant 0 : index
    %346 = vector.load %arg4[%c0_174, %c0_175] : memref<256x512xbf16, #tpu.memory_space<vmem>>, vector<256x512xbf16>
    %cst_176 = arith.constant dense<0.000000e+00> : vector<8x512xf32>
    %347 = tpu.matmul %345, %346, %cst_176 {dimension_numbers = #tpu.dot_dimension_numbers<[1], [0], [0], [1], [0, 0, 1, 1], [], []>} : vector<8x256xbf16>, vector<256x512xbf16>, vector<8x512xf32> -> vector<8x512xf32>
    %c0_177 = arith.constant 0 : index
    %c0_178 = arith.constant 0 : index
    %348 = vector.load %arg17[%c0_177, %c0_178] : memref<8x512xf32, #tpu.memory_space<vmem>>, vector<8x512xf32>
    %349 = arith.addf %347, %348 : vector<8x512xf32>
    %c0_179 = arith.constant 0 : index
    %c0_180 = arith.constant 0 : index
    %350 = vector.load %arg16[%c0_179, %c0_180] : memref<8x128xf32, #tpu.memory_space<vmem>>, vector<8x128xf32>
    %351 = vector.extract_strided_slice %349 {offsets = [0, 0], sizes = [8, 128], strides = [1, 1]} : vector<8x512xf32> to vector<8x128xf32>
    %352 = arith.negf %351 : vector<8x128xf32>
    %353 = math.exp %352 : vector<8x128xf32>
    %cst_181 = arith.constant 1.000000e+00 : f32
    %354 = vector.broadcast %cst_181 : f32 to vector<8x128xf32>
    %355 = arith.addf %354, %353 : vector<8x128xf32>
    %356 = arith.divf %354, %355 : vector<8x128xf32>
    %357 = vector.extract_strided_slice %349 {offsets = [0, 128], sizes = [8, 128], strides = [1, 1]} : vector<8x512xf32> to vector<8x128xf32>
    %358 = arith.negf %357 : vector<8x128xf32>
    %359 = math.exp %358 : vector<8x128xf32>
    %cst_182 = arith.constant 1.000000e+00 : f32
    %360 = vector.broadcast %cst_182 : f32 to vector<8x128xf32>
    %361 = arith.addf %360, %359 : vector<8x128xf32>
    %362 = arith.divf %360, %361 : vector<8x128xf32>
    %363 = vector.extract_strided_slice %349 {offsets = [0, 256], sizes = [8, 128], strides = [1, 1]} : vector<8x512xf32> to vector<8x128xf32>
    %364 = math.tanh %363 : vector<8x128xf32>
    %365 = vector.extract_strided_slice %349 {offsets = [0, 384], sizes = [8, 128], strides = [1, 1]} : vector<8x512xf32> to vector<8x128xf32>
    %366 = arith.negf %365 : vector<8x128xf32>
    %367 = math.exp %366 : vector<8x128xf32>
    %cst_183 = arith.constant 1.000000e+00 : f32
    %368 = vector.broadcast %cst_183 : f32 to vector<8x128xf32>
    %369 = arith.addf %368, %367 : vector<8x128xf32>
    %370 = arith.divf %368, %369 : vector<8x128xf32>
    %371 = arith.mulf %362, %350 : vector<8x128xf32>
    %372 = arith.mulf %356, %364 : vector<8x128xf32>
    %373 = arith.addf %371, %372 : vector<8x128xf32>
    %374 = math.tanh %373 : vector<8x128xf32>
    %375 = arith.mulf %370, %374 : vector<8x128xf32>
    %c0_184 = arith.constant 0 : index
    %c128_185 = arith.constant 128 : index
    %376 = vector.load %arg14[%c0_184, %c128_185] : memref<8x256xf32, #tpu.memory_space<vmem>>, vector<8x128xf32>
    tpu.vector_store %arg14[%c0_184, %c128_185], %375 {strides = array<i32>} : memref<8x256xf32, #tpu.memory_space<vmem>>, vector<8x128xf32>,
    %c0_186 = arith.constant 0 : index
    %c0_187 = arith.constant 0 : index
    %377 = vector.load %arg16[%c0_186, %c0_187] : memref<8x128xf32, #tpu.memory_space<vmem>>, vector<8x128xf32>
    tpu.vector_store %arg16[%c0_186, %c0_187], %373 {strides = array<i32>} : memref<8x128xf32, #tpu.memory_space<vmem>>, vector<8x128xf32>,
    %c5_i32 = arith.constant 5 : i32
    %c8_i32_188 = arith.constant 8 : i32
    %378 = arith.muli %c5_i32, %c8_i32_188 : i32
    %379 = tpu.assume_multiple %378, 8 : i32
    %c0_189 = arith.constant 0 : index
    %c0_190 = arith.constant 0 : index
    %380 = vector.load %arg14[%c0_189, %c0_190] : memref<8x256xf32, #tpu.memory_space<vmem>>, vector<8x128xf32>
    %381 = arith.index_cast %379 : i32 to index
    %c0_191 = arith.constant 0 : index
    %382 = vector.load %arg13[%381, %c0_191] : memref<64x512xf32, #tpu.memory_space<vmem>>, vector<8x512xf32>
    %383 = arith.truncf %380 : vector<8x128xf32> to vector<8x128xbf16>
    %c0_192 = arith.constant 0 : index
    %c0_193 = arith.constant 0 : index
    %384 = vector.load %arg2[%c0_192, %c0_193] : memref<128x512xbf16, #tpu.memory_space<vmem>>, vector<128x512xbf16>
    %cst_194 = arith.constant dense<0.000000e+00> : vector<8x512xf32>
    %385 = tpu.matmul %383, %384, %cst_194 {dimension_numbers = #tpu.dot_dimension_numbers<[1], [0], [0], [1], [0, 0, 1, 1], [], []>} : vector<8x128xbf16>, vector<128x512xbf16>, vector<8x512xf32> -> vector<8x512xf32>
    %386 = arith.addf %382, %385 : vector<8x512xf32>
    %c0_195 = arith.constant 0 : index
    %c0_196 = arith.constant 0 : index
    %387 = vector.load %arg15[%c0_195, %c0_196] : memref<8x128xf32, #tpu.memory_space<vmem>>, vector<8x128xf32>
    %388 = vector.extract_strided_slice %386 {offsets = [0, 0], sizes = [8, 128], strides = [1, 1]} : vector<8x512xf32> to vector<8x128xf32>
    %389 = arith.negf %388 : vector<8x128xf32>
    %390 = math.exp %389 : vector<8x128xf32>
    %cst_197 = arith.constant 1.000000e+00 : f32
    %391 = vector.broadcast %cst_197 : f32 to vector<8x128xf32>
    %392 = arith.addf %391, %390 : vector<8x128xf32>
    %393 = arith.divf %391, %392 : vector<8x128xf32>
    %394 = vector.extract_strided_slice %386 {offsets = [0, 128], sizes = [8, 128], strides = [1, 1]} : vector<8x512xf32> to vector<8x128xf32>
    %395 = arith.negf %394 : vector<8x128xf32>
    %396 = math.exp %395 : vector<8x128xf32>
    %cst_198 = arith.constant 1.000000e+00 : f32
    %397 = vector.broadcast %cst_198 : f32 to vector<8x128xf32>
    %398 = arith.addf %397, %396 : vector<8x128xf32>
    %399 = arith.divf %397, %398 : vector<8x128xf32>
    %400 = vector.extract_strided_slice %386 {offsets = [0, 256], sizes = [8, 128], strides = [1, 1]} : vector<8x512xf32> to vector<8x128xf32>
    %401 = math.tanh %400 : vector<8x128xf32>
    %402 = vector.extract_strided_slice %386 {offsets = [0, 384], sizes = [8, 128], strides = [1, 1]} : vector<8x512xf32> to vector<8x128xf32>
    %403 = arith.negf %402 : vector<8x128xf32>
    %404 = math.exp %403 : vector<8x128xf32>
    %cst_199 = arith.constant 1.000000e+00 : f32
    %405 = vector.broadcast %cst_199 : f32 to vector<8x128xf32>
    %406 = arith.addf %405, %404 : vector<8x128xf32>
    %407 = arith.divf %405, %406 : vector<8x128xf32>
    %408 = arith.mulf %399, %387 : vector<8x128xf32>
    %409 = arith.mulf %393, %401 : vector<8x128xf32>
    %410 = arith.addf %408, %409 : vector<8x128xf32>
    %411 = math.tanh %410 : vector<8x128xf32>
    %412 = arith.mulf %407, %411 : vector<8x128xf32>
    %c0_200 = arith.constant 0 : index
    %c0_201 = arith.constant 0 : index
    %413 = vector.load %arg14[%c0_200, %c0_201] : memref<8x256xf32, #tpu.memory_space<vmem>>, vector<8x128xf32>
    tpu.vector_store %arg14[%c0_200, %c0_201], %412 {strides = array<i32>} : memref<8x256xf32, #tpu.memory_space<vmem>>, vector<8x128xf32>,
    %c0_202 = arith.constant 0 : index
    %c0_203 = arith.constant 0 : index
    %414 = vector.load %arg15[%c0_202, %c0_203] : memref<8x128xf32, #tpu.memory_space<vmem>>, vector<8x128xf32>
    tpu.vector_store %arg15[%c0_202, %c0_203], %410 {strides = array<i32>} : memref<8x128xf32, #tpu.memory_space<vmem>>, vector<8x128xf32>,
    %c0_204 = arith.constant 0 : index
    %c0_205 = arith.constant 0 : index
    %415 = vector.load %arg14[%c0_204, %c0_205] : memref<8x256xf32, #tpu.memory_space<vmem>>, vector<8x256xf32>
    %416 = arith.truncf %415 : vector<8x256xf32> to vector<8x256xbf16>
    %c0_206 = arith.constant 0 : index
    %c0_207 = arith.constant 0 : index
    %417 = vector.load %arg4[%c0_206, %c0_207] : memref<256x512xbf16, #tpu.memory_space<vmem>>, vector<256x512xbf16>
    %cst_208 = arith.constant dense<0.000000e+00> : vector<8x512xf32>
    %418 = tpu.matmul %416, %417, %cst_208 {dimension_numbers = #tpu.dot_dimension_numbers<[1], [0], [0], [1], [0, 0, 1, 1], [], []>} : vector<8x256xbf16>, vector<256x512xbf16>, vector<8x512xf32> -> vector<8x512xf32>
    %c0_209 = arith.constant 0 : index
    %c0_210 = arith.constant 0 : index
    %419 = vector.load %arg17[%c0_209, %c0_210] : memref<8x512xf32, #tpu.memory_space<vmem>>, vector<8x512xf32>
    %420 = arith.addf %418, %419 : vector<8x512xf32>
    %c0_211 = arith.constant 0 : index
    %c0_212 = arith.constant 0 : index
    %421 = vector.load %arg16[%c0_211, %c0_212] : memref<8x128xf32, #tpu.memory_space<vmem>>, vector<8x128xf32>
    %422 = vector.extract_strided_slice %420 {offsets = [0, 0], sizes = [8, 128], strides = [1, 1]} : vector<8x512xf32> to vector<8x128xf32>
    %423 = arith.negf %422 : vector<8x128xf32>
    %424 = math.exp %423 : vector<8x128xf32>
    %cst_213 = arith.constant 1.000000e+00 : f32
    %425 = vector.broadcast %cst_213 : f32 to vector<8x128xf32>
    %426 = arith.addf %425, %424 : vector<8x128xf32>
    %427 = arith.divf %425, %426 : vector<8x128xf32>
    %428 = vector.extract_strided_slice %420 {offsets = [0, 128], sizes = [8, 128], strides = [1, 1]} : vector<8x512xf32> to vector<8x128xf32>
    %429 = arith.negf %428 : vector<8x128xf32>
    %430 = math.exp %429 : vector<8x128xf32>
    %cst_214 = arith.constant 1.000000e+00 : f32
    %431 = vector.broadcast %cst_214 : f32 to vector<8x128xf32>
    %432 = arith.addf %431, %430 : vector<8x128xf32>
    %433 = arith.divf %431, %432 : vector<8x128xf32>
    %434 = vector.extract_strided_slice %420 {offsets = [0, 256], sizes = [8, 128], strides = [1, 1]} : vector<8x512xf32> to vector<8x128xf32>
    %435 = math.tanh %434 : vector<8x128xf32>
    %436 = vector.extract_strided_slice %420 {offsets = [0, 384], sizes = [8, 128], strides = [1, 1]} : vector<8x512xf32> to vector<8x128xf32>
    %437 = arith.negf %436 : vector<8x128xf32>
    %438 = math.exp %437 : vector<8x128xf32>
    %cst_215 = arith.constant 1.000000e+00 : f32
    %439 = vector.broadcast %cst_215 : f32 to vector<8x128xf32>
    %440 = arith.addf %439, %438 : vector<8x128xf32>
    %441 = arith.divf %439, %440 : vector<8x128xf32>
    %442 = arith.mulf %433, %421 : vector<8x128xf32>
    %443 = arith.mulf %427, %435 : vector<8x128xf32>
    %444 = arith.addf %442, %443 : vector<8x128xf32>
    %445 = math.tanh %444 : vector<8x128xf32>
    %446 = arith.mulf %441, %445 : vector<8x128xf32>
    %c0_216 = arith.constant 0 : index
    %c128_217 = arith.constant 128 : index
    %447 = vector.load %arg14[%c0_216, %c128_217] : memref<8x256xf32, #tpu.memory_space<vmem>>, vector<8x128xf32>
    tpu.vector_store %arg14[%c0_216, %c128_217], %446 {strides = array<i32>} : memref<8x256xf32, #tpu.memory_space<vmem>>, vector<8x128xf32>,
    %c0_218 = arith.constant 0 : index
    %c0_219 = arith.constant 0 : index
    %448 = vector.load %arg16[%c0_218, %c0_219] : memref<8x128xf32, #tpu.memory_space<vmem>>, vector<8x128xf32>
    tpu.vector_store %arg16[%c0_218, %c0_219], %444 {strides = array<i32>} : memref<8x128xf32, #tpu.memory_space<vmem>>, vector<8x128xf32>,
    %c6_i32 = arith.constant 6 : i32
    %c8_i32_220 = arith.constant 8 : i32
    %449 = arith.muli %c6_i32, %c8_i32_220 : i32
    %450 = tpu.assume_multiple %449, 8 : i32
    %c0_221 = arith.constant 0 : index
    %c0_222 = arith.constant 0 : index
    %451 = vector.load %arg14[%c0_221, %c0_222] : memref<8x256xf32, #tpu.memory_space<vmem>>, vector<8x128xf32>
    %452 = arith.index_cast %450 : i32 to index
    %c0_223 = arith.constant 0 : index
    %453 = vector.load %arg13[%452, %c0_223] : memref<64x512xf32, #tpu.memory_space<vmem>>, vector<8x512xf32>
    %454 = arith.truncf %451 : vector<8x128xf32> to vector<8x128xbf16>
    %c0_224 = arith.constant 0 : index
    %c0_225 = arith.constant 0 : index
    %455 = vector.load %arg2[%c0_224, %c0_225] : memref<128x512xbf16, #tpu.memory_space<vmem>>, vector<128x512xbf16>
    %cst_226 = arith.constant dense<0.000000e+00> : vector<8x512xf32>
    %456 = tpu.matmul %454, %455, %cst_226 {dimension_numbers = #tpu.dot_dimension_numbers<[1], [0], [0], [1], [0, 0, 1, 1], [], []>} : vector<8x128xbf16>, vector<128x512xbf16>, vector<8x512xf32> -> vector<8x512xf32>
    %457 = arith.addf %453, %456 : vector<8x512xf32>
    %c0_227 = arith.constant 0 : index
    %c0_228 = arith.constant 0 : index
    %458 = vector.load %arg15[%c0_227, %c0_228] : memref<8x128xf32, #tpu.memory_space<vmem>>, vector<8x128xf32>
    %459 = vector.extract_strided_slice %457 {offsets = [0, 0], sizes = [8, 128], strides = [1, 1]} : vector<8x512xf32> to vector<8x128xf32>
    %460 = arith.negf %459 : vector<8x128xf32>
    %461 = math.exp %460 : vector<8x128xf32>
    %cst_229 = arith.constant 1.000000e+00 : f32
    %462 = vector.broadcast %cst_229 : f32 to vector<8x128xf32>
    %463 = arith.addf %462, %461 : vector<8x128xf32>
    %464 = arith.divf %462, %463 : vector<8x128xf32>
    %465 = vector.extract_strided_slice %457 {offsets = [0, 128], sizes = [8, 128], strides = [1, 1]} : vector<8x512xf32> to vector<8x128xf32>
    %466 = arith.negf %465 : vector<8x128xf32>
    %467 = math.exp %466 : vector<8x128xf32>
    %cst_230 = arith.constant 1.000000e+00 : f32
    %468 = vector.broadcast %cst_230 : f32 to vector<8x128xf32>
    %469 = arith.addf %468, %467 : vector<8x128xf32>
    %470 = arith.divf %468, %469 : vector<8x128xf32>
    %471 = vector.extract_strided_slice %457 {offsets = [0, 256], sizes = [8, 128], strides = [1, 1]} : vector<8x512xf32> to vector<8x128xf32>
    %472 = math.tanh %471 : vector<8x128xf32>
    %473 = vector.extract_strided_slice %457 {offsets = [0, 384], sizes = [8, 128], strides = [1, 1]} : vector<8x512xf32> to vector<8x128xf32>
    %474 = arith.negf %473 : vector<8x128xf32>
    %475 = math.exp %474 : vector<8x128xf32>
    %cst_231 = arith.constant 1.000000e+00 : f32
    %476 = vector.broadcast %cst_231 : f32 to vector<8x128xf32>
    %477 = arith.addf %476, %475 : vector<8x128xf32>
    %478 = arith.divf %476, %477 : vector<8x128xf32>
    %479 = arith.mulf %470, %458 : vector<8x128xf32>
    %480 = arith.mulf %464, %472 : vector<8x128xf32>
    %481 = arith.addf %479, %480 : vector<8x128xf32>
    %482 = math.tanh %481 : vector<8x128xf32>
    %483 = arith.mulf %478, %482 : vector<8x128xf32>
    %c0_232 = arith.constant 0 : index
    %c0_233 = arith.constant 0 : index
    %484 = vector.load %arg14[%c0_232, %c0_233] : memref<8x256xf32, #tpu.memory_space<vmem>>, vector<8x128xf32>
    tpu.vector_store %arg14[%c0_232, %c0_233], %483 {strides = array<i32>} : memref<8x256xf32, #tpu.memory_space<vmem>>, vector<8x128xf32>,
    %c0_234 = arith.constant 0 : index
    %c0_235 = arith.constant 0 : index
    %485 = vector.load %arg15[%c0_234, %c0_235] : memref<8x128xf32, #tpu.memory_space<vmem>>, vector<8x128xf32>
    tpu.vector_store %arg15[%c0_234, %c0_235], %481 {strides = array<i32>} : memref<8x128xf32, #tpu.memory_space<vmem>>, vector<8x128xf32>,
    %c0_236 = arith.constant 0 : index
    %c0_237 = arith.constant 0 : index
    %486 = vector.load %arg14[%c0_236, %c0_237] : memref<8x256xf32, #tpu.memory_space<vmem>>, vector<8x256xf32>
    %487 = arith.truncf %486 : vector<8x256xf32> to vector<8x256xbf16>
    %c0_238 = arith.constant 0 : index
    %c0_239 = arith.constant 0 : index
    %488 = vector.load %arg4[%c0_238, %c0_239] : memref<256x512xbf16, #tpu.memory_space<vmem>>, vector<256x512xbf16>
    %cst_240 = arith.constant dense<0.000000e+00> : vector<8x512xf32>
    %489 = tpu.matmul %487, %488, %cst_240 {dimension_numbers = #tpu.dot_dimension_numbers<[1], [0], [0], [1], [0, 0, 1, 1], [], []>} : vector<8x256xbf16>, vector<256x512xbf16>, vector<8x512xf32> -> vector<8x512xf32>
    %c0_241 = arith.constant 0 : index
    %c0_242 = arith.constant 0 : index
    %490 = vector.load %arg17[%c0_241, %c0_242] : memref<8x512xf32, #tpu.memory_space<vmem>>, vector<8x512xf32>
    %491 = arith.addf %489, %490 : vector<8x512xf32>
    %c0_243 = arith.constant 0 : index
    %c0_244 = arith.constant 0 : index
    %492 = vector.load %arg16[%c0_243, %c0_244] : memref<8x128xf32, #tpu.memory_space<vmem>>, vector<8x128xf32>
    %493 = vector.extract_strided_slice %491 {offsets = [0, 0], sizes = [8, 128], strides = [1, 1]} : vector<8x512xf32> to vector<8x128xf32>
    %494 = arith.negf %493 : vector<8x128xf32>
    %495 = math.exp %494 : vector<8x128xf32>
    %cst_245 = arith.constant 1.000000e+00 : f32
    %496 = vector.broadcast %cst_245 : f32 to vector<8x128xf32>
    %497 = arith.addf %496, %495 : vector<8x128xf32>
    %498 = arith.divf %496, %497 : vector<8x128xf32>
    %499 = vector.extract_strided_slice %491 {offsets = [0, 128], sizes = [8, 128], strides = [1, 1]} : vector<8x512xf32> to vector<8x128xf32>
    %500 = arith.negf %499 : vector<8x128xf32>
    %501 = math.exp %500 : vector<8x128xf32>
    %cst_246 = arith.constant 1.000000e+00 : f32
    %502 = vector.broadcast %cst_246 : f32 to vector<8x128xf32>
    %503 = arith.addf %502, %501 : vector<8x128xf32>
    %504 = arith.divf %502, %503 : vector<8x128xf32>
    %505 = vector.extract_strided_slice %491 {offsets = [0, 256], sizes = [8, 128], strides = [1, 1]} : vector<8x512xf32> to vector<8x128xf32>
    %506 = math.tanh %505 : vector<8x128xf32>
    %507 = vector.extract_strided_slice %491 {offsets = [0, 384], sizes = [8, 128], strides = [1, 1]} : vector<8x512xf32> to vector<8x128xf32>
    %508 = arith.negf %507 : vector<8x128xf32>
    %509 = math.exp %508 : vector<8x128xf32>
    %cst_247 = arith.constant 1.000000e+00 : f32
    %510 = vector.broadcast %cst_247 : f32 to vector<8x128xf32>
    %511 = arith.addf %510, %509 : vector<8x128xf32>
    %512 = arith.divf %510, %511 : vector<8x128xf32>
    %513 = arith.mulf %504, %492 : vector<8x128xf32>
    %514 = arith.mulf %498, %506 : vector<8x128xf32>
    %515 = arith.addf %513, %514 : vector<8x128xf32>
    %516 = math.tanh %515 : vector<8x128xf32>
    %517 = arith.mulf %512, %516 : vector<8x128xf32>
    %c0_248 = arith.constant 0 : index
    %c128_249 = arith.constant 128 : index
    %518 = vector.load %arg14[%c0_248, %c128_249] : memref<8x256xf32, #tpu.memory_space<vmem>>, vector<8x128xf32>
    tpu.vector_store %arg14[%c0_248, %c128_249], %517 {strides = array<i32>} : memref<8x256xf32, #tpu.memory_space<vmem>>, vector<8x128xf32>,
    %c0_250 = arith.constant 0 : index
    %c0_251 = arith.constant 0 : index
    %519 = vector.load %arg16[%c0_250, %c0_251] : memref<8x128xf32, #tpu.memory_space<vmem>>, vector<8x128xf32>
    tpu.vector_store %arg16[%c0_250, %c0_251], %515 {strides = array<i32>} : memref<8x128xf32, #tpu.memory_space<vmem>>, vector<8x128xf32>,
    %c7_i32 = arith.constant 7 : i32
    %c8_i32_252 = arith.constant 8 : i32
    %520 = arith.muli %c7_i32, %c8_i32_252 : i32
    %521 = tpu.assume_multiple %520, 8 : i32
    %c0_253 = arith.constant 0 : index
    %c0_254 = arith.constant 0 : index
    %522 = vector.load %arg14[%c0_253, %c0_254] : memref<8x256xf32, #tpu.memory_space<vmem>>, vector<8x128xf32>
    %523 = arith.index_cast %521 : i32 to index
    %c0_255 = arith.constant 0 : index
    %524 = vector.load %arg13[%523, %c0_255] : memref<64x512xf32, #tpu.memory_space<vmem>>, vector<8x512xf32>
    %525 = arith.truncf %522 : vector<8x128xf32> to vector<8x128xbf16>
    %c0_256 = arith.constant 0 : index
    %c0_257 = arith.constant 0 : index
    %526 = vector.load %arg2[%c0_256, %c0_257] : memref<128x512xbf16, #tpu.memory_space<vmem>>, vector<128x512xbf16>
    %cst_258 = arith.constant dense<0.000000e+00> : vector<8x512xf32>
    %527 = tpu.matmul %525, %526, %cst_258 {dimension_numbers = #tpu.dot_dimension_numbers<[1], [0], [0], [1], [0, 0, 1, 1], [], []>} : vector<8x128xbf16>, vector<128x512xbf16>, vector<8x512xf32> -> vector<8x512xf32>
    %528 = arith.addf %524, %527 : vector<8x512xf32>
    %c0_259 = arith.constant 0 : index
    %c0_260 = arith.constant 0 : index
    %529 = vector.load %arg15[%c0_259, %c0_260] : memref<8x128xf32, #tpu.memory_space<vmem>>, vector<8x128xf32>
    %530 = vector.extract_strided_slice %528 {offsets = [0, 0], sizes = [8, 128], strides = [1, 1]} : vector<8x512xf32> to vector<8x128xf32>
    %531 = arith.negf %530 : vector<8x128xf32>
    %532 = math.exp %531 : vector<8x128xf32>
    %cst_261 = arith.constant 1.000000e+00 : f32
    %533 = vector.broadcast %cst_261 : f32 to vector<8x128xf32>
    %534 = arith.addf %533, %532 : vector<8x128xf32>
    %535 = arith.divf %533, %534 : vector<8x128xf32>
    %536 = vector.extract_strided_slice %528 {offsets = [0, 128], sizes = [8, 128], strides = [1, 1]} : vector<8x512xf32> to vector<8x128xf32>
    %537 = arith.negf %536 : vector<8x128xf32>
    %538 = math.exp %537 : vector<8x128xf32>
    %cst_262 = arith.constant 1.000000e+00 : f32
    %539 = vector.broadcast %cst_262 : f32 to vector<8x128xf32>
    %540 = arith.addf %539, %538 : vector<8x128xf32>
    %541 = arith.divf %539, %540 : vector<8x128xf32>
    %542 = vector.extract_strided_slice %528 {offsets = [0, 256], sizes = [8, 128], strides = [1, 1]} : vector<8x512xf32> to vector<8x128xf32>
    %543 = math.tanh %542 : vector<8x128xf32>
    %544 = vector.extract_strided_slice %528 {offsets = [0, 384], sizes = [8, 128], strides = [1, 1]} : vector<8x512xf32> to vector<8x128xf32>
    %545 = arith.negf %544 : vector<8x128xf32>
    %546 = math.exp %545 : vector<8x128xf32>
    %cst_263 = arith.constant 1.000000e+00 : f32
    %547 = vector.broadcast %cst_263 : f32 to vector<8x128xf32>
    %548 = arith.addf %547, %546 : vector<8x128xf32>
    %549 = arith.divf %547, %548 : vector<8x128xf32>
    %550 = arith.mulf %541, %529 : vector<8x128xf32>
    %551 = arith.mulf %535, %543 : vector<8x128xf32>
    %552 = arith.addf %550, %551 : vector<8x128xf32>
    %553 = math.tanh %552 : vector<8x128xf32>
    %554 = arith.mulf %549, %553 : vector<8x128xf32>
    %c0_264 = arith.constant 0 : index
    %c0_265 = arith.constant 0 : index
    %555 = vector.load %arg14[%c0_264, %c0_265] : memref<8x256xf32, #tpu.memory_space<vmem>>, vector<8x128xf32>
    tpu.vector_store %arg14[%c0_264, %c0_265], %554 {strides = array<i32>} : memref<8x256xf32, #tpu.memory_space<vmem>>, vector<8x128xf32>,
    %c0_266 = arith.constant 0 : index
    %c0_267 = arith.constant 0 : index
    %556 = vector.load %arg15[%c0_266, %c0_267] : memref<8x128xf32, #tpu.memory_space<vmem>>, vector<8x128xf32>
    tpu.vector_store %arg15[%c0_266, %c0_267], %552 {strides = array<i32>} : memref<8x128xf32, #tpu.memory_space<vmem>>, vector<8x128xf32>,
    %c0_268 = arith.constant 0 : index
    %c0_269 = arith.constant 0 : index
    %557 = vector.load %arg14[%c0_268, %c0_269] : memref<8x256xf32, #tpu.memory_space<vmem>>, vector<8x256xf32>
    %558 = arith.truncf %557 : vector<8x256xf32> to vector<8x256xbf16>
    %c0_270 = arith.constant 0 : index
    %c0_271 = arith.constant 0 : index
    %559 = vector.load %arg4[%c0_270, %c0_271] : memref<256x512xbf16, #tpu.memory_space<vmem>>, vector<256x512xbf16>
    %cst_272 = arith.constant dense<0.000000e+00> : vector<8x512xf32>
    %560 = tpu.matmul %558, %559, %cst_272 {dimension_numbers = #tpu.dot_dimension_numbers<[1], [0], [0], [1], [0, 0, 1, 1], [], []>} : vector<8x256xbf16>, vector<256x512xbf16>, vector<8x512xf32> -> vector<8x512xf32>
    %c0_273 = arith.constant 0 : index
    %c0_274 = arith.constant 0 : index
    %561 = vector.load %arg17[%c0_273, %c0_274] : memref<8x512xf32, #tpu.memory_space<vmem>>, vector<8x512xf32>
    %562 = arith.addf %560, %561 : vector<8x512xf32>
    %c0_275 = arith.constant 0 : index
    %c0_276 = arith.constant 0 : index
    %563 = vector.load %arg16[%c0_275, %c0_276] : memref<8x128xf32, #tpu.memory_space<vmem>>, vector<8x128xf32>
    %564 = vector.extract_strided_slice %562 {offsets = [0, 0], sizes = [8, 128], strides = [1, 1]} : vector<8x512xf32> to vector<8x128xf32>
    %565 = arith.negf %564 : vector<8x128xf32>
    %566 = math.exp %565 : vector<8x128xf32>
    %cst_277 = arith.constant 1.000000e+00 : f32
    %567 = vector.broadcast %cst_277 : f32 to vector<8x128xf32>
    %568 = arith.addf %567, %566 : vector<8x128xf32>
    %569 = arith.divf %567, %568 : vector<8x128xf32>
    %570 = vector.extract_strided_slice %562 {offsets = [0, 128], sizes = [8, 128], strides = [1, 1]} : vector<8x512xf32> to vector<8x128xf32>
    %571 = arith.negf %570 : vector<8x128xf32>
    %572 = math.exp %571 : vector<8x128xf32>
    %cst_278 = arith.constant 1.000000e+00 : f32
    %573 = vector.broadcast %cst_278 : f32 to vector<8x128xf32>
    %574 = arith.addf %573, %572 : vector<8x128xf32>
    %575 = arith.divf %573, %574 : vector<8x128xf32>
    %576 = vector.extract_strided_slice %562 {offsets = [0, 256], sizes = [8, 128], strides = [1, 1]} : vector<8x512xf32> to vector<8x128xf32>
    %577 = math.tanh %576 : vector<8x128xf32>
    %578 = vector.extract_strided_slice %562 {offsets = [0, 384], sizes = [8, 128], strides = [1, 1]} : vector<8x512xf32> to vector<8x128xf32>
    %579 = arith.negf %578 : vector<8x128xf32>
    %580 = math.exp %579 : vector<8x128xf32>
    %cst_279 = arith.constant 1.000000e+00 : f32
    %581 = vector.broadcast %cst_279 : f32 to vector<8x128xf32>
    %582 = arith.addf %581, %580 : vector<8x128xf32>
    %583 = arith.divf %581, %582 : vector<8x128xf32>
    %584 = arith.mulf %575, %563 : vector<8x128xf32>
    %585 = arith.mulf %569, %577 : vector<8x128xf32>
    %586 = arith.addf %584, %585 : vector<8x128xf32>
    %587 = math.tanh %586 : vector<8x128xf32>
    %588 = arith.mulf %583, %587 : vector<8x128xf32>
    %c0_280 = arith.constant 0 : index
    %c128_281 = arith.constant 128 : index
    %589 = vector.load %arg14[%c0_280, %c128_281] : memref<8x256xf32, #tpu.memory_space<vmem>>, vector<8x128xf32>
    tpu.vector_store %arg14[%c0_280, %c128_281], %588 {strides = array<i32>} : memref<8x256xf32, #tpu.memory_space<vmem>>, vector<8x128xf32>,
    %c0_282 = arith.constant 0 : index
    %c0_283 = arith.constant 0 : index
    %590 = vector.load %arg16[%c0_282, %c0_283] : memref<8x128xf32, #tpu.memory_space<vmem>>, vector<8x128xf32>
    tpu.vector_store %arg16[%c0_282, %c0_283], %586 {strides = array<i32>} : memref<8x128xf32, #tpu.memory_space<vmem>>, vector<8x128xf32>,
    %c8_i32_284 = arith.constant 8 : i32
    %c0_285 = arith.constant 0 : index
    %c128_286 = arith.constant 128 : index
    %591 = vector.load %arg14[%c0_285, %c128_286] : memref<8x256xf32, #tpu.memory_space<vmem>>, vector<8x128xf32>
    %592 = arith.truncf %591 : vector<8x128xf32> to vector<8x128xbf16>
    %c0_287 = arith.constant 0 : index
    %c0_288 = arith.constant 0 : index
    %593 = vector.load %arg6[%c0_287, %c0_288] : memref<128x128xbf16, #tpu.memory_space<vmem>>, vector<128x128xbf16>
    %cst_289 = arith.constant dense<0.000000e+00> : vector<8x128xf32>
    %594 = tpu.matmul %592, %593, %cst_289 {dimension_numbers = #tpu.dot_dimension_numbers<[1], [0], [0], [1], [0, 0, 1, 1], [], []>} : vector<8x128xbf16>, vector<128x128xbf16>, vector<8x128xf32> -> vector<8x128xf32>
    %c0_290 = arith.constant 0 : index
    %c0_291 = arith.constant 0 : index
    %595 = vector.load %arg7[%c0_290, %c0_291] : memref<1x128xf32, #tpu.memory_space<vmem>>, vector<1x128xf32>
    %596 = vector.broadcast %595 : vector<1x128xf32> to vector<8x128xf32>
    %597 = arith.addf %594, %596 : vector<8x128xf32>
    %598 = arith.negf %597 : vector<8x128xf32>
    %599 = math.exp %598 : vector<8x128xf32>
    %cst_292 = arith.constant 1.000000e+00 : f32
    %600 = vector.broadcast %cst_292 : f32 to vector<8x128xf32>
    %601 = arith.addf %600, %599 : vector<8x128xf32>
    %602 = arith.divf %600, %601 : vector<8x128xf32>
    %c0_293 = arith.constant 0 : index
    %c0_294 = arith.constant 0 : index
    %603 = vector.load %arg10[%c0_293, %c0_294] : memref<8x128xf32, #tpu.memory_space<vmem>>, vector<8x128xf32>
    tpu.vector_store %arg10[%c0_293, %c0_294], %602 {strides = array<i32>} : memref<8x128xf32, #tpu.memory_space<vmem>>, vector<8x128xf32>,
    %c0_295 = arith.constant 0 : index
    %c0_296 = arith.constant 0 : index
    %604 = vector.load %arg14[%c0_295, %c0_296] : memref<8x256xf32, #tpu.memory_space<vmem>>, vector<8x128xf32>
    %c0_297 = arith.constant 0 : index
    %c0_298 = arith.constant 0 : index
    %c0_299 = arith.constant 0 : index
    %605 = vector.load %arg11[%c0_297, %c0_298, %c0_299] : memref<2x8x128xf32, #tpu.memory_space<vmem>>, vector<1x8x128xf32>
    %606 = vector.shape_cast %605 : vector<1x8x128xf32> to vector<8x128xf32>
    %607 = vector.shape_cast %604 : vector<8x128xf32> to vector<1x8x128xf32>
    tpu.vector_store %arg11[%c0_297, %c0_298, %c0_299], %607 {strides = array<i32>} : memref<2x8x128xf32, #tpu.memory_space<vmem>>, vector<1x8x128xf32>,
    %c0_300 = arith.constant 0 : index
    %c128_301 = arith.constant 128 : index
    %608 = vector.load %arg14[%c0_300, %c128_301] : memref<8x256xf32, #tpu.memory_space<vmem>>, vector<8x128xf32>
    %c1_302 = arith.constant 1 : index
    %c0_303 = arith.constant 0 : index
    %c0_304 = arith.constant 0 : index
    %609 = vector.load %arg11[%c1_302, %c0_303, %c0_304] : memref<2x8x128xf32, #tpu.memory_space<vmem>>, vector<1x8x128xf32>
    %610 = vector.shape_cast %609 : vector<1x8x128xf32> to vector<8x128xf32>
    %611 = vector.shape_cast %608 : vector<8x128xf32> to vector<1x8x128xf32>
    tpu.vector_store %arg11[%c1_302, %c0_303, %c0_304], %611 {strides = array<i32>} : memref<2x8x128xf32, #tpu.memory_space<vmem>>, vector<1x8x128xf32>,
    %c0_305 = arith.constant 0 : index
    %c0_306 = arith.constant 0 : index
    %612 = vector.load %arg15[%c0_305, %c0_306] : memref<8x128xf32, #tpu.memory_space<vmem>>, vector<8x128xf32>
    %c0_307 = arith.constant 0 : index
    %c0_308 = arith.constant 0 : index
    %c0_309 = arith.constant 0 : index
    %613 = vector.load %arg12[%c0_307, %c0_308, %c0_309] : memref<2x8x128xf32, #tpu.memory_space<vmem>>, vector<1x8x128xf32>
    %614 = vector.shape_cast %613 : vector<1x8x128xf32> to vector<8x128xf32>
    %615 = vector.shape_cast %612 : vector<8x128xf32> to vector<1x8x128xf32>
    tpu.vector_store %arg12[%c0_307, %c0_308, %c0_309], %615 {strides = array<i32>} : memref<2x8x128xf32, #tpu.memory_space<vmem>>, vector<1x8x128xf32>,
    %c0_310 = arith.constant 0 : index
    %c0_311 = arith.constant 0 : index
    %616 = vector.load %arg16[%c0_310, %c0_311] : memref<8x128xf32, #tpu.memory_space<vmem>>, vector<8x128xf32>
    %c1_312 = arith.constant 1 : index
    %c0_313 = arith.constant 0 : index
    %c0_314 = arith.constant 0 : index
    %617 = vector.load %arg12[%c1_312, %c0_313, %c0_314] : memref<2x8x128xf32, #tpu.memory_space<vmem>>, vector<1x8x128xf32>
    %618 = vector.shape_cast %617 : vector<1x8x128xf32> to vector<8x128xf32>
    %619 = vector.shape_cast %616 : vector<8x128xf32> to vector<1x8x128xf32>
    tpu.vector_store %arg12[%c1_312, %c0_313, %c0_314], %619 {strides = array<i32>} : memref<2x8x128xf32, #tpu.memory_space<vmem>>, vector<1x8x128xf32>,
    return
  }
}

</mosaic_0001>

<bundles_post_ra>
// kernel: sentiment_rnn_forward.1
= control target key start
LH: loop header
LB: loop body
LE: loop exit
PB: predicated region body
PF: predicated region fallthrough
CT: control target
= control target key end

     0   :  { %v12181_v1 = vmov 0   ;;  %vm9006_vm0 = vmmov 0   ;;  %s12168_s1 = inlined_call_operand.vmem [shape: bf16[128,512], index: 1, kind: input, shape index: {}]   ;;  %s12169_s0 = inlined_call_operand.vmem [shape: bf16[64,128], index: 0, kind: input, shape index: {}]   ;;  %s12170_s2 = inlined_call_operand.vmem [shape: bf16[128,512], index: 2, kind: input, shape index: {}]   ;;  %s12171_s8 = inlined_call_operand.vmem [shape: f32[2,8,128], index: 8, kind: input, shape index: {}, may-alias: {8,11}]   ;;  %s12172_s4 = inlined_call_operand.vmem [shape: bf16[256,512], index: 4, kind: input, shape index: {}]   ;;  %s12173_s3 = inlined_call_operand.vmem [shape: f32[1,512], index: 3, kind: input, shape index: {}]   ;;  %s12174_s9 = inlined_call_operand.vmem [shape: f32[2,8,128], index: 9, kind: input, shape index: {}, may-alias: {9,12}]   ;;  %s12175_s5 = inlined_call_operand.vmem [shape: f32[1,512], index: 5, kind: input, shape index: {}]   ;;  %s12176_s12 = inlined_call_operand.vmem [shape: f32[2,8,128], index: 12, kind: output, shape index: {2}, may-alias: {9,12}]   ;;  %s12177_s11 = inlined_call_operand.vmem [shape: f32[2,8,128], index: 11, kind: output, shape index: {1}, may-alias: {8,11}]   ;;  %s12178_s6 = inlined_call_operand.vmem [shape: bf16[128,128], index: 6, kind: input, shape index: {}]   ;;  %s12179_s7 = inlined_call_operand.vmem [shape: f32[1,128], index: 7, kind: input, shape index: {}]   ;;  %s12180_s10 = inlined_call_operand.vmem [shape: f32[8,128], index: 10, kind: output, shape index: {0}]  }
   0x1   :  { %v8066_v0 = vld [vmem:[%s12168_s1 + $0xe4] ss:$16 sps:$4 sm:$0xff]   ;;  %317 = vmatprep.mubr.bf16.mxu0 %v12181_v1  ;;  %390 = vmatprep.mubr.bf16.mxu1 %v12181_v1  ;;  %v8068_v2 = vld [vmem:[%s12168_s1 + $0xec] ss:$16 sps:$4 sm:$0xff]   ;;  %v8070_v3 = vld [vmem:[%s12168_s1 + $0xe0] ss:$16 sps:$4 sm:$0xff]  }
   0x2   :  { %285 = vmatprep.subr.bf16.mxu0 %v8066_v0  ;;  %v8071_v4 = vld [vmem:[%s12168_s1 + $0xe8] ss:$16 sps:$4 sm:$0xff]   ;;  %358 = vmatprep.subr.bf16.mxu1 %v8068_v2  ;;  %v8072_v5 = vld [vmem:[%s12168_s1 + $0xc4] ss:$16 sps:$4 sm:$0xff]   ;;  %v8074_v6 = vld [vmem:[%s12168_s1 + $0xcc] ss:$16 sps:$4 sm:$0xff]  }
   0x3   :  { %286 = vmatpush1.bf16.msra.mxu0 %v8070_v3  ;;  %359 = vmatpush1.bf16.msra.mxu1 %v8071_v4  ;;  %v8076_v7 = vld [vmem:[%s12168_s1 + $0xc0] ss:$16 sps:$4 sm:$0xff]   ;;  %v8077_v8 = vld [vmem:[%s12168_s1 + $0xc8] ss:$16 sps:$4 sm:$0xff]   ;;  %v8078_v9 = vld [vmem:[%s12168_s1 + $0xa4] ss:$16 sps:$4 sm:$0xff]  }
   0x4   :  { %287 = vmatprep.subr.bf16.mxu0 %v8072_v5  ;;  %360 = vmatprep.subr.bf16.mxu1 %v8074_v6  ;;  %v8080_v10 = vld [vmem:[%s12168_s1 + $0xac] ss:$16 sps:$4 sm:$0xff]   ;;  %v8082_v11 = vld [vmem:[%s12168_s1 + $0xa0] ss:$16 sps:$4 sm:$0xff]   ;;  %v8083_v12 = vld [vmem:[%s12168_s1 + $0xa8] ss:$16 sps:$4 sm:$0xff]  }
   0x5   :  { %v8084_v13 = vld [vmem:[%s12168_s1 + $0x84] ss:$16 sps:$4 sm:$0xff]   ;;  %v8086_v14 = vld [vmem:[%s12168_s1 + $0x8c] ss:$16 sps:$4 sm:$0xff]   ;;  %v8088_v15 = vld [vmem:[%s12168_s1 + $0x80] ss:$16 sps:$4 sm:$0xff]  }
   0x6   :  { %v8089_v16 = vld [vmem:[%s12168_s1 + $0x88] ss:$16 sps:$4 sm:$0xff]   ;;  %v8090_v17 = vld [vmem:[%s12168_s1 + $0x64] ss:$16 sps:$4 sm:$0xff]   ;;  %v8092_v18 = vld [vmem:[%s12168_s1 + $0x6c] ss:$16 sps:$4 sm:$0xff]  }
   0x7   :  { %288 = vmatpush1.bf16.msra.mxu0 %v8076_v7  ;;  %361 = vmatpush1.bf16.msra.mxu1 %v8077_v8  ;;  %v8094_v19 = vld [vmem:[%s12168_s1 + $0x60] ss:$16 sps:$4 sm:$0xff]   ;;  %v8095_v20 = vld [vmem:[%s12168_s1 + $0x68] ss:$16 sps:$4 sm:$0xff]   ;;  %v8096_v21 = vld [vmem:[%s12168_s1 + $0x44] ss:$16 sps:$4 sm:$0xff]  }
   0x8   :  { %289 = vmatprep.subr.bf16.mxu0 %v8078_v9  ;;  %362 = vmatprep.subr.bf16.mxu1 %v8080_v10  ;;  %v8098_v22 = vld [vmem:[%s12168_s1 + $0x4c] ss:$16 sps:$4 sm:$0xff]   ;;  %v8100_v23 = vld [vmem:[%s12168_s1 + $0x40] ss:$16 sps:$4 sm:$0xff]   ;;  %v8101_v24 = vld [vmem:[%s12168_s1 + $0x48] ss:$16 sps:$4 sm:$0xff]  }
   0x9   :  { %v8102_v25 = vld [vmem:[%s12168_s1 + $0x24] ss:$16 sps:$4 sm:$0xff]   ;;  %v8104_v26 = vld [vmem:[%s12168_s1 + $0x2c] ss:$16 sps:$4 sm:$0xff]   ;;  %v8106_v27 = vld [vmem:[%s12168_s1 + $0x20] ss:$16 sps:$4 sm:$0xff]  }
   0xa   :  { %v8107_v28 = vld [vmem:[%s12168_s1 + $0x28] ss:$16 sps:$4 sm:$0xff]   ;;  %v8108_v29 = vld [vmem:[%s12168_s1 + $0x4] ss:$16 sps:$4 sm:$0xff]   ;;  %v8110_v30 = vld [vmem:[%s12168_s1 + $0xc] ss:$16 sps:$4 sm:$0xff]  }
   0xb   :  { %290 = vmatpush1.bf16.msra.mxu0 %v8082_v11  ;;  %363 = vmatpush1.bf16.msra.mxu1 %v8083_v12  ;;  %v8112_v31 = vld [vmem:[%s12168_s1] ss:$16 sps:$4 sm:$0xff]   ;;  %v8113_v32 = vld [vmem:[%s12168_s1 + $0x8] ss:$16 sps:$4 sm:$0xff]   ;;  %v9173_v33 = vld [vmem:[%s12170_s2 + $0xe4] ss:$16 sps:$4 sm:$0xff]  }
   0xc   :  { %291 = vmatprep.subr.bf16.mxu0 %v8084_v13  ;;  %364 = vmatprep.subr.bf16.mxu1 %v8086_v14  ;;  %v9178_v34 = vld [vmem:[%s12170_s2 + $0xec] ss:$16 sps:$4 sm:$0xff]   ;;  %v8114_v35 = vld [vmem:[%s12169_s0] sm:$0xff]   ;;  %v8118_v37 = vld [vmem:[%s12170_s2 + $0xe8] ss:$16 sps:$4 sm:$0xff]  }
   0xd   :  { %v8115_v36 = vld [vmem:[%s12170_s2 + $0xe0] ss:$16 sps:$4 sm:$0xff]   ;;  %v8123_v38 = vld [vmem:[%s12170_s2 + $0xc4] ss:$16 sps:$4 sm:$0xff]   ;;  %v8126_v39 = vld [vmem:[%s12170_s2 + $0xcc] ss:$16 sps:$4 sm:$0xff]  }
   0xe   :  { %v8121_v40 = vld [vmem:[%s12170_s2 + $0xc0] ss:$16 sps:$4 sm:$0xff]   ;;  %v8124_v41 = vld [vmem:[%s12170_s2 + $0xc8] ss:$16 sps:$4 sm:$0xff]   ;;  %v8130_v42 = vld [vmem:[%s12170_s2 + $0xa4] ss:$16 sps:$4 sm:$0xff]  }
   0xf   :  { %292 = vmatpush1.bf16.msra.mxu0 %v8088_v15  ;;  %365 = vmatpush1.bf16.msra.mxu1 %v8089_v16  ;;  %v8133_v43 = vld [vmem:[%s12170_s2 + $0xac] ss:$16 sps:$4 sm:$0xff]   ;;  %v8128_v45 = vld [vmem:[%s12170_s2 + $0xa0] ss:$16 sps:$4 sm:$0xff]   ;;  %v8131_v46 = vld [vmem:[%s12170_s2 + $0xa8] ss:$16 sps:$4 sm:$0xff]  }
  0x10   :  { %293 = vmatprep.subr.bf16.mxu0 %v8090_v17  ;;  %366 = vmatprep.subr.bf16.mxu1 %v8092_v18  ;;  %v8127_v44 = vld [vmem:[%s12169_s0 + $0x8] sm:$0xff]   ;;  %v8136_v47 = vld [vmem:[%s12170_s2 + $0x84] ss:$16 sps:$4 sm:$0xff]   ;;  %v8134_v49 = vld [vmem:[%s12170_s2 + $0x80] ss:$16 sps:$4 sm:$0xff]  }
  0x11   :  { %v8139_v48 = vld [vmem:[%s12170_s2 + $0x8c] ss:$16 sps:$4 sm:$0xff]   ;;  %v8137_v50 = vld [vmem:[%s12170_s2 + $0x88] ss:$16 sps:$4 sm:$0xff]   ;;  %v8143_v51 = vld [vmem:[%s12170_s2 + $0x64] ss:$16 sps:$4 sm:$0xff]  }
  0x12   :  { %v8146_v52 = vld [vmem:[%s12170_s2 + $0x6c] ss:$16 sps:$4 sm:$0xff]   ;;  %v8140_v53 = vld [vmem:[%s12169_s0 + $0x10] sm:$0xff]   ;;  %v8144_v55 = vld [vmem:[%s12170_s2 + $0x68] ss:$16 sps:$4 sm:$0xff]  }
  0x13   :  { %294 = vmatpush1.bf16.msra.mxu0 %v8094_v19  ;;  %367 = vmatpush1.bf16.msra.mxu1 %v8095_v20  ;;  %v8141_v54 = vld [vmem:[%s12170_s2 + $0x60] ss:$16 sps:$4 sm:$0xff]   ;;  %v8149_v56 = vld [vmem:[%s12170_s2 + $0x44] ss:$16 sps:$4 sm:$0xff]   ;;  %v8152_v57 = vld [vmem:[%s12170_s2 + $0x4c] ss:$16 sps:$4 sm:$0xff]  }
  0x14   :  { %295 = vmatprep.subr.bf16.mxu0 %v8096_v21  ;;  %368 = vmatprep.subr.bf16.mxu1 %v8098_v22  ;;  %v8147_v58 = vld [vmem:[%s12170_s2 + $0x40] ss:$16 sps:$4 sm:$0xff]   ;;  %v8150_v59 = vld [vmem:[%s12170_s2 + $0x48] ss:$16 sps:$4 sm:$0xff]   ;;  %v8156_v60 = vld [vmem:[%s12170_s2 + $0x24] ss:$16 sps:$4 sm:$0xff]  }
  0x15   :  { %v8159_v61 = vld [vmem:[%s12170_s2 + $0x2c] ss:$16 sps:$4 sm:$0xff]   ;;  %v8154_v63 = vld [vmem:[%s12170_s2 + $0x20] ss:$16 sps:$4 sm:$0xff]   ;;  %v8157_v0 = vld [vmem:[%s12170_s2 + $0x28] ss:$16 sps:$4 sm:$0xff]  }
  0x16   :  { %v8153_v62 = vld [vmem:[%s12169_s0 + $0x18] sm:$0xff]   ;;  %v8162_v2 = vld [vmem:[%s12170_s2 + $0x4] ss:$16 sps:$4 sm:$0xff]   ;;  %v8160_v4 = vld [vmem:[%s12170_s2] ss:$16 sps:$4 sm:$0xff]  }
  0x17   :  { %296 = vmatpush1.bf16.msra.mxu0 %v8100_v23  ;;  %369 = vmatpush1.bf16.msra.mxu1 %v8101_v24  ;;  %v8165_v3 = vld [vmem:[%s12170_s2 + $0xc] ss:$16 sps:$4 sm:$0xff]   ;;  %v8163_v5 = vld [vmem:[%s12170_s2 + $0x8] ss:$16 sps:$4 sm:$0xff]   ;;  %v489_v6 = vld [vmem:[%s12171_s8] sm:$0xff] }
  0x18   :  { %297 = vmatprep.subr.bf16.mxu0 %v8102_v25  ;;  %370 = vmatprep.subr.bf16.mxu1 %v8104_v26  ;;  %v507_v7 = vpack.c.bf16 %v489_v6, %v489_v6  ;;  %v8168_v8 = vld [vmem:[%s12172_s4 + $0xe4] ss:$16 sps:$4 sm:$0xff]   ;;  %v8166_v9 = vld [vmem:[%s12172_s4 + $0xe0] ss:$16 sps:$4 sm:$0xff]   ;;  %v8169_v10 = vld [vmem:[%s12172_s4 + $0xe8] ss:$16 sps:$4 sm:$0xff]  }
  0x19   :  { %v8171_v11 = vld [vmem:[%s12172_s4 + $0xec] ss:$16 sps:$4 sm:$0xff]   ;;  %v8174_v12 = vld [vmem:[%s12172_s4 + $0xc4] ss:$16 sps:$4 sm:$0xff]   ;;  %v8172_v14 = vld [vmem:[%s12172_s4 + $0xc0] ss:$16 sps:$4 sm:$0xff]  }
  0x1a   :  { %v8177_v13 = vld [vmem:[%s12172_s4 + $0xcc] ss:$16 sps:$4 sm:$0xff]   ;;  %v8175_v15 = vld [vmem:[%s12172_s4 + $0xc8] ss:$16 sps:$4 sm:$0xff]   ;;  %v8180_v16 = vld [vmem:[%s12172_s4 + $0xa4] ss:$16 sps:$4 sm:$0xff]  }
  0x1b   :  { %298 = vmatpush1.bf16.msra.mxu0 %v8106_v27  ;;  %371 = vmatpush1.bf16.msra.mxu1 %v8107_v28  ;;  %v8183_v17 = vld [vmem:[%s12172_s4 + $0xac] ss:$16 sps:$4 sm:$0xff]   ;;  %v8178_v18 = vld [vmem:[%s12172_s4 + $0xa0] ss:$16 sps:$4 sm:$0xff]   ;;  %v8181_v19 = vld [vmem:[%s12172_s4 + $0xa8] ss:$16 sps:$4 sm:$0xff]  }
  0x1c   :  { %299 = vmatprep.subr.bf16.mxu0 %v8108_v29  ;;  %372 = vmatprep.subr.bf16.mxu1 %v8110_v30  ;;  %v9334_v20 = vld [vmem:[%s12172_s4 + $0x84] ss:$16 sps:$4 sm:$0xff]   ;;  %v9339_v21 = vld [vmem:[%s12172_s4 + $0x8c] ss:$16 sps:$4 sm:$0xff]   ;;  %v9344_v22 = vld [vmem:[%s12172_s4 + $0x80] ss:$16 sps:$4 sm:$0xff]  }
  0x1d   :  { %v9349_v23 = vld [vmem:[%s12172_s4 + $0x88] ss:$16 sps:$4 sm:$0xff]   ;;  %v9358_v24 = vld [vmem:[%s12172_s4 + $0x64] ss:$16 sps:$4 sm:$0xff]   ;;  %v9363_v25 = vld [vmem:[%s12172_s4 + $0x6c] ss:$16 sps:$4 sm:$0xff]  }
  0x1e   :  { %v9368_v26 = vld [vmem:[%s12172_s4 + $0x60] ss:$16 sps:$4 sm:$0xff]   ;;  %v9373_v27 = vld [vmem:[%s12172_s4 + $0x68] ss:$16 sps:$4 sm:$0xff]   ;;  %v9382_v28 = vld [vmem:[%s12172_s4 + $0x44] ss:$16 sps:$4 sm:$0xff]  }
  0x1f   :  { %300 = vmatpush1.bf16.msra.mxu0 %v8112_v31  ;;  %373 = vmatpush1.bf16.msra.mxu1 %v8113_v32  ;;  %v9387_v29 = vld [vmem:[%s12172_s4 + $0x4c] ss:$16 sps:$4 sm:$0xff]   ;;  %v9392_v30 = vld [vmem:[%s12172_s4 + $0x40] ss:$16 sps:$4 sm:$0xff]   ;;  %v9397_v31 = vld [vmem:[%s12172_s4 + $0x48] ss:$16 sps:$4 sm:$0xff]  }
  0x20   :  { %700 = vmatprep.subr.bf16.mxu0 %v9173_v33  ;;  %741 = vmatprep.subr.bf16.mxu1 %v9178_v34  ;;  %v9406_v32 = vld [vmem:[%s12172_s4 + $0x24] ss:$16 sps:$4 sm:$0xff]  }
  0x22   :  { %318 = vmatmul.mubr.bf16.vlgmr.msra.gmra.mxu0 %v8114_v35  ;;  %391 = vmatmul.mubr.bf16.vlgmr.msra.gmra.mxu1 %v8114_v35  ;;  %v9411_v35 = vld [vmem:[%s12172_s4 + $0x2c] ss:$16 sps:$4 sm:$0xff]  }
  0x23   :  { %701 = vmatpush1.bf16.msra.mxu0 %v8115_v36  ;;  %742 = vmatpush1.bf16.msra.mxu1 %v8118_v37  ;;  %v9416_v36 = vld [vmem:[%s12172_s4 + $0x20] ss:$16 sps:$4 sm:$0xff]   ;;  %v9421_v37 = vld [vmem:[%s12172_s4 + $0x28] ss:$16 sps:$4 sm:$0xff]  }
  0x24   :  { %702 = vmatprep.subr.bf16.mxu0 %v8123_v38  ;;  %743 = vmatprep.subr.bf16.mxu1 %v8126_v39  ;;  %v9430_v38 = vld [vmem:[%s12172_s4 + $0x4] ss:$16 sps:$4 sm:$0xff]   ;;  %v9435_v39 = vld [vmem:[%s12172_s4 + $0xc] ss:$16 sps:$4 sm:$0xff]  }
  0x25   :  { %327 = vmatprep.mubr.bf16.mxu0 %v12181_v1  ;;  %400 = vmatprep.mubr.bf16.mxu1 %v12181_v1 }
  0x27   :  { %703 = vmatpush1.bf16.msra.mxu0 %v8121_v40  ;;  %744 = vmatpush1.bf16.msra.mxu1 %v8124_v41  ;;  %v9440_v40 = vld [vmem:[%s12172_s4] ss:$16 sps:$4 sm:$0xff]   ;;  %v9445_v41 = vld [vmem:[%s12172_s4 + $0x8] ss:$16 sps:$4 sm:$0xff]  }
  0x28   :  { %704 = vmatprep.subr.bf16.mxu0 %v8130_v42  ;;  %745 = vmatprep.subr.bf16.mxu1 %v8133_v43  ;;  %v9454_v42 = vld [vmem:[%s12172_s4 + $0x1e4] ss:$16 sps:$4 sm:$0xff]   ;;  %v9459_v43 = vld [vmem:[%s12172_s4 + $0x1ec] ss:$16 sps:$4 sm:$0xff]  }
  0x2a   :  { %328 = vmatmul.mubr.bf16.gmra.mxu0 %v8127_v44  ;;  %401 = vmatmul.mubr.bf16.gmra.mxu1 %v8127_v44  ;;  %v9464_v44 = vld [vmem:[%s12172_s4 + $0x1e0] ss:$16 sps:$4 sm:$0xff]  }
  0x2b   :  { %705 = vmatpush1.bf16.msra.mxu0 %v8128_v45  ;;  %746 = vmatpush1.bf16.msra.mxu1 %v8131_v46  ;;  %v9469_v45 = vld [vmem:[%s12172_s4 + $0x1e8] ss:$16 sps:$4 sm:$0xff]   ;;  %v9478_v46 = vld [vmem:[%s12172_s4 + $0x1c4] ss:$16 sps:$4 sm:$0xff]  }
  0x2c   :  { %706 = vmatprep.subr.bf16.mxu0 %v8136_v47  ;;  %747 = vmatprep.subr.bf16.mxu1 %v8139_v48  ;;  %v9483_v47 = vld [vmem:[%s12172_s4 + $0x1cc] ss:$16 sps:$4 sm:$0xff]   ;;  %v9488_v48 = vld [vmem:[%s12172_s4 + $0x1c0] ss:$16 sps:$4 sm:$0xff]  }
  0x2d   :  { %337 = vmatprep.mubr.bf16.mxu0 %v12181_v1  ;;  %410 = vmatprep.mubr.bf16.mxu1 %v12181_v1 }
  0x2f   :  { %707 = vmatpush1.bf16.msra.mxu0 %v8134_v49  ;;  %748 = vmatpush1.bf16.msra.mxu1 %v8137_v50  ;;  %v9493_v49 = vld [vmem:[%s12172_s4 + $0x1c8] ss:$16 sps:$4 sm:$0xff]   ;;  %v9502_v50 = vld [vmem:[%s12172_s4 + $0x1a4] ss:$16 sps:$4 sm:$0xff]  }
  0x30   :  { %708 = vmatprep.subr.bf16.mxu0 %v8143_v51  ;;  %749 = vmatprep.subr.bf16.mxu1 %v8146_v52  ;;  %v9507_v51 = vld [vmem:[%s12172_s4 + $0x1ac] ss:$16 sps:$4 sm:$0xff]   ;;  %v9512_v52 = vld [vmem:[%s12172_s4 + $0x1a0] ss:$16 sps:$4 sm:$0xff]  }
  0x32   :  { %338 = vmatmul.mubr.bf16.gmra.mxu0 %v8140_v53  ;;  %411 = vmatmul.mubr.bf16.gmra.mxu1 %v8140_v53  ;;  %v9517_v53 = vld [vmem:[%s12172_s4 + $0x1a8] ss:$16 sps:$4 sm:$0xff]  }
  0x33   :  { %709 = vmatpush1.bf16.msra.mxu0 %v8141_v54  ;;  %750 = vmatpush1.bf16.msra.mxu1 %v8144_v55  ;;  %v9526_v54 = vld [vmem:[%s12172_s4 + $0x184] ss:$16 sps:$4 sm:$0xff]   ;;  %v9531_v55 = vld [vmem:[%s12172_s4 + $0x18c] ss:$16 sps:$4 sm:$0xff]  }
  0x34   :  { %710 = vmatprep.subr.bf16.mxu0 %v8149_v56  ;;  %751 = vmatprep.subr.bf16.mxu1 %v8152_v57  ;;  %v9536_v56 = vld [vmem:[%s12172_s4 + $0x180] ss:$16 sps:$4 sm:$0xff]   ;;  %v9541_v57 = vld [vmem:[%s12172_s4 + $0x188] ss:$16 sps:$4 sm:$0xff]  }
  0x35   :  { %347 = vmatprep.mubr.bf16.mxu0 %v12181_v1  ;;  %420 = vmatprep.mubr.bf16.mxu1 %v12181_v1 }
  0x37   :  { %711 = vmatpush1.bf16.msra.mxu0 %v8147_v58  ;;  %752 = vmatpush1.bf16.msra.mxu1 %v8150_v59  ;;  %v9548_v58 = vld [vmem:[%s12172_s4 + $0x164] ss:$16 sps:$4 sm:$0xff]   ;;  %v9554_v59 = vld [vmem:[%s12172_s4 + $0x160] ss:$16 sps:$4 sm:$0xff]  }
  0x38   :  { %712 = vmatprep.subr.bf16.mxu0 %v8156_v60  ;;  %753 = vmatprep.subr.bf16.mxu1 %v8159_v61  ;;  %v9559_v60 = vld [vmem:[%s12172_s4 + $0x16c] ss:$16 sps:$4 sm:$0xff]   ;;  %v9566_v61 = vld [vmem:[%s12172_s4 + $0x168] ss:$16 sps:$4 sm:$0xff]  }
  0x39   :  { %12380 = vst [vmem:[#allocation7_spill] sm:$0xff] %v9566_v61 }
  0x3a   :  { %348 = vmatmul.mubr.bf16.gmra.mxu0 %v8153_v62  ;;  %421 = vmatmul.mubr.bf16.gmra.mxu1 %v8153_v62  ;;  %v9571_v62 = vld [vmem:[%s12172_s4 + $0x144] ss:$16 sps:$4 sm:$0xff]  }
  0x3b   :  { %713 = vmatpush1.bf16.msra.mxu0 %v8154_v63  ;;  %754 = vmatpush1.bf16.msra.mxu1 %v8157_v0  ;;  %12381 = vst [vmem:[#allocation8_spill] sm:$0xff] %v9571_v62  ;;  %v9577_v63 = vld [vmem:[%s12172_s4 + $0x14c] ss:$16 sps:$4 sm:$0xff]   ;;  %v9582_v0 = vld [vmem:[%s12172_s4 + $0x140] ss:$16 sps:$4 sm:$0xff]  }
  0x3c   :  { %714 = vmatprep.subr.bf16.mxu0 %v8162_v2  ;;  %755 = vmatprep.subr.bf16.mxu1 %v8165_v3  ;;  %12382 = vst [vmem:[#allocation9_spill] sm:$0xff] %v9577_v63  ;;  %12383 = vst [vmem:[#allocation10_spill] sm:$0xff] %v9582_v0  ;;  %v9587_v2 = vld [vmem:[%s12172_s4 + $0x148] ss:$16 sps:$4 sm:$0xff]   ;;  %v9592_v3 = vld [vmem:[%s12172_s4 + $0x124] ss:$16 sps:$4 sm:$0xff]  }
  0x3d   :  { %732 = vmatprep.mubr.bf16.mxu0 %v12181_v1  ;;  %773 = vmatprep.mubr.bf16.mxu1 %v12181_v1  ;;  %12384 = vst [vmem:[#allocation11_spill] sm:$0xff] %v9587_v2  ;;  %12385 = vst [vmem:[#allocation12_spill] sm:$0xff] %v9592_v3 }
  0x3f   :  { %715 = vmatpush1.bf16.msra.mxu0 %v8160_v4  ;;  %756 = vmatpush1.bf16.msra.mxu1 %v8163_v5  ;;  %v9598_v4 = vld [vmem:[%s12172_s4 + $0x12c] ss:$16 sps:$4 sm:$0xff]  }
  0x40   :  { %1205 = vmatprep.subr.bf16.mxu0 %v8168_v8  ;;  %1246 = vmatprep.subr.bf16.mxu1 %v8171_v11  ;;  %12386 = vst [vmem:[#allocation13_spill] sm:$0xff] %v9598_v4  ;;  %v7204_v5 = vld [vmem:[%s12171_s8 + $0x8] sm:$0xff]  ;;  %v9633_v11 = vld [vmem:[%s12172_s4 + $0x100] ss:$16 sps:$4 sm:$0xff]  }
  0x41   :  { %v816_v6 = vpack.c.bf16 %v7204_v5, %v7204_v5  ;;  %v9614_v8 = vld [vmem:[%s12172_s4 + $0x128] ss:$16 sps:$4 sm:$0xff]   ;;  %12391 = vst [vmem:[#allocation18_spill] sm:$0xff] %v9633_v11 }
  0x42   :  { %733 = vmatmul.mubr.bf16.vlgmr.msra.gmra.mxu0 %v507_v7  ;;  %774 = vmatmul.mubr.bf16.vlgmr.msra.gmra.mxu1 %v507_v7  ;;  %v9609_v7 = vld [vmem:[%s12172_s4 + $0x120] ss:$16 sps:$4 sm:$0xff]   ;;  %12388 = vst [vmem:[#allocation15_spill] sm:$0xff] %v9614_v8 }
  0x43   :  { %1206 = vmatpush1.bf16.msra.mxu0 %v8166_v9  ;;  %1247 = vmatpush1.bf16.msra.mxu1 %v8169_v10  ;;  %12387 = vst [vmem:[#allocation14_spill] sm:$0xff] %v9609_v7  ;;  %v9619_v9 = vld [vmem:[%s12172_s4 + $0x104] ss:$16 sps:$4 sm:$0xff]   ;;  %v9625_v10 = vld [vmem:[%s12172_s4 + $0x10c] ss:$16 sps:$4 sm:$0xff]  }
  0x44   :  { %1207 = vmatprep.subr.bf16.mxu0 %v8174_v12  ;;  %1248 = vmatprep.subr.bf16.mxu1 %v8177_v13  ;;  %12389 = vst [vmem:[#allocation16_spill] sm:$0xff] %v9619_v9  ;;  %12390 = vst [vmem:[#allocation17_spill] sm:$0xff] %v9625_v10  ;;  %v9638_v12 = vld [vmem:[%s12172_s4 + $0x108] ss:$16 sps:$4 sm:$0xff]   ;;  %v81_v13 = vlaneseq }
  0x45   :  { %1237 = vmatprep.mubr.bf16.mxu0 %v816_v6  ;;  %1278 = vmatprep.mubr.bf16.mxu1 %v816_v6  ;;  %12392 = vst [vmem:[#allocation19_spill] sm:$0xff] %v9638_v12 }
  0x47   :  { %1208 = vmatpush1.bf16.msra.mxu0 %v8172_v14  ;;  %1249 = vmatpush1.bf16.msra.mxu1 %v8175_v15  ;;  %v9648_v14 = vshrl.u32 %v81_v13, 7 }
  0x48   :  { %1209 = vmatprep.subr.bf16.mxu0 %v8180_v16  ;;  %1250 = vmatprep.subr.bf16.mxu1 %v8183_v17  ;;  %v79_v16 = vld [vmem:[%s12173_s3] sm:$0xf] }
  0x49   :  { %12393 = vst [vmem:[#allocation20_spill] sm:$0xff] %v9648_v14  ;;  %v12187_v15 = vsub.s32 2, %v9648_v14  ;;  %v12192_v17 = vsub.s32 0, %v9648_v14 }
  0x4b   :  { %1210 = vmatpush1.bf16.msra.mxu0 %v8178_v18  ;;  %1251 = vmatpush1.bf16.msra.mxu1 %v8181_v19  ;;  %v12194_v18 = vsub.s32 3, %v9648_v14  ;;  %v84_v1 = vrot.slane %v79_v16, %v12192_v17 }
  0x4c   :  { %1211 = vmatprep.subr.bf16.mxu0 %v9334_v20  ;;  %1252 = vmatprep.subr.bf16.mxu1 %v9339_v21 }
  0x4f   :  { %1212 = vmatpush1.bf16.msra.mxu0 %v9344_v22  ;;  %1253 = vmatpush1.bf16.msra.mxu1 %v9349_v23 }
  0x50   :  { %1213 = vmatprep.subr.bf16.mxu0 %v9358_v24  ;;  %1254 = vmatprep.subr.bf16.mxu1 %v9363_v25 }
  0x53   :  { %1214 = vmatpush1.bf16.msra.mxu0 %v9368_v26  ;;  %1255 = vmatpush1.bf16.msra.mxu1 %v9373_v27 }
  0x54   :  { %1215 = vmatprep.subr.bf16.mxu0 %v9382_v28  ;;  %1256 = vmatprep.subr.bf16.mxu1 %v9387_v29 }
  0x57   :  { %1216 = vmatpush1.bf16.msra.mxu0 %v9392_v30  ;;  %1257 = vmatpush1.bf16.msra.mxu1 %v9397_v31 }
  0x58   :  { %1217 = vmatprep.subr.bf16.mxu0 %v9406_v32  ;;  %1258 = vmatprep.subr.bf16.mxu1 %v9411_v35 }
  0x5b   :  { %1218 = vmatpush1.bf16.msra.mxu0 %v9416_v36  ;;  %1259 = vmatpush1.bf16.msra.mxu1 %v9421_v37 }
  0x5c   :  { %1219 = vmatprep.subr.bf16.mxu0 %v9430_v38  ;;  %1260 = vmatprep.subr.bf16.mxu1 %v9435_v39 }
  0x5f   :  { %1220 = vmatpush1.bf16.msra.mxu0 %v9440_v40  ;;  %1261 = vmatpush1.bf16.msra.mxu1 %v9445_v41 }
  0x60   :  { %1221 = vmatprep.subr.bf16.mxu0 %v9454_v42  ;;  %1262 = vmatprep.subr.bf16.mxu1 %v9459_v43 }
  0x63   :  { %1222 = vmatpush2.bf16.msra.mxu0 %v9464_v44  ;;  %1263 = vmatpush2.bf16.msra.mxu1 %v9469_v45 }
  0x64   :  { %1223 = vmatprep.subr.bf16.mxu0 %v9478_v46  ;;  %1264 = vmatprep.subr.bf16.mxu1 %v9483_v47 }
  0x67   :  { %1224 = vmatpush2.bf16.msra.mxu0 %v9488_v48  ;;  %1265 = vmatpush2.bf16.msra.mxu1 %v9493_v49 }
  0x68   :  { %1225 = vmatprep.subr.bf16.mxu0 %v9502_v50  ;;  %1266 = vmatprep.subr.bf16.mxu1 %v9507_v51 }
  0x6b   :  { %1226 = vmatpush2.bf16.msra.mxu0 %v9512_v52  ;;  %1267 = vmatpush2.bf16.msra.mxu1 %v9517_v53 }
  0x6c   :  { %1227 = vmatprep.subr.bf16.mxu0 %v9526_v54  ;;  %1268 = vmatprep.subr.bf16.mxu1 %v9531_v55 }
  0x6f   :  { %1228 = vmatpush2.bf16.msra.mxu0 %v9536_v56  ;;  %1269 = vmatpush2.bf16.msra.mxu1 %v9541_v57 }
  0x70   :  { %1229 = vmatprep.subr.bf16.mxu0 %v9548_v58  ;;  %1270 = vmatprep.subr.bf16.mxu1 %v9559_v60 }
  0x73   :  { %1230 = vmatpush2.bf16.msra.mxu0 %v9554_v59  ;;  %1271 = vmatpush2.bf16.msra.mxu1 %v9566_v61 }
  0x74   :  { %1231 = vmatprep.subr.bf16.mxu0 %v9571_v62  ;;  %1272 = vmatprep.subr.bf16.mxu1 %v9577_v63 }
  0x77   :  { %1232 = vmatpush2.bf16.msra.mxu0 %v9582_v0  ;;  %1273 = vmatpush2.bf16.msra.mxu1 %v9587_v2 }
  0x78   :  { %1233 = vmatprep.subr.bf16.mxu0 %v9592_v3  ;;  %1274 = vmatprep.subr.bf16.mxu1 %v9598_v4 }
  0x7b   :  { %1234 = vmatpush2.bf16.msra.mxu0 %v9609_v7  ;;  %1275 = vmatpush2.bf16.msra.mxu1 %v9614_v8 }
  0x7c   :  { %1235 = vmatprep.subr.bf16.mxu0 %v9619_v9  ;;  %1276 = vmatprep.subr.bf16.mxu1 %v9625_v10 }
  0x7f   :  { %1236 = vmatpush2.bf16.msra.mxu0 %v9633_v11  ;;  %1277 = vmatpush2.bf16.msra.mxu1 %v9638_v12  ;;  %v9673_v12 = vrot.slane %v79_v16, %v12194_v18 }
  0x80   :  { %1515 = vmatprep.subr.bf16.mxu0 %v9173_v33  ;;  %1556 = vmatprep.subr.bf16.mxu1 %v9178_v34  ;;  %v9662_v33 = vrot.slane %v79_v16, %v12187_v15  ;;  %v12197_v34 = vsub.s32 1, %v9648_v14 }
  0x82   :  { %v88_v9 = vrot.slane %v79_v16, %v12197_v34 }
  0xe2   :  { %v9656_v19 = vpop.f32.mrf.mxu0  ;;  %v9658_v5 = vpop.f32.mrf.mxu1 }
  0xe4   :  { %v9665_v6 = vpop.f32.mrf.mxu0  ;;  %v9667_v13 = vpop.f32.mrf.mxu1 }
  0xe6   :  { %v323_v11 = vpop.f32.mrf.mxu0  ;;  %v396_v10 = vpop.f32.mrf.mxu1 }
  0xe7   :  { %v9677_v15 = vadd.f32 %v323_v11, %v84_v1  ;;  %v9680_v8 = vadd.f32 %v396_v10, %v9662_v33 }
  0xe8   :  { %v325_v7 = vpop.f32.mrf.mxu0  ;;  %v398_v4 = vpop.f32.mrf.mxu1 }
  0xe9   :  { %12394 = vst [vmem:[#allocation21_spill] sm:$0xff] %v9677_v15  ;;  %12395 = vst [vmem:[#allocation22_spill] sm:$0xff] %v9680_v8  ;;  %v9682_v3 = vadd.f32 %v325_v7, %v88_v9  ;;  %v9685_v17 = vadd.f32 %v398_v4, %v9673_v12 }
  0xea   :  { %v329_v2 = vpop.f32.mrf.mxu0  ;;  %v402_v18 = vpop.f32.mrf.mxu1 }
  0xeb   :  { %12396 = vst [vmem:[#allocation23_spill] sm:$0xff] %v9682_v3  ;;  %12397 = vst [vmem:[#allocation24_spill] sm:$0xff] %v9685_v17  ;;  %v9687_v0 = vadd.f32 %v329_v2, %v84_v1  ;;  %v9690_v63 = vadd.f32 %v402_v18, %v9662_v33 }
  0xec   :  { %v331_v16 = vpop.f32.mrf.mxu0  ;;  %v404_v11 = vpop.f32.mrf.mxu1 }
  0xed   :  { %12398 = vst [vmem:[#allocation25_spill] sm:$0xff] %v9687_v0  ;;  %12399 = vst [vmem:[#allocation26_spill] sm:$0xff] %v9690_v63  ;;  %v9692_v34 = vadd.f32 %v331_v16, %v88_v9  ;;  %v9695_v10 = vadd.f32 %v404_v11, %v9673_v12 }
  0xee   :  { %v333_v8 = vpop.f32.mrf.mxu0  ;;  %v406_v7 = vpop.f32.mrf.mxu1 }
  0xef   :  { %12400 = vst [vmem:[#allocation27_spill] sm:$0xff] %v9692_v34  ;;  %12401 = vst [vmem:[#allocation28_spill] sm:$0xff] %v9695_v10  ;;  %v9697_v3 = vadd.f32 %v333_v8, %v84_v1  ;;  %v9700_v4 = vadd.f32 %v406_v7, %v9662_v33 }
  0xf0   :  { %v335_v17 = vpop.f32.mrf.mxu0  ;;  %v408_v2 = vpop.f32.mrf.mxu1 }
  0xf1   :  { %12402 = vst [vmem:[#allocation29_spill] sm:$0xff] %v9697_v3  ;;  %12403 = vst [vmem:[#allocation30_spill] sm:$0xff] %v9700_v4  ;;  %v9702_v0 = vadd.f32 %v335_v17, %v88_v9  ;;  %v9705_v18 = vadd.f32 %v408_v2, %v9673_v12 }
  0xf2   :  { %v339_v63 = vpop.f32.mrf.mxu0  ;;  %v412_v16 = vpop.f32.mrf.mxu1 }
  0xf3   :  { %12404 = vst [vmem:[#allocation31_spill] sm:$0xff] %v9702_v0  ;;  %12405 = vst [vmem:[#allocation32_spill] sm:$0xff] %v9705_v18  ;;  %v9707_v34 = vadd.f32 %v339_v63, %v84_v1  ;;  %v9710_v11 = vadd.f32 %v412_v16, %v9662_v33 }
  0xf4   :  { %v341_v10 = vpop.f32.mrf.mxu0  ;;  %v414_v8 = vpop.f32.mrf.mxu1 }
  0xf5   :  { %12406 = vst [vmem:[#allocation33_spill] sm:$0xff] %v9707_v34  ;;  %12407 = vst [vmem:[#allocation34_spill] sm:$0xff] %v9710_v11  ;;  %v9712_v3 = vadd.f32 %v341_v10, %v88_v9  ;;  %v9715_v7 = vadd.f32 %v414_v8, %v9673_v12 }
  0xf6   :  { %v343_v4 = vpop.f32.mrf.mxu0  ;;  %v416_v17 = vpop.f32.mrf.mxu1 }
  0xf7   :  { %12408 = vst [vmem:[#allocation35_spill] sm:$0xff] %v9712_v3  ;;  %12409 = vst [vmem:[#allocation36_spill] sm:$0xff] %v9715_v7  ;;  %v9717_v0 = vadd.f32 %v343_v4, %v84_v1  ;;  %v9720_v2 = vadd.f32 %v416_v17, %v9662_v33 }
  0xf8   :  { %v345_v18 = vpop.f32.mrf.mxu0  ;;  %v418_v63 = vpop.f32.mrf.mxu1 }
  0xf9   :  { %12410 = vst [vmem:[#allocation37_spill] sm:$0xff] %v9717_v0  ;;  %12411 = vst [vmem:[#allocation38_spill] sm:$0xff] %v9720_v2  ;;  %v9722_v34 = vadd.f32 %v345_v18, %v88_v9  ;;  %v9725_v16 = vadd.f32 %v418_v63, %v9673_v12 }
  0xfa   :  { %v349_v11 = vpop.f32.mrf.mxu0  ;;  %v422_v10 = vpop.f32.mrf.mxu1 }
  0xfb   :  { %12412 = vst [vmem:[#allocation39_spill] sm:$0xff] %v9722_v34  ;;  %12413 = vst [vmem:[#allocation40_spill] sm:$0xff] %v9725_v16  ;;  %v9727_v3 = vadd.f32 %v349_v11, %v84_v1  ;;  %v9730_v8 = vadd.f32 %v422_v10, %v9662_v33 }
  0xfc   :  { %v351_v7 = vpop.f32.mrf.mxu0  ;;  %v424_v4 = vpop.f32.mrf.mxu1 }
  0xfd   :  { %12414 = vst [vmem:[#allocation41_spill] sm:$0xff] %v9727_v3  ;;  %12415 = vst [vmem:[#allocation42_spill] sm:$0xff] %v9730_v8  ;;  %v9732_v0 = vadd.f32 %v351_v7, %v88_v9  ;;  %v9735_v17 = vadd.f32 %v424_v4, %v9673_v12  ;;  %v320_v3 = vadd.f32 %v9656_v19, %v84_v1 }
  0xfe   :  { %v353_v2 = vpop.f32.mrf.mxu0  ;;  %v426_v18 = vpop.f32.mrf.mxu1  ;;  %v322_v4 = vadd.f32 %v9665_v6, %v88_v9  ;;  %v395_v19 = vadd.f32 %v9667_v13, %v9673_v12 }
  0xff   :  { %12416 = vst [vmem:[#allocation43_spill] sm:$0xff] %v9732_v0  ;;  %12417 = vst [vmem:[#allocation44_spill] sm:$0xff] %v9735_v17  ;;  %v9737_v34 = vadd.f32 %v353_v2, %v84_v1  ;;  %v9740_v63 = vadd.f32 %v426_v18, %v9662_v33 }
 0x100   :  { %v355_v16 = vpop.f32.mrf.mxu0  ;;  %v428_v11 = vpop.f32.mrf.mxu1 }
 0x101   :  { %12418 = vst [vmem:[#allocation45_spill] sm:$0xff] %v9737_v34  ;;  %12419 = vst [vmem:[#allocation46_spill] sm:$0xff] %v9740_v63  ;;  %v9743_v10 = vadd.f32 %v355_v16, %v88_v9  ;;  %v9746_v8 = vadd.f32 %v428_v11, %v9673_v12  ;;  %v393_v11 = vadd.f32 %v9658_v5, %v9662_v33 }
 0x102   :  { %v734_v7 = vpop.f32.mrf.mxu0  ;;  %v775_v0 = vpop.f32.mrf.mxu1 }
 0x103   :  { %12420 = vst [vmem:[#allocation47_spill] sm:$0xff] %v9743_v10  ;;  %12421 = vst [vmem:[#allocation48_spill] sm:$0xff] %v9746_v8  ;;  %v782_v17 = vadd.f32 %v734_v7, %v320_v3  ;;  %v784_v6 = vadd.f32 %v775_v0, %v393_v11  ;;  %v8965_v11 = vld [vmem:[%s12170_s2 + $0xcc] ss:$16 sps:$4 sm:$0xff]   ;;  %v10320_v8 = vld [vmem:[%s12172_s4 + $0x48] ss:$16 sps:$4 sm:$0xff]  }
 0x104   :  { %v736_v15 = vpop.f32.mrf.mxu0  ;;  %v777_v2 = vpop.f32.mrf.mxu1  ;;  %v10329_v10 = vld [vmem:[%s12172_s4 + $0x24] ss:$16 sps:$4 sm:$0xff]  }
 0x105   :  { %v7238_v34 = vmul.f32 -1.442695, %v782_v17  ;;  %v783_v14 = vadd.f32 %v736_v15, %v322_v4  ;;  %v785_v16 = vadd.f32 %v777_v2, %v395_v19  ;;  %v8963_v19 = vld [vmem:[%s12170_s2 + $0xe8] ss:$16 sps:$4 sm:$0xff]   ;;  %12463 = vst [vmem:[#allocation49_spill] sm:$0xff] %v10329_v10 }
 0x106   :  { %v738_v18 = vpop.f32.mrf.mxu0  ;;  %v779_v63 = vpop.f32.mrf.mxu1 }
 0x107   :  { %8702 = vpow2.f32 %v7238_v34  ;;  %v7239_v62 = vmul.f32 -1.442695, %v783_v14  ;;  %v7240_v9 = vmul.f32 -1.442695, %v785_v16  ;;  %v8964_v16 = vld [vmem:[%s12170_s2 + $0xc4] ss:$16 sps:$4 sm:$0xff]  }
 0x108   :  { %v739_v61 = vpop.f32.mrf.mxu0  ;;  %v780_v1 = vpop.f32.mrf.mxu1 }
 0x109   :  { %8704 = vpow2.f32 %v7239_v62  ;;  %v494_v62 = vld [vmem:[%s12174_s9] sm:$0xff] }
 0x10a   :  { %8706 = vpow2.f32 %v7240_v9  ;;  %v8962_v1 = vld [vmem:[%s12170_s2 + $0xe0] ss:$16 sps:$4 sm:$0xff]   ;;  %v12422_v9 = vmov 0  }
 0x114   :  { %v8703_v3 = vpop.eup %8702 }
 0x115   :  { %v790_v7 = vadd.f32 1.0, %v8703_v3  ;;  %v8966_v3 = vld [vmem:[%s12170_s2 + $0xc0] ss:$16 sps:$4 sm:$0xff]  }
 0x116   :  { %v8705_v17 = vpop.eup %8704 }
 0x117   :  { %8708 = vrcp.f32 %v790_v7  ;;  %v796_v15 = vadd.f32 1.0, %v8705_v17  ;;  %v8707_v61 = vpop.eup %8706  ;;  %v8968_v7 = vld [vmem:[%s12170_s2 + $0xa4] ss:$16 sps:$4 sm:$0xff]   ;;  %v8969_v17 = vld [vmem:[%s12170_s2 + $0xac] ss:$16 sps:$4 sm:$0xff]  }
 0x118   :  { %8710 = vtanh.f32 %v784_v6  ;;  %v803_v13 = vadd.f32 1.0, %v8707_v61  ;;  %v8967_v6 = vld [vmem:[%s12170_s2 + $0xc8] ss:$16 sps:$4 sm:$0xff]  }
 0x119   :  { %8712 = vrcp.f32 %v796_v15  ;;  %v8970_v15 = vld [vmem:[%s12170_s2 + $0xa0] ss:$16 sps:$4 sm:$0xff]   ;;  %v8971_v61 = vld [vmem:[%s12170_s2 + $0xa8] ss:$16 sps:$4 sm:$0xff]  }
 0x11a   :  { %8714 = vrcp.f32 %v803_v13  ;;  %v8976_v13 = vld [vmem:[%s12170_s2 + $0x64] ss:$16 sps:$4 sm:$0xff]  }
 0x124   :  { %v8709_v14 = vpop.eup %8708 }
 0x125   :  { %v8711_v12 = vpop.eup %8710 }
 0x126   :  { %v8713_v34 = vpop.eup %8712  ;;  %v807_v5 = vmul.f32 %v8711_v12, %v8709_v14  ;;  %v8972_v14 = vld [vmem:[%s12170_s2 + $0x84] ss:$16 sps:$4 sm:$0xff]   ;;  %v8974_v12 = vld [vmem:[%s12170_s2 + $0x80] ss:$16 sps:$4 sm:$0xff]  }
 0x127   :  { %v806_v33 = vmul.f32 %v8713_v34, %v494_v62  ;;  %v8715_v0 = vpop.eup %8714  ;;  %v8973_v62 = vld [vmem:[%s12170_s2 + $0x8c] ss:$16 sps:$4 sm:$0xff]   ;;  %v8975_v34 = vld [vmem:[%s12170_s2 + $0x88] ss:$16 sps:$4 sm:$0xff]  }
 0x129   :  { %v9756_v63 = vadd.f32 %v807_v5, %v806_v33  ;;  %v8977_v5 = vld [vmem:[%s12170_s2 + $0x6c] ss:$16 sps:$4 sm:$0xff]   ;;  %v8978_v33 = vld [vmem:[%s12170_s2 + $0x60] ss:$16 sps:$4 sm:$0xff]  }
 0x12b   :  { %8716 = vtanh.f32 %v9756_v63 }
 0x138   :  { %v8717_v4 = vpop.eup %8716 }
 0x139   :  { %v810_v2 = vmul.f32 %v8717_v4, %v8715_v0  ;;  %v8979_v0 = vld [vmem:[%s12170_s2 + $0x68] ss:$16 sps:$4 sm:$0xff]   ;;  %v8980_v4 = vld [vmem:[%s12170_s2 + $0x44] ss:$16 sps:$4 sm:$0xff]  }
 0x13b   :  { %v9759_v18 = vpack.c.bf16 %v810_v2, %v810_v2  ;;  %v8981_v2 = vld [vmem:[%s12170_s2 + $0x4c] ss:$16 sps:$4 sm:$0xff]  }
 0x13d   :  { %1238 = vmatmul.mubr.bf16.vlgmr.msra.gmra.mxu0 %v9759_v18  ;;  %1279 = vmatmul.mubr.bf16.vlgmr.msra.gmra.mxu1 %v9759_v18 }
 0x13e   :  { %1516 = vmatpush1.bf16.msra.mxu0 %v8962_v1  ;;  %1557 = vmatpush1.bf16.msra.mxu1 %v8963_v19  ;;  %v8982_v1 = vld [vmem:[%s12170_s2 + $0x40] ss:$16 sps:$4 sm:$0xff]   ;;  %v8983_v19 = vld [vmem:[%s12170_s2 + $0x48] ss:$16 sps:$4 sm:$0xff]  }
 0x13f   :  { %1517 = vmatprep.subr.bf16.mxu0 %v8964_v16  ;;  %1558 = vmatprep.subr.bf16.mxu1 %v8965_v11  ;;  %v8984_v16 = vld [vmem:[%s12170_s2 + $0x24] ss:$16 sps:$4 sm:$0xff]   ;;  %v8985_v11 = vld [vmem:[%s12170_s2 + $0x2c] ss:$16 sps:$4 sm:$0xff]  }
 0x140   :  { %1547 = vmatprep.mubr.bf16.mxu0 %v12422_v9  ;;  %1588 = vmatprep.mubr.bf16.mxu1 %v12422_v9 }
 0x142   :  { %1518 = vmatpush1.bf16.msra.mxu0 %v8966_v3  ;;  %1559 = vmatpush1.bf16.msra.mxu1 %v8967_v6  ;;  %v8986_v3 = vld [vmem:[%s12170_s2 + $0x20] ss:$16 sps:$4 sm:$0xff]   ;;  %v8987_v6 = vld [vmem:[%s12170_s2 + $0x28] ss:$16 sps:$4 sm:$0xff]  }
 0x143   :  { %1519 = vmatprep.subr.bf16.mxu0 %v8968_v7  ;;  %1560 = vmatprep.subr.bf16.mxu1 %v8969_v17  ;;  %v8988_v7 = vld [vmem:[%s12170_s2 + $0x4] ss:$16 sps:$4 sm:$0xff]   ;;  %v8989_v17 = vld [vmem:[%s12170_s2 + $0xc] ss:$16 sps:$4 sm:$0xff]  }
 0x146   :  { %1520 = vmatpush1.bf16.msra.mxu0 %v8970_v15  ;;  %1561 = vmatpush1.bf16.msra.mxu1 %v8971_v61  ;;  %v8990_v15 = vld [vmem:[%s12170_s2] ss:$16 sps:$4 sm:$0xff]   ;;  %v8991_v61 = vld [vmem:[%s12170_s2 + $0x8] ss:$16 sps:$4 sm:$0xff]  }
 0x147   :  { %1521 = vmatprep.subr.bf16.mxu0 %v8972_v14  ;;  %1562 = vmatprep.subr.bf16.mxu1 %v8973_v62  ;;  %v8992_v14 = vld [vmem:[%s12172_s4 + $0xe4] ss:$16 sps:$4 sm:$0xff]   ;;  %v8993_v62 = vld [vmem:[%s12172_s4 + $0xec] ss:$16 sps:$4 sm:$0xff]  }
 0x14a   :  { %1522 = vmatpush1.bf16.msra.mxu0 %v8974_v12  ;;  %1563 = vmatpush1.bf16.msra.mxu1 %v8975_v34  ;;  %v8994_v12 = vld [vmem:[%s12172_s4 + $0xe0] ss:$16 sps:$4 sm:$0xff]   ;;  %v8995_v34 = vld [vmem:[%s12172_s4 + $0xe8] ss:$16 sps:$4 sm:$0xff]  }
 0x14b   :  { %1523 = vmatprep.subr.bf16.mxu0 %v8976_v13  ;;  %1564 = vmatprep.subr.bf16.mxu1 %v8977_v5  ;;  %v8996_v13 = vld [vmem:[%s12172_s4 + $0xc4] ss:$16 sps:$4 sm:$0xff]   ;;  %v8997_v5 = vld [vmem:[%s12172_s4 + $0xcc] ss:$16 sps:$4 sm:$0xff]  }
 0x14e   :  { %1524 = vmatpush1.bf16.msra.mxu0 %v8978_v33  ;;  %1565 = vmatpush1.bf16.msra.mxu1 %v8979_v0  ;;  %v8999_v33 = vld [vmem:[%s12172_s4 + $0xc8] ss:$16 sps:$4 sm:$0xff]   ;;  %v9000_v0 = vld [vmem:[%s12172_s4 + $0xa4] ss:$16 sps:$4 sm:$0xff]  }
 0x14f   :  { %1525 = vmatprep.subr.bf16.mxu0 %v8980_v4  ;;  %1566 = vmatprep.subr.bf16.mxu1 %v8981_v2  ;;  %v9001_v4 = vld [vmem:[%s12172_s4 + $0xac] ss:$16 sps:$4 sm:$0xff]   ;;  %v9002_v2 = vld [vmem:[%s12172_s4 + $0xa0] ss:$16 sps:$4 sm:$0xff]  }
 0x152   :  { %1526 = vmatpush1.bf16.msra.mxu0 %v8982_v1  ;;  %1567 = vmatpush1.bf16.msra.mxu1 %v8983_v19  ;;  %v9003_v1 = vld [vmem:[%s12172_s4 + $0xa8] ss:$16 sps:$4 sm:$0xff]  }
 0x153   :  { %1527 = vmatprep.subr.bf16.mxu0 %v8984_v16  ;;  %1568 = vmatprep.subr.bf16.mxu1 %v8985_v11 }
 0x156   :  { %1528 = vmatpush1.bf16.msra.mxu0 %v8986_v3  ;;  %1569 = vmatpush1.bf16.msra.mxu1 %v8987_v6 }
 0x157   :  { %1529 = vmatprep.subr.bf16.mxu0 %v8988_v7  ;;  %1570 = vmatprep.subr.bf16.mxu1 %v8989_v17 }
 0x15a   :  { %1530 = vmatpush1.bf16.msra.mxu0 %v8990_v15  ;;  %1571 = vmatpush1.bf16.msra.mxu1 %v8991_v61  ;;  %v12445_v61 = vld [vmem:[#allocation21_spill] sm:$0xff] }
 0x15b   :  { %2020 = vmatprep.subr.bf16.mxu0 %v8992_v14  ;;  %2061 = vmatprep.subr.bf16.mxu1 %v8993_v62 }
 0x15d   :  { %1548 = vmatmul.mubr.bf16.vlgmr.msra.gmra.mxu0 %v9759_v18  ;;  %1589 = vmatmul.mubr.bf16.vlgmr.msra.gmra.mxu1 %v9759_v18  ;;  %v8998_v18 = vld [vmem:[%s12172_s4 + $0xc0] ss:$16 sps:$4 sm:$0xff]  }
 0x15e   :  { %2021 = vmatpush1.bf16.msra.mxu0 %v8994_v12  ;;  %2062 = vmatpush1.bf16.msra.mxu1 %v8995_v34  ;;  %v7205_v12 = vld [vmem:[%s12174_s9 + $0x8] sm:$0xff] }
 0x15f   :  { %2022 = vmatprep.subr.bf16.mxu0 %v8996_v13  ;;  %2063 = vmatprep.subr.bf16.mxu1 %v8997_v5 }
 0x162   :  { %2023 = vmatpush1.bf16.msra.mxu0 %v8998_v18  ;;  %2064 = vmatpush1.bf16.msra.mxu1 %v8999_v33  ;;  %v12446_v33 = vld [vmem:[#allocation23_spill] sm:$0xff] }
 0x163   :  { %2024 = vmatprep.subr.bf16.mxu0 %v9000_v0  ;;  %2065 = vmatprep.subr.bf16.mxu1 %v9001_v4 }
 0x166   :  { %2025 = vmatpush1.bf16.msra.mxu0 %v9002_v2  ;;  %2066 = vmatpush1.bf16.msra.mxu1 %v9003_v1 }
 0x167   :  { %2026 = vmatprep.subr.bf16.mxu0 %v9334_v20  ;;  %2067 = vmatprep.subr.bf16.mxu1 %v9339_v21  ;;  %v12423_v20 = vld [vmem:[#allocation7_spill] sm:$0xff]  ;;  %v12424_v21 = vld [vmem:[#allocation8_spill] sm:$0xff] }
 0x16a   :  { %2027 = vmatpush1.bf16.msra.mxu0 %v9344_v22  ;;  %2068 = vmatpush1.bf16.msra.mxu1 %v9349_v23  ;;  %v12425_v22 = vld [vmem:[#allocation9_spill] sm:$0xff]  ;;  %v12426_v23 = vld [vmem:[#allocation10_spill] sm:$0xff] }
 0x16b   :  { %2028 = vmatprep.subr.bf16.mxu0 %v9358_v24  ;;  %2069 = vmatprep.subr.bf16.mxu1 %v9363_v25  ;;  %v12427_v24 = vld [vmem:[#allocation11_spill] sm:$0xff]  ;;  %v12428_v25 = vld [vmem:[#allocation12_spill] sm:$0xff] }
 0x16e   :  { %2029 = vmatpush1.bf16.msra.mxu0 %v9368_v26  ;;  %2070 = vmatpush1.bf16.msra.mxu1 %v9373_v27  ;;  %v12429_v26 = vld [vmem:[#allocation13_spill] sm:$0xff]  ;;  %v12430_v27 = vld [vmem:[#allocation14_spill] sm:$0xff] }
 0x16f   :  { %2030 = vmatprep.subr.bf16.mxu0 %v9382_v28  ;;  %2071 = vmatprep.subr.bf16.mxu1 %v9387_v29  ;;  %v12431_v28 = vld [vmem:[#allocation15_spill] sm:$0xff]  ;;  %v12432_v29 = vld [vmem:[#allocation16_spill] sm:$0xff] }
 0x172   :  { %2031 = vmatpush1.bf16.msra.mxu0 %v9392_v30  ;;  %2072 = vmatpush1.bf16.msra.mxu1 %v9397_v31  ;;  %v12433_v30 = vld [vmem:[#allocation17_spill] sm:$0xff]  ;;  %v12434_v31 = vld [vmem:[#allocation18_spill] sm:$0xff] }
 0x173   :  { %2032 = vmatprep.subr.bf16.mxu0 %v9406_v32  ;;  %2073 = vmatprep.subr.bf16.mxu1 %v9411_v35  ;;  %v12435_v32 = vld [vmem:[#allocation19_spill] sm:$0xff] }
 0x174   :  { %v9948_v35 = vld [vmem:[%s12170_s2 + $0xe4] ss:$16 sps:$4 sm:$0xff]  }
 0x176   :  { %2033 = vmatpush1.bf16.msra.mxu0 %v9416_v36  ;;  %2074 = vmatpush1.bf16.msra.mxu1 %v9421_v37  ;;  %v9953_v36 = vld [vmem:[%s12170_s2 + $0xec] ss:$16 sps:$4 sm:$0xff]   ;;  %v463_v37 = vld [vmem:[%s12175_s5] sm:$0xf] }
 0x177   :  { %2034 = vmatprep.subr.bf16.mxu0 %v9430_v38  ;;  %2075 = vmatprep.subr.bf16.mxu1 %v9435_v39  ;;  %v12436_v38 = vld [vmem:[#allocation20_spill] sm:$0xff] }
 0x178   :  { %v12437_v39 = vsub.s32 0, %v12436_v38 }
 0x17a   :  { %2035 = vmatpush1.bf16.msra.mxu0 %v9440_v40  ;;  %2076 = vmatpush1.bf16.msra.mxu1 %v9445_v41  ;;  %v9962_v40 = vrot.slane %v463_v37, %v12437_v39  ;;  %v12439_v41 = vsub.s32 1, %v12436_v38 }
 0x17b   :  { %2036 = vmatprep.subr.bf16.mxu0 %v9454_v42  ;;  %2077 = vmatprep.subr.bf16.mxu1 %v9459_v43 }
 0x17c   :  { %12438 = vst [vmem:[#allocation7_spill] sm:$0xff] %v9962_v40  ;;  %v9966_v42 = vrot.slane %v463_v37, %v12439_v41 }
 0x17e   :  { %2037 = vmatpush2.bf16.msra.mxu0 %v9464_v44  ;;  %2078 = vmatpush2.bf16.msra.mxu1 %v9469_v45  ;;  %12440 = vst [vmem:[#allocation8_spill] sm:$0xff] %v9966_v42 }
 0x17f   :  { %2038 = vmatprep.subr.bf16.mxu0 %v9478_v46  ;;  %2079 = vmatprep.subr.bf16.mxu1 %v9483_v47 }
 0x182   :  { %2039 = vmatpush2.bf16.msra.mxu0 %v9488_v48  ;;  %2080 = vmatpush2.bf16.msra.mxu1 %v9493_v49 }
 0x183   :  { %2040 = vmatprep.subr.bf16.mxu0 %v9502_v50  ;;  %2081 = vmatprep.subr.bf16.mxu1 %v9507_v51 }
 0x186   :  { %2041 = vmatpush2.bf16.msra.mxu0 %v9512_v52  ;;  %2082 = vmatpush2.bf16.msra.mxu1 %v9517_v53 }
 0x187   :  { %2042 = vmatprep.subr.bf16.mxu0 %v9526_v54  ;;  %2083 = vmatprep.subr.bf16.mxu1 %v9531_v55  ;;  %v12441_v55 = vsub.s32 3, %v12436_v38 }
 0x18a   :  { %2043 = vmatpush2.bf16.msra.mxu0 %v9536_v56  ;;  %2084 = vmatpush2.bf16.msra.mxu1 %v9541_v57  ;;  %v9972_v56 = vrot.slane %v463_v37, %v12441_v55 }
 0x18b   :  { %2044 = vmatprep.subr.bf16.mxu0 %v9548_v58  ;;  %2085 = vmatprep.subr.bf16.mxu1 %v9559_v60  ;;  %v12443_v58 = vsub.s32 2, %v12436_v38 }
 0x18c   :  { %12442 = vst [vmem:[#allocation9_spill] sm:$0xff] %v9972_v56 }
 0x18e   :  { %2045 = vmatpush2.bf16.msra.mxu0 %v9554_v59  ;;  %2086 = vmatpush2.bf16.msra.mxu1 %v12423_v20  ;;  %v9977_v59 = vrot.slane %v463_v37, %v12443_v58  ;;  %v9997_v58 = vld [vmem:[%s12170_s2 + $0xe0] ss:$16 sps:$4 sm:$0xff]  }
 0x18f   :  { %2046 = vmatprep.subr.bf16.mxu0 %v12424_v21  ;;  %2087 = vmatprep.subr.bf16.mxu1 %v12425_v22 }
 0x190   :  { %12444 = vst [vmem:[#allocation10_spill] sm:$0xff] %v9977_v59 }
 0x192   :  { %2047 = vmatpush2.bf16.msra.mxu0 %v12426_v23  ;;  %2088 = vmatpush2.bf16.msra.mxu1 %v12427_v24 }
 0x193   :  { %2048 = vmatprep.subr.bf16.mxu0 %v12428_v25  ;;  %2089 = vmatprep.subr.bf16.mxu1 %v12429_v26 }
 0x196   :  { %2049 = vmatpush2.bf16.msra.mxu0 %v12430_v27  ;;  %2090 = vmatpush2.bf16.msra.mxu1 %v12431_v28  ;;  %v12447_v27 = vld [vmem:[#allocation24_spill] sm:$0xff] }
 0x197   :  { %2050 = vmatprep.subr.bf16.mxu0 %v12432_v29  ;;  %2091 = vmatprep.subr.bf16.mxu1 %v12433_v30  ;;  %v12448_v29 = vld [vmem:[#allocation22_spill] sm:$0xff] }
 0x198   :  { %12462 = vst [vmem:[#allocation22_spill] sm:$0xff] %v10320_v8 }
 0x19a   :  { %2051 = vmatpush2.bf16.msra.mxu0 %v12434_v31  ;;  %2092 = vmatpush2.bf16.msra.mxu1 %v12435_v32 }
 0x19b   :  { %2330 = vmatprep.subr.bf16.mxu0 %v9948_v35  ;;  %2371 = vmatprep.subr.bf16.mxu1 %v9953_v36 }
 0x1fd   :  { %v1239_v43 = vpop.f32.mrf.mxu0  ;;  %v1280_v44 = vpop.f32.mrf.mxu1 }
 0x1fe   :  { %v1240_v45 = vadd.f32 %v1239_v43, %v9962_v40  ;;  %v1281_v16 = vadd.f32 %v1280_v44, %v9977_v59 }
 0x1ff   :  { %v1241_v46 = vpop.f32.mrf.mxu0  ;;  %v1282_v47 = vpop.f32.mrf.mxu1 }
 0x200   :  { %v7305_v48 = vmul.f32 -1.442695, %v1240_v45  ;;  %v1242_v49 = vadd.f32 %v1241_v46, %v9966_v42  ;;  %v1283_v57 = vadd.f32 %v1282_v47, %v9972_v56 }
 0x201   :  { %v1243_v50 = vpop.f32.mrf.mxu0  ;;  %v1284_v51 = vpop.f32.mrf.mxu1 }
 0x202   :  { %8718 = vpow2.f32 %v7305_v48  ;;  %v7306_v52 = vmul.f32 -1.442695, %v1242_v49  ;;  %v7307_v60 = vmul.f32 -1.442695, %v1283_v57 }
 0x203   :  { %v1244_v53 = vpop.f32.mrf.mxu0  ;;  %v1285_v54 = vpop.f32.mrf.mxu1 }
 0x204   :  { %8720 = vpow2.f32 %v7306_v52 }
 0x205   :  { %8722 = vpow2.f32 %v7307_v60  ;;  %v10002_v60 = vld [vmem:[%s12170_s2 + $0xe8] ss:$16 sps:$4 sm:$0xff]  }
 0x20f   :  { %v8719_v19 = vpop.eup %8718 }
 0x210   :  { %v1291_v11 = vadd.f32 1.0, %v8719_v19 }
 0x211   :  { %v8721_v3 = vpop.eup %8720 }
 0x212   :  { %8724 = vrcp.f32 %v1291_v11  ;;  %v1297_v6 = vadd.f32 1.0, %v8721_v3  ;;  %v8723_v15 = vpop.eup %8722  ;;  %v10023_v11 = vld [vmem:[%s12170_s2 + $0xc0] ss:$16 sps:$4 sm:$0xff]   ;;  %v10028_v3 = vld [vmem:[%s12170_s2 + $0xc8] ss:$16 sps:$4 sm:$0xff]  }
 0x213   :  { %8726 = vtanh.f32 %v1281_v16  ;;  %v1304_v2 = vadd.f32 1.0, %v8723_v15  ;;  %v10014_v16 = vld [vmem:[%s12170_s2 + $0xcc] ss:$16 sps:$4 sm:$0xff]   ;;  %v10054_v15 = vld [vmem:[%s12170_s2 + $0xa8] ss:$16 sps:$4 sm:$0xff]  }
 0x214   :  { %8728 = vrcp.f32 %v1297_v6  ;;  %v10035_v6 = vld [vmem:[%s12170_s2 + $0xa4] ss:$16 sps:$4 sm:$0xff]  }
 0x21d   :  { %v1549_v7 = vpop.f32.mrf.mxu0  ;;  %v1590_v17 = vpop.f32.mrf.mxu1 }
 0x21e   :  { %v1597_v14 = vadd.f32 %v1549_v7, %v12445_v61  ;;  %v1599_v30 = vadd.f32 %v1590_v17, %v12448_v29  ;;  %v10040_v7 = vld [vmem:[%s12170_s2 + $0xac] ss:$16 sps:$4 sm:$0xff]   ;;  %v10049_v17 = vld [vmem:[%s12170_s2 + $0xa0] ss:$16 sps:$4 sm:$0xff]   ;;  %v10061_v61 = vld [vmem:[%s12170_s2 + $0x84] ss:$16 sps:$4 sm:$0xff]  }
 0x21f   :  { %v8725_v62 = vpop.eup %8724  ;;  %v1551_v34 = vpop.f32.mrf.mxu0  ;;  %v10190_v29 = vld [vmem:[%s12172_s4 + $0xec] ss:$16 sps:$4 sm:$0xff]  }
 0x220   :  { %v1592_v13 = vpop.f32.mrf.mxu1  ;;  %v8727_v5 = vpop.eup %8726  ;;  %v7340_v18 = vmul.f32 -1.442695, %v1597_v14  ;;  %v1598_v0 = vadd.f32 %v1551_v34, %v12446_v33  ;;  %v10066_v14 = vld [vmem:[%s12170_s2 + $0x8c] ss:$16 sps:$4 sm:$0xff]   ;;  %v10085_v34 = vld [vmem:[%s12170_s2 + $0x64] ss:$16 sps:$4 sm:$0xff]  }
 0x221   :  { %v8729_v4 = vpop.eup %8728  ;;  %v1553_v1 = vpop.f32.mrf.mxu0  ;;  %v1308_v21 = vmul.f32 %v8727_v5, %v8725_v62  ;;  %v1600_v28 = vadd.f32 %v1592_v13, %v12447_v27  ;;  %v10073_v62 = vld [vmem:[%s12170_s2 + $0x80] ss:$16 sps:$4 sm:$0xff]   ;;  %v10090_v13 = vld [vmem:[%s12170_s2 + $0x6c] ss:$16 sps:$4 sm:$0xff]   ;;  %v10109_v33 = vld [vmem:[%s12170_s2 + $0x44] ss:$16 sps:$4 sm:$0xff]  }
 0x222   :  { %v1594_v20 = vpop.f32.mrf.mxu1  ;;  %v1307_v22 = vmul.f32 %v8729_v4, %v7205_v12  ;;  %8730 = vpow2.f32 %v7340_v18  ;;  %v7341_v23 = vmul.f32 -1.442695, %v1598_v0  ;;  %v10078_v12 = vld [vmem:[%s12170_s2 + $0x88] ss:$16 sps:$4 sm:$0xff]   ;;  %v10097_v5 = vld [vmem:[%s12170_s2 + $0x60] ss:$16 sps:$4 sm:$0xff]  }
 0x223   :  { %v1554_v24 = vpop.f32.mrf.mxu0  ;;  %v7342_v31 = vmul.f32 -1.442695, %v1600_v28  ;;  %v10102_v18 = vld [vmem:[%s12170_s2 + $0x68] ss:$16 sps:$4 sm:$0xff]   ;;  %v10114_v0 = vld [vmem:[%s12170_s2 + $0x4c] ss:$16 sps:$4 sm:$0xff]  }
 0x224   :  { %v1595_v25 = vpop.f32.mrf.mxu1  ;;  %8732 = vpow2.f32 %v7341_v23  ;;  %v9985_v26 = vadd.f32 %v1308_v21, %v1307_v22  ;;  %v10121_v4 = vld [vmem:[%s12170_s2 + $0x40] ss:$16 sps:$4 sm:$0xff]   ;;  %v10133_v1 = vld [vmem:[%s12170_s2 + $0x24] ss:$16 sps:$4 sm:$0xff]   ;;  %v10138_v20 = vld [vmem:[%s12170_s2 + $0x2c] ss:$16 sps:$4 sm:$0xff]  }
 0x225   :  { %8734 = vrcp.f32 %v1304_v2  ;;  %v10126_v2 = vld [vmem:[%s12170_s2 + $0x48] ss:$16 sps:$4 sm:$0xff]   ;;  %v10145_v21 = vld [vmem:[%s12170_s2 + $0x20] ss:$16 sps:$4 sm:$0xff]   ;;  %v10157_v23 = vld [vmem:[%s12170_s2 + $0x4] ss:$16 sps:$4 sm:$0xff]  }
 0x226   :  { %8736 = vtanh.f32 %v9985_v26  ;;  %v10150_v22 = vld [vmem:[%s12170_s2 + $0x28] ss:$16 sps:$4 sm:$0xff]   ;;  %v10162_v24 = vld [vmem:[%s12170_s2 + $0xc] ss:$16 sps:$4 sm:$0xff]   ;;  %v10169_v25 = vld [vmem:[%s12170_s2] ss:$16 sps:$4 sm:$0xff]  }
 0x227   :  { %8738 = vtanh.f32 %v1599_v30  ;;  %v10174_v27 = vld [vmem:[%s12170_s2 + $0x8] ss:$16 sps:$4 sm:$0xff]   ;;  %v10185_v28 = vld [vmem:[%s12172_s4 + $0xe4] ss:$16 sps:$4 sm:$0xff]   ;;  %v10195_v30 = vld [vmem:[%s12172_s4 + $0xe0] ss:$16 sps:$4 sm:$0xff]  }
 0x228   :  { %8740 = vpow2.f32 %v7342_v31  ;;  %v10200_v31 = vld [vmem:[%s12172_s4 + $0xe8] ss:$16 sps:$4 sm:$0xff]  }
 0x22f   :  { %v8731_v32 = vpop.eup %8730 }
 0x230   :  { %v1605_v37 = vadd.f32 1.0, %v8731_v32  ;;  %v10209_v32 = vld [vmem:[%s12172_s4 + $0xc4] ss:$16 sps:$4 sm:$0xff]  }
 0x231   :  { %v8733_v38 = vpop.eup %8732 }
 0x232   :  { %v8735_v39 = vpop.eup %8734  ;;  %8742 = vrcp.f32 %v1605_v37  ;;  %v1611_v41 = vadd.f32 1.0, %v8733_v38  ;;  %v10214_v37 = vld [vmem:[%s12172_s4 + $0xcc] ss:$16 sps:$4 sm:$0xff]   ;;  %v10219_v38 = vld [vmem:[%s12172_s4 + $0xc0] ss:$16 sps:$4 sm:$0xff]  }
 0x233   :  { %v8737_v43 = vpop.eup %8736 }
 0x234   :  { %8744 = vrcp.f32 %v1611_v41  ;;  %v1311_v44 = vmul.f32 %v8737_v43, %v8735_v39  ;;  %v8739_v46 = vpop.eup %8738  ;;  %v10224_v39 = vld [vmem:[%s12172_s4 + $0xc8] ss:$16 sps:$4 sm:$0xff]   ;;  %v10233_v41 = vld [vmem:[%s12172_s4 + $0xa4] ss:$16 sps:$4 sm:$0xff]   ;;  %v10238_v43 = vld [vmem:[%s12172_s4 + $0xac] ss:$16 sps:$4 sm:$0xff]  }
 0x235   :  { %v8741_v47 = vpop.eup %8740 }
 0x236   :  { %v1631_v45 = vpack.c.bf16 %v1311_v44, %v1311_v44  ;;  %v1618_v51 = vadd.f32 1.0, %v8741_v47  ;;  %v10243_v44 = vld [vmem:[%s12172_s4 + $0xa0] ss:$16 sps:$4 sm:$0xff]   ;;  %v10262_v47 = vld [vmem:[%s12172_s4 + $0x8c] ss:$16 sps:$4 sm:$0xff]  }
 0x237   :  { %12449 = vst [vmem:[#allocation11_spill] sm:$0xff] %v10243_v44  ;;  %12452 = vst [vmem:[#allocation14_spill] sm:$0xff] %v10262_v47 }
 0x238   :  { %2052 = vmatprep.mubr.bf16.mxu0 %v1631_v45  ;;  %2093 = vmatprep.mubr.bf16.mxu1 %v1631_v45  ;;  %8746 = vrcp.f32 %v1618_v51  ;;  %v10248_v45 = vld [vmem:[%s12172_s4 + $0xa8] ss:$16 sps:$4 sm:$0xff]   ;;  %v10286_v51 = vld [vmem:[%s12172_s4 + $0x6c] ss:$16 sps:$4 sm:$0xff]  }
 0x239   :  { %12450 = vst [vmem:[#allocation12_spill] sm:$0xff] %v10248_v45  ;;  %12456 = vst [vmem:[#allocation18_spill] sm:$0xff] %v10286_v51 }
 0x23f   :  { %v8743_v48 = vpop.eup %8742 }
 0x240   :  { %v1622_v49 = vmul.f32 %v8743_v48, %v8739_v46  ;;  %v10257_v46 = vld [vmem:[%s12172_s4 + $0x84] ss:$16 sps:$4 sm:$0xff]   ;;  %v10267_v48 = vld [vmem:[%s12172_s4 + $0x80] ss:$16 sps:$4 sm:$0xff]  }
 0x241   :  { %v8745_v50 = vpop.eup %8744  ;;  %12451 = vst [vmem:[#allocation13_spill] sm:$0xff] %v10257_v46  ;;  %12453 = vst [vmem:[#allocation15_spill] sm:$0xff] %v10267_v48 }
 0x242   :  { %v1621_v52 = vmul.f32 %v8745_v50, %v9756_v63  ;;  %v10009_v63 = vld [vmem:[%s12170_s2 + $0xc4] ss:$16 sps:$4 sm:$0xff]  }
 0x243   :  { %v10281_v50 = vld [vmem:[%s12172_s4 + $0x64] ss:$16 sps:$4 sm:$0xff]  }
 0x244   :  { %v9991_v53 = vadd.f32 %v1622_v49, %v1621_v52  ;;  %v10272_v49 = vld [vmem:[%s12172_s4 + $0x88] ss:$16 sps:$4 sm:$0xff]   ;;  %12455 = vst [vmem:[#allocation17_spill] sm:$0xff] %v10281_v50  ;;  %v10291_v52 = vld [vmem:[%s12172_s4 + $0x60] ss:$16 sps:$4 sm:$0xff]  }
 0x245   :  { %v8747_v54 = vpop.eup %8746  ;;  %12454 = vst [vmem:[#allocation16_spill] sm:$0xff] %v10272_v49  ;;  %12457 = vst [vmem:[#allocation19_spill] sm:$0xff] %v10291_v52 }
 0x246   :  { %8748 = vtanh.f32 %v9991_v53 }
 0x253   :  { %v8749_v55 = vpop.eup %8748 }
 0x254   :  { %v1625_v57 = vmul.f32 %v8749_v55, %v8747_v54  ;;  %v10296_v54 = vld [vmem:[%s12172_s4 + $0x68] ss:$16 sps:$4 sm:$0xff]   ;;  %v10305_v55 = vld [vmem:[%s12172_s4 + $0x44] ss:$16 sps:$4 sm:$0xff]  }
 0x255   :  { %12458 = vst [vmem:[#allocation20_spill] sm:$0xff] %v10296_v54  ;;  %12459 = vst [vmem:[#allocation21_spill] sm:$0xff] %v10305_v55 }
 0x256   :  { %v10004_v19 = vpack.c.bf16 %v1625_v57, %v1625_v57  ;;  %v10310_v57 = vld [vmem:[%s12172_s4 + $0x4c] ss:$16 sps:$4 sm:$0xff]  }
 0x257   :  { %12460 = vst [vmem:[#allocation23_spill] sm:$0xff] %v10310_v57 }
 0x258   :  { %2053 = vmatmul.mubr.bf16.vlgmr.msra.gmra.mxu0 %v10004_v19  ;;  %2094 = vmatmul.mubr.bf16.vlgmr.msra.gmra.mxu1 %v10004_v19 }
 0x259   :  { %2331 = vmatpush1.bf16.msra.mxu0 %v9997_v58  ;;  %2372 = vmatpush1.bf16.msra.mxu1 %v10002_v60 }
 0x25a   :  { %2332 = vmatprep.subr.bf16.mxu0 %v10009_v63  ;;  %2373 = vmatprep.subr.bf16.mxu1 %v10014_v16 }
 0x25b   :  { %2362 = vmatprep.mubr.bf16.mxu0 %v12422_v9  ;;  %2403 = vmatprep.mubr.bf16.mxu1 %v12422_v9 }
 0x25d   :  { %2333 = vmatpush1.bf16.msra.mxu0 %v10023_v11  ;;  %2374 = vmatpush1.bf16.msra.mxu1 %v10028_v3 }
 0x25e   :  { %2334 = vmatprep.subr.bf16.mxu0 %v10035_v6  ;;  %2375 = vmatprep.subr.bf16.mxu1 %v10040_v7 }
 0x261   :  { %2335 = vmatpush1.bf16.msra.mxu0 %v10049_v17  ;;  %2376 = vmatpush1.bf16.msra.mxu1 %v10054_v15 }
 0x262   :  { %2336 = vmatprep.subr.bf16.mxu0 %v10061_v61  ;;  %2377 = vmatprep.subr.bf16.mxu1 %v10066_v14 }
 0x265   :  { %2337 = vmatpush1.bf16.msra.mxu0 %v10073_v62  ;;  %2378 = vmatpush1.bf16.msra.mxu1 %v10078_v12 }
 0x266   :  { %2338 = vmatprep.subr.bf16.mxu0 %v10085_v34  ;;  %2379 = vmatprep.subr.bf16.mxu1 %v10090_v13 }
 0x269   :  { %2339 = vmatpush1.bf16.msra.mxu0 %v10097_v5  ;;  %2380 = vmatpush1.bf16.msra.mxu1 %v10102_v18 }
 0x26a   :  { %2340 = vmatprep.subr.bf16.mxu0 %v10109_v33  ;;  %2381 = vmatprep.subr.bf16.mxu1 %v10114_v0 }
 0x26d   :  { %2341 = vmatpush1.bf16.msra.mxu0 %v10121_v4  ;;  %2382 = vmatpush1.bf16.msra.mxu1 %v10126_v2 }
 0x26e   :  { %2342 = vmatprep.subr.bf16.mxu0 %v10133_v1  ;;  %2383 = vmatprep.subr.bf16.mxu1 %v10138_v20 }
 0x271   :  { %2343 = vmatpush1.bf16.msra.mxu0 %v10145_v21  ;;  %2384 = vmatpush1.bf16.msra.mxu1 %v10150_v22 }
 0x272   :  { %2344 = vmatprep.subr.bf16.mxu0 %v10157_v23  ;;  %2385 = vmatprep.subr.bf16.mxu1 %v10162_v24 }
 0x275   :  { %2345 = vmatpush1.bf16.msra.mxu0 %v10169_v25  ;;  %2386 = vmatpush1.bf16.msra.mxu1 %v10174_v27 }
 0x276   :  { %2835 = vmatprep.subr.bf16.mxu0 %v10185_v28  ;;  %2876 = vmatprep.subr.bf16.mxu1 %v10190_v29 }
 0x278   :  { %2363 = vmatmul.mubr.bf16.vlgmr.msra.gmra.mxu0 %v10004_v19  ;;  %2404 = vmatmul.mubr.bf16.vlgmr.msra.gmra.mxu1 %v10004_v19  ;;  %v10315_v19 = vld [vmem:[%s12172_s4 + $0x40] ss:$16 sps:$4 sm:$0xff]  }
 0x279   :  { %2836 = vmatpush1.bf16.msra.mxu0 %v10195_v30  ;;  %2877 = vmatpush1.bf16.msra.mxu1 %v10200_v31  ;;  %12461 = vst [vmem:[#allocation24_spill] sm:$0xff] %v10315_v19 }
 0x27a   :  { %2837 = vmatprep.subr.bf16.mxu0 %v10209_v32  ;;  %2878 = vmatprep.subr.bf16.mxu1 %v10214_v37 }
 0x27d   :  { %2838 = vmatpush1.bf16.msra.mxu0 %v10219_v38  ;;  %2879 = vmatpush1.bf16.msra.mxu1 %v10224_v39 }
 0x27e   :  { %2839 = vmatprep.subr.bf16.mxu0 %v10233_v41  ;;  %2880 = vmatprep.subr.bf16.mxu1 %v10238_v43 }
 0x281   :  { %2840 = vmatpush1.bf16.msra.mxu0 %v10243_v44  ;;  %2881 = vmatpush1.bf16.msra.mxu1 %v10248_v45 }
 0x282   :  { %2841 = vmatprep.subr.bf16.mxu0 %v10257_v46  ;;  %2882 = vmatprep.subr.bf16.mxu1 %v10262_v47 }
 0x285   :  { %2842 = vmatpush1.bf16.msra.mxu0 %v10267_v48  ;;  %2883 = vmatpush1.bf16.msra.mxu1 %v10272_v49 }
 0x286   :  { %2843 = vmatprep.subr.bf16.mxu0 %v10281_v50  ;;  %2884 = vmatprep.subr.bf16.mxu1 %v10286_v51 }
 0x289   :  { %2844 = vmatpush1.bf16.msra.mxu0 %v10291_v52  ;;  %2885 = vmatpush1.bf16.msra.mxu1 %v10296_v54  ;;  %v10334_v54 = vld [vmem:[%s12172_s4 + $0x2c] ss:$16 sps:$4 sm:$0xff]   ;;  %v10512_v52 = vld [vmem:[%s12172_s4 + $0x148] ss:$16 sps:$4 sm:$0xff]  }
 0x28a   :  { %2845 = vmatprep.subr.bf16.mxu0 %v10305_v55  ;;  %2886 = vmatprep.subr.bf16.mxu1 %v10310_v57  ;;  %12464 = vst [vmem:[#allocation50_spill] sm:$0xff] %v10334_v54  ;;  %v10339_v55 = vld [vmem:[%s12172_s4 + $0x20] ss:$16 sps:$4 sm:$0xff]   ;;  %v10358_v57 = vld [vmem:[%s12172_s4 + $0xc] ss:$16 sps:$4 sm:$0xff]   ;;  %12494 = vst [vmem:[#allocation80_spill] sm:$0xff] %v10512_v52 }
 0x28b   :  { %12465 = vst [vmem:[#allocation51_spill] sm:$0xff] %v10339_v55  ;;  %12468 = vst [vmem:[#allocation54_spill] sm:$0xff] %v10358_v57 }
 0x28d   :  { %2846 = vmatpush1.bf16.msra.mxu0 %v10315_v19  ;;  %2887 = vmatpush1.bf16.msra.mxu1 %v10320_v8  ;;  %v10344_v19 = vld [vmem:[%s12172_s4 + $0x28] ss:$16 sps:$4 sm:$0xff]   ;;  %v10353_v8 = vld [vmem:[%s12172_s4 + $0x4] ss:$16 sps:$4 sm:$0xff]  }
 0x28e   :  { %12466 = vst [vmem:[#allocation52_spill] sm:$0xff] %v10344_v19  ;;  %2847 = vmatprep.subr.bf16.mxu0 %v10329_v10  ;;  %2888 = vmatprep.subr.bf16.mxu1 %v10334_v54  ;;  %12467 = vst [vmem:[#allocation53_spill] sm:$0xff] %v10353_v8  ;;  %v10363_v10 = vld [vmem:[%s12172_s4] ss:$16 sps:$4 sm:$0xff]   ;;  %v10382_v54 = vld [vmem:[%s12172_s4 + $0x1ec] ss:$16 sps:$4 sm:$0xff]  }
 0x28f   :  { %12469 = vst [vmem:[#allocation55_spill] sm:$0xff] %v10363_v10  ;;  %12472 = vst [vmem:[#allocation58_spill] sm:$0xff] %v10382_v54 }
 0x291   :  { %2848 = vmatpush1.bf16.msra.mxu0 %v10339_v55  ;;  %2889 = vmatpush1.bf16.msra.mxu1 %v10344_v19  ;;  %v10368_v55 = vld [vmem:[%s12172_s4 + $0x8] ss:$16 sps:$4 sm:$0xff]   ;;  %v10377_v19 = vld [vmem:[%s12172_s4 + $0x1e4] ss:$16 sps:$4 sm:$0xff]  }
 0x292   :  { %12470 = vst [vmem:[#allocation56_spill] sm:$0xff] %v10368_v55  ;;  %2849 = vmatprep.subr.bf16.mxu0 %v10353_v8  ;;  %2890 = vmatprep.subr.bf16.mxu1 %v10358_v57  ;;  %12471 = vst [vmem:[#allocation57_spill] sm:$0xff] %v10377_v19  ;;  %v10387_v8 = vld [vmem:[%s12172_s4 + $0x1e0] ss:$16 sps:$4 sm:$0xff]   ;;  %v10406_v57 = vld [vmem:[%s12172_s4 + $0x1cc] ss:$16 sps:$4 sm:$0xff]  }
 0x293   :  { %12473 = vst [vmem:[#allocation59_spill] sm:$0xff] %v10387_v8  ;;  %12476 = vst [vmem:[#allocation62_spill] sm:$0xff] %v10406_v57 }
 0x295   :  { %2850 = vmatpush1.bf16.msra.mxu0 %v10363_v10  ;;  %2891 = vmatpush1.bf16.msra.mxu1 %v10368_v55  ;;  %v10392_v10 = vld [vmem:[%s12172_s4 + $0x1e8] ss:$16 sps:$4 sm:$0xff]   ;;  %v10401_v55 = vld [vmem:[%s12172_s4 + $0x1c4] ss:$16 sps:$4 sm:$0xff]  }
 0x296   :  { %12474 = vst [vmem:[#allocation60_spill] sm:$0xff] %v10392_v10  ;;  %2851 = vmatprep.subr.bf16.mxu0 %v10377_v19  ;;  %2892 = vmatprep.subr.bf16.mxu1 %v10382_v54  ;;  %12475 = vst [vmem:[#allocation61_spill] sm:$0xff] %v10401_v55  ;;  %v10411_v19 = vld [vmem:[%s12172_s4 + $0x1c0] ss:$16 sps:$4 sm:$0xff]   ;;  %v10430_v54 = vld [vmem:[%s12172_s4 + $0x1ac] ss:$16 sps:$4 sm:$0xff]  }
 0x297   :  { %12477 = vst [vmem:[#allocation63_spill] sm:$0xff] %v10411_v19  ;;  %12480 = vst [vmem:[#allocation66_spill] sm:$0xff] %v10430_v54 }
 0x299   :  { %2852 = vmatpush2.bf16.msra.mxu0 %v10387_v8  ;;  %2893 = vmatpush2.bf16.msra.mxu1 %v10392_v10  ;;  %v10416_v8 = vld [vmem:[%s12172_s4 + $0x1c8] ss:$16 sps:$4 sm:$0xff]   ;;  %v10425_v10 = vld [vmem:[%s12172_s4 + $0x1a4] ss:$16 sps:$4 sm:$0xff]  }
 0x29a   :  { %12478 = vst [vmem:[#allocation64_spill] sm:$0xff] %v10416_v8  ;;  %2853 = vmatprep.subr.bf16.mxu0 %v10401_v55  ;;  %2894 = vmatprep.subr.bf16.mxu1 %v10406_v57  ;;  %12479 = vst [vmem:[#allocation65_spill] sm:$0xff] %v10425_v10  ;;  %v10435_v55 = vld [vmem:[%s12172_s4 + $0x1a0] ss:$16 sps:$4 sm:$0xff]   ;;  %v10454_v57 = vld [vmem:[%s12172_s4 + $0x18c] ss:$16 sps:$4 sm:$0xff]  }
 0x29b   :  { %12481 = vst [vmem:[#allocation67_spill] sm:$0xff] %v10435_v55  ;;  %12484 = vst [vmem:[#allocation70_spill] sm:$0xff] %v10454_v57 }
 0x29d   :  { %2854 = vmatpush2.bf16.msra.mxu0 %v10411_v19  ;;  %2895 = vmatpush2.bf16.msra.mxu1 %v10416_v8  ;;  %v10440_v19 = vld [vmem:[%s12172_s4 + $0x1a8] ss:$16 sps:$4 sm:$0xff]   ;;  %v10449_v8 = vld [vmem:[%s12172_s4 + $0x184] ss:$16 sps:$4 sm:$0xff]  }
 0x29e   :  { %12482 = vst [vmem:[#allocation68_spill] sm:$0xff] %v10440_v19  ;;  %2855 = vmatprep.subr.bf16.mxu0 %v10425_v10  ;;  %2896 = vmatprep.subr.bf16.mxu1 %v10430_v54  ;;  %12483 = vst [vmem:[#allocation69_spill] sm:$0xff] %v10449_v8  ;;  %v10459_v10 = vld [vmem:[%s12172_s4 + $0x180] ss:$16 sps:$4 sm:$0xff]  }
 0x29f   :  { %12485 = vst [vmem:[#allocation71_spill] sm:$0xff] %v10459_v10  ;;  %v10478_v54 = vld [vmem:[%s12172_s4 + $0x160] ss:$16 sps:$4 sm:$0xff]  }
 0x2a0   :  { %12488 = vst [vmem:[#allocation74_spill] sm:$0xff] %v10478_v54 }
 0x2a1   :  { %2856 = vmatpush2.bf16.msra.mxu0 %v10435_v55  ;;  %2897 = vmatpush2.bf16.msra.mxu1 %v10440_v19  ;;  %v10464_v55 = vld [vmem:[%s12172_s4 + $0x188] ss:$16 sps:$4 sm:$0xff]   ;;  %v10471_v19 = vld [vmem:[%s12172_s4 + $0x164] ss:$16 sps:$4 sm:$0xff]  }
 0x2a2   :  { %12486 = vst [vmem:[#allocation72_spill] sm:$0xff] %v10464_v55  ;;  %2857 = vmatprep.subr.bf16.mxu0 %v10449_v8  ;;  %2898 = vmatprep.subr.bf16.mxu1 %v10454_v57  ;;  %12487 = vst [vmem:[#allocation73_spill] sm:$0xff] %v10471_v19  ;;  %v10483_v8 = vld [vmem:[%s12172_s4 + $0x168] ss:$16 sps:$4 sm:$0xff]   ;;  %v10488_v57 = vld [vmem:[%s12172_s4 + $0x16c] ss:$16 sps:$4 sm:$0xff]  }
 0x2a3   :  { %12489 = vst [vmem:[#allocation75_spill] sm:$0xff] %v10483_v8  ;;  %12490 = vst [vmem:[#allocation76_spill] sm:$0xff] %v10488_v57 }
 0x2a5   :  { %2858 = vmatpush2.bf16.msra.mxu0 %v10459_v10  ;;  %2899 = vmatpush2.bf16.msra.mxu1 %v10464_v55  ;;  %v10494_v55 = vld [vmem:[%s12172_s4 + $0x144] ss:$16 sps:$4 sm:$0xff]   ;;  %v10499_v10 = vld [vmem:[%s12172_s4 + $0x14c] ss:$16 sps:$4 sm:$0xff]  }
 0x2a6   :  { %2859 = vmatprep.subr.bf16.mxu0 %v10471_v19  ;;  %12491 = vst [vmem:[#allocation77_spill] sm:$0xff] %v10494_v55  ;;  %12492 = vst [vmem:[#allocation78_spill] sm:$0xff] %v10499_v10  ;;  %2900 = vmatprep.subr.bf16.mxu1 %v10488_v57  ;;  %v10507_v19 = vld [vmem:[%s12172_s4 + $0x140] ss:$16 sps:$4 sm:$0xff]  }
 0x2a7   :  { %12493 = vst [vmem:[#allocation79_spill] sm:$0xff] %v10507_v19 }
 0x2a9   :  { %2860 = vmatpush2.bf16.msra.mxu0 %v10478_v54  ;;  %2901 = vmatpush2.bf16.msra.mxu1 %v10483_v8  ;;  %v10519_v54 = vld [vmem:[%s12172_s4 + $0x124] ss:$16 sps:$4 sm:$0xff]   ;;  %v10524_v8 = vld [vmem:[%s12172_s4 + $0x12c] ss:$16 sps:$4 sm:$0xff]  }
 0x2aa   :  { %2861 = vmatprep.subr.bf16.mxu0 %v10494_v55  ;;  %2902 = vmatprep.subr.bf16.mxu1 %v10499_v10  ;;  %12495 = vst [vmem:[#allocation81_spill] sm:$0xff] %v10519_v54  ;;  %12496 = vst [vmem:[#allocation82_spill] sm:$0xff] %v10524_v8  ;;  %v10531_v55 = vld [vmem:[%s12172_s4 + $0x120] ss:$16 sps:$4 sm:$0xff]   ;;  %v10536_v10 = vld [vmem:[%s12172_s4 + $0x128] ss:$16 sps:$4 sm:$0xff]  }
 0x2ab   :  { %12497 = vst [vmem:[#allocation83_spill] sm:$0xff] %v10531_v55  ;;  %12498 = vst [vmem:[#allocation84_spill] sm:$0xff] %v10536_v10 }
 0x2ad   :  { %2862 = vmatpush2.bf16.msra.mxu0 %v10507_v19  ;;  %2903 = vmatpush2.bf16.msra.mxu1 %v10512_v52  ;;  %v10543_v19 = vld [vmem:[%s12172_s4 + $0x104] ss:$16 sps:$4 sm:$0xff]   ;;  %v10548_v52 = vld [vmem:[%s12172_s4 + $0x10c] ss:$16 sps:$4 sm:$0xff]  }
 0x2ae   :  { %2863 = vmatprep.subr.bf16.mxu0 %v10519_v54  ;;  %2904 = vmatprep.subr.bf16.mxu1 %v10524_v8  ;;  %12499 = vst [vmem:[#allocation85_spill] sm:$0xff] %v10543_v19  ;;  %12500 = vst [vmem:[#allocation86_spill] sm:$0xff] %v10548_v52  ;;  %v10555_v54 = vld [vmem:[%s12172_s4 + $0x100] ss:$16 sps:$4 sm:$0xff]   ;;  %v10560_v8 = vld [vmem:[%s12172_s4 + $0x108] ss:$16 sps:$4 sm:$0xff]  }
 0x2af   :  { %12501 = vst [vmem:[#allocation87_spill] sm:$0xff] %v10555_v54  ;;  %12502 = vst [vmem:[#allocation88_spill] sm:$0xff] %v10560_v8 }
 0x2b1   :  { %2864 = vmatpush2.bf16.msra.mxu0 %v10531_v55  ;;  %2905 = vmatpush2.bf16.msra.mxu1 %v10536_v10 }
 0x2b2   :  { %2865 = vmatprep.subr.bf16.mxu0 %v10543_v19  ;;  %2906 = vmatprep.subr.bf16.mxu1 %v10548_v52 }
 0x2b5   :  { %2866 = vmatpush2.bf16.msra.mxu0 %v10555_v54  ;;  %2907 = vmatpush2.bf16.msra.mxu1 %v10560_v8 }
 0x2b6   :  { %3145 = vmatprep.subr.bf16.mxu0 %v9948_v35  ;;  %3186 = vmatprep.subr.bf16.mxu1 %v9953_v36 }
 0x318   :  { %v2054_v10 = vpop.f32.mrf.mxu0  ;;  %v2095_v55 = vpop.f32.mrf.mxu1 }
 0x319   :  { %v2055_v57 = vadd.f32 %v2054_v10, %v9962_v40  ;;  %v2096_v45 = vadd.f32 %v2095_v55, %v9977_v59 }
 0x31a   :  { %v2056_v51 = vpop.f32.mrf.mxu0  ;;  %v2097_v50 = vpop.f32.mrf.mxu1 }
 0x31b   :  { %v7407_v49 = vmul.f32 -1.442695, %v2055_v57  ;;  %v2057_v48 = vadd.f32 %v2056_v51, %v9966_v42  ;;  %v2098_v35 = vadd.f32 %v2097_v50, %v9972_v56  ;;  %v12504_v56 = vld [vmem:[#allocation27_spill] sm:$0xff] }
 0x31c   :  { %v2058_v19 = vpop.f32.mrf.mxu0  ;;  %v2099_v47 = vpop.f32.mrf.mxu1 }
 0x31d   :  { %8750 = vpow2.f32 %v7407_v49  ;;  %v7408_v52 = vmul.f32 -1.442695, %v2057_v48  ;;  %v7409_v8 = vmul.f32 -1.442695, %v2098_v35  ;;  %v12503_v48 = vld [vmem:[#allocation25_spill] sm:$0xff] }
 0x31e   :  { %v2059_v54 = vpop.f32.mrf.mxu0  ;;  %v2100_v46 = vpop.f32.mrf.mxu1 }
 0x31f   :  { %8752 = vpow2.f32 %v7408_v52 }
 0x320   :  { %8754 = vpow2.f32 %v7409_v8 }
 0x32a   :  { %v8751_v36 = vpop.eup %8750 }
 0x32b   :  { %v2106_v44 = vadd.f32 1.0, %v8751_v36 }
 0x32c   :  { %v8753_v10 = vpop.eup %8752 }
 0x32d   :  { %8756 = vrcp.f32 %v2106_v44  ;;  %v2112_v57 = vadd.f32 1.0, %v8753_v10  ;;  %v8755_v49 = vpop.eup %8754 }
 0x32e   :  { %8758 = vtanh.f32 %v2096_v45  ;;  %v2119_v36 = vadd.f32 1.0, %v8755_v49 }
 0x32f   :  { %8760 = vrcp.f32 %v2112_v57 }
 0x338   :  { %v2364_v51 = vpop.f32.mrf.mxu0  ;;  %v2405_v47 = vpop.f32.mrf.mxu1 }
 0x339   :  { %v2412_v54 = vadd.f32 %v2364_v51, %v12503_v48  ;;  %v12505_v48 = vld [vmem:[#allocation28_spill] sm:$0xff] }
 0x33a   :  { %v8757_v46 = vpop.eup %8756  ;;  %v2366_v52 = vpop.f32.mrf.mxu0 }
 0x33b   :  { %v2407_v19 = vpop.f32.mrf.mxu1  ;;  %v8759_v50 = vpop.eup %8758  ;;  %v7442_v35 = vmul.f32 -1.442695, %v2412_v54  ;;  %v2413_v42 = vadd.f32 %v2366_v52, %v12504_v56  ;;  %v12506_v56 = vld [vmem:[#allocation26_spill] sm:$0xff] }
 0x33c   :  { %v8761_v55 = vpop.eup %8760  ;;  %v2368_v59 = vpop.f32.mrf.mxu0  ;;  %v2123_v44 = vmul.f32 %v8759_v50, %v8757_v46  ;;  %v2415_v54 = vadd.f32 %v2407_v19, %v12505_v48  ;;  %v2414_v52 = vadd.f32 %v2405_v47, %v12506_v56 }
 0x33d   :  { %v2409_v8 = vpop.f32.mrf.mxu1  ;;  %v2122_v45 = vmul.f32 %v8761_v55, %v9985_v26  ;;  %8762 = vpow2.f32 %v7442_v35  ;;  %v7443_v10 = vmul.f32 -1.442695, %v2413_v42 }
 0x33e   :  { %v2369_v57 = vpop.f32.mrf.mxu0  ;;  %v7444_v49 = vmul.f32 -1.442695, %v2415_v54 }
 0x33f   :  { %v2410_v40 = vpop.f32.mrf.mxu1  ;;  %8764 = vpow2.f32 %v7443_v10  ;;  %v10575_v51 = vadd.f32 %v2123_v44, %v2122_v45 }
 0x340   :  { %8766 = vrcp.f32 %v2119_v36 }
 0x341   :  { %8768 = vtanh.f32 %v10575_v51 }
 0x342   :  { %8770 = vtanh.f32 %v2414_v52 }
 0x343   :  { %8772 = vpow2.f32 %v7444_v49  ;;  %v12548_v49 = vld [vmem:[#allocation75_spill] sm:$0xff] }
 0x34a   :  { %v8763_v59 = vpop.eup %8762 }
 0x34b   :  { %v2420_v8 = vadd.f32 1.0, %v8763_v59  ;;  %v12549_v59 = vld [vmem:[#allocation77_spill] sm:$0xff] }
 0x34c   :  { %v8765_v46 = vpop.eup %8764 }
 0x34d   :  { %v8767_v26 = vpop.eup %8766  ;;  %8774 = vrcp.f32 %v2420_v8  ;;  %v2426_v42 = vadd.f32 1.0, %v8765_v46  ;;  %v12550_v8 = vld [vmem:[#allocation78_spill] sm:$0xff]  ;;  %v12551_v46 = vld [vmem:[#allocation79_spill] sm:$0xff] }
 0x34e   :  { %v8769_v40 = vpop.eup %8768 }
 0x34f   :  { %8776 = vrcp.f32 %v2426_v42  ;;  %v2126_v50 = vmul.f32 %v8769_v40, %v8767_v26  ;;  %v8771_v55 = vpop.eup %8770  ;;  %v12552_v26 = vld [vmem:[#allocation80_spill] sm:$0xff]  ;;  %v12553_v42 = vld [vmem:[#allocation81_spill] sm:$0xff]  ;;  %v12554_v40 = vld [vmem:[#allocation82_spill] sm:$0xff] }
 0x350   :  { %v8773_v36 = vpop.eup %8772 }
 0x351   :  { %v2446_v35 = vpack.c.bf16 %v2126_v50, %v2126_v50  ;;  %v2433_v45 = vadd.f32 1.0, %v8773_v36  ;;  %v12555_v50 = vld [vmem:[#allocation83_spill] sm:$0xff]  ;;  %v12558_v36 = vld [vmem:[#allocation86_spill] sm:$0xff] }
 0x353   :  { %2867 = vmatprep.mubr.bf16.mxu0 %v2446_v35  ;;  %2908 = vmatprep.mubr.bf16.mxu1 %v2446_v35  ;;  %8778 = vrcp.f32 %v2433_v45  ;;  %v12556_v35 = vld [vmem:[#allocation84_spill] sm:$0xff] }
 0x354   :  { %v10688_v45 = vld [vmem:[%s12170_s2 + $0xec] ss:$16 sps:$4 sm:$0xff]  }
 0x35a   :  { %v8775_v19 = vpop.eup %8774 }
 0x35b   :  { %v2437_v44 = vmul.f32 %v8775_v19, %v8771_v55  ;;  %v12557_v55 = vld [vmem:[#allocation85_spill] sm:$0xff]  ;;  %v12559_v19 = vld [vmem:[#allocation87_spill] sm:$0xff] }
 0x35c   :  { %v8777_v47 = vpop.eup %8776 }
 0x35d   :  { %v2436_v10 = vmul.f32 %v8777_v47, %v9991_v53  ;;  %v12507_v53 = vld [vmem:[#allocation11_spill] sm:$0xff] }
 0x35e   :  { %v10683_v47 = vld [vmem:[%s12170_s2 + $0xe4] ss:$16 sps:$4 sm:$0xff]  }
 0x35f   :  { %v10581_v57 = vadd.f32 %v2437_v44, %v2436_v10  ;;  %v12560_v44 = vld [vmem:[#allocation88_spill] sm:$0xff] }
 0x360   :  { %v8779_v48 = vpop.eup %8778 }
 0x361   :  { %8780 = vtanh.f32 %v10581_v57 }
 0x36e   :  { %v8781_v54 = vpop.eup %8780 }
 0x36f   :  { %v2440_v56 = vmul.f32 %v8781_v54, %v8779_v48  ;;  %v12561_v54 = vld [vmem:[#allocation7_spill] sm:$0xff] }
 0x371   :  { %v2445_v52 = vpack.c.bf16 %v2440_v56, %v2440_v56 }
 0x373   :  { %2868 = vmatmul.mubr.bf16.vlgmr.msra.gmra.mxu0 %v2445_v52  ;;  %2909 = vmatmul.mubr.bf16.vlgmr.msra.gmra.mxu1 %v2445_v52 }
 0x374   :  { %3146 = vmatpush1.bf16.msra.mxu0 %v9997_v58  ;;  %3187 = vmatpush1.bf16.msra.mxu1 %v10002_v60  ;;  %v12508_v58 = vld [vmem:[#allocation12_spill] sm:$0xff]  ;;  %v12509_v60 = vld [vmem:[#allocation13_spill] sm:$0xff] }
 0x375   :  { %3147 = vmatprep.subr.bf16.mxu0 %v10009_v63  ;;  %3188 = vmatprep.subr.bf16.mxu1 %v10014_v16  ;;  %v12510_v63 = vld [vmem:[#allocation14_spill] sm:$0xff]  ;;  %v12511_v16 = vld [vmem:[#allocation15_spill] sm:$0xff] }
 0x376   :  { %3177 = vmatprep.mubr.bf16.mxu0 %v12422_v9  ;;  %3218 = vmatprep.mubr.bf16.mxu1 %v12422_v9 }
 0x378   :  { %3148 = vmatpush1.bf16.msra.mxu0 %v10023_v11  ;;  %3189 = vmatpush1.bf16.msra.mxu1 %v10028_v3  ;;  %v12512_v11 = vld [vmem:[#allocation16_spill] sm:$0xff]  ;;  %v12513_v3 = vld [vmem:[#allocation17_spill] sm:$0xff] }
 0x379   :  { %3149 = vmatprep.subr.bf16.mxu0 %v10035_v6  ;;  %3190 = vmatprep.subr.bf16.mxu1 %v10040_v7  ;;  %v12514_v6 = vld [vmem:[#allocation18_spill] sm:$0xff]  ;;  %v12515_v7 = vld [vmem:[#allocation19_spill] sm:$0xff] }
 0x37c   :  { %3150 = vmatpush1.bf16.msra.mxu0 %v10049_v17  ;;  %3191 = vmatpush1.bf16.msra.mxu1 %v10054_v15  ;;  %v12516_v17 = vld [vmem:[#allocation20_spill] sm:$0xff]  ;;  %v12517_v15 = vld [vmem:[#allocation21_spill] sm:$0xff] }
 0x37d   :  { %3151 = vmatprep.subr.bf16.mxu0 %v10061_v61  ;;  %3192 = vmatprep.subr.bf16.mxu1 %v10066_v14  ;;  %v12518_v61 = vld [vmem:[#allocation23_spill] sm:$0xff]  ;;  %v12519_v14 = vld [vmem:[#allocation24_spill] sm:$0xff] }
 0x380   :  { %3152 = vmatpush1.bf16.msra.mxu0 %v10073_v62  ;;  %3193 = vmatpush1.bf16.msra.mxu1 %v10078_v12  ;;  %v12520_v62 = vld [vmem:[#allocation22_spill] sm:$0xff]  ;;  %v12521_v12 = vld [vmem:[#allocation49_spill] sm:$0xff] }
 0x381   :  { %3153 = vmatprep.subr.bf16.mxu0 %v10085_v34  ;;  %3194 = vmatprep.subr.bf16.mxu1 %v10090_v13  ;;  %v12522_v34 = vld [vmem:[#allocation50_spill] sm:$0xff]  ;;  %v12523_v13 = vld [vmem:[#allocation51_spill] sm:$0xff] }
 0x384   :  { %3154 = vmatpush1.bf16.msra.mxu0 %v10097_v5  ;;  %3195 = vmatpush1.bf16.msra.mxu1 %v10102_v18  ;;  %v12524_v5 = vld [vmem:[#allocation52_spill] sm:$0xff]  ;;  %v12525_v18 = vld [vmem:[#allocation53_spill] sm:$0xff] }
 0x385   :  { %3155 = vmatprep.subr.bf16.mxu0 %v10109_v33  ;;  %3196 = vmatprep.subr.bf16.mxu1 %v10114_v0  ;;  %v12526_v33 = vld [vmem:[#allocation54_spill] sm:$0xff]  ;;  %v12527_v0 = vld [vmem:[#allocation55_spill] sm:$0xff] }
 0x388   :  { %3156 = vmatpush1.bf16.msra.mxu0 %v10121_v4  ;;  %3197 = vmatpush1.bf16.msra.mxu1 %v10126_v2  ;;  %v12528_v4 = vld [vmem:[#allocation56_spill] sm:$0xff]  ;;  %v12529_v2 = vld [vmem:[#allocation57_spill] sm:$0xff] }
 0x389   :  { %3157 = vmatprep.subr.bf16.mxu0 %v10133_v1  ;;  %3198 = vmatprep.subr.bf16.mxu1 %v10138_v20  ;;  %v12530_v1 = vld [vmem:[#allocation58_spill] sm:$0xff]  ;;  %v12531_v20 = vld [vmem:[#allocation59_spill] sm:$0xff] }
 0x38c   :  { %3158 = vmatpush1.bf16.msra.mxu0 %v10145_v21  ;;  %3199 = vmatpush1.bf16.msra.mxu1 %v10150_v22  ;;  %v12532_v21 = vld [vmem:[#allocation60_spill] sm:$0xff]  ;;  %v12533_v22 = vld [vmem:[#allocation61_spill] sm:$0xff] }
 0x38d   :  { %3159 = vmatprep.subr.bf16.mxu0 %v10157_v23  ;;  %3200 = vmatprep.subr.bf16.mxu1 %v10162_v24  ;;  %v12534_v23 = vld [vmem:[#allocation62_spill] sm:$0xff]  ;;  %v12535_v24 = vld [vmem:[#allocation63_spill] sm:$0xff] }
 0x390   :  { %3160 = vmatpush1.bf16.msra.mxu0 %v10169_v25  ;;  %3201 = vmatpush1.bf16.msra.mxu1 %v10174_v27  ;;  %v12536_v25 = vld [vmem:[#allocation64_spill] sm:$0xff]  ;;  %v12537_v27 = vld [vmem:[#allocation65_spill] sm:$0xff] }
 0x391   :  { %3650 = vmatprep.subr.bf16.mxu0 %v10185_v28  ;;  %3691 = vmatprep.subr.bf16.mxu1 %v10190_v29  ;;  %v12538_v28 = vld [vmem:[#allocation66_spill] sm:$0xff]  ;;  %v12539_v29 = vld [vmem:[#allocation67_spill] sm:$0xff] }
 0x393   :  { %3178 = vmatmul.mubr.bf16.vlgmr.msra.gmra.mxu0 %v2445_v52  ;;  %3219 = vmatmul.mubr.bf16.vlgmr.msra.gmra.mxu1 %v2445_v52 }
 0x394   :  { %3651 = vmatpush1.bf16.msra.mxu0 %v10195_v30  ;;  %3692 = vmatpush1.bf16.msra.mxu1 %v10200_v31  ;;  %v12540_v30 = vld [vmem:[#allocation68_spill] sm:$0xff]  ;;  %v12541_v31 = vld [vmem:[#allocation69_spill] sm:$0xff] }
 0x395   :  { %3652 = vmatprep.subr.bf16.mxu0 %v10209_v32  ;;  %3693 = vmatprep.subr.bf16.mxu1 %v10214_v37  ;;  %v12542_v32 = vld [vmem:[#allocation70_spill] sm:$0xff]  ;;  %v12543_v37 = vld [vmem:[#allocation71_spill] sm:$0xff] }
 0x398   :  { %3653 = vmatpush1.bf16.msra.mxu0 %v10219_v38  ;;  %3694 = vmatpush1.bf16.msra.mxu1 %v10224_v39  ;;  %v12544_v38 = vld [vmem:[#allocation72_spill] sm:$0xff]  ;;  %v12545_v39 = vld [vmem:[#allocation73_spill] sm:$0xff] }
 0x399   :  { %3654 = vmatprep.subr.bf16.mxu0 %v10233_v41  ;;  %3695 = vmatprep.subr.bf16.mxu1 %v10238_v43  ;;  %v12546_v41 = vld [vmem:[#allocation76_spill] sm:$0xff]  ;;  %v12547_v43 = vld [vmem:[#allocation74_spill] sm:$0xff] }
 0x39c   :  { %3655 = vmatpush1.bf16.msra.mxu0 %v12507_v53  ;;  %3696 = vmatpush1.bf16.msra.mxu1 %v12508_v58 }
 0x39d   :  { %3656 = vmatprep.subr.bf16.mxu0 %v12509_v60  ;;  %3697 = vmatprep.subr.bf16.mxu1 %v12510_v63  ;;  %v12562_v60 = vld [vmem:[#allocation8_spill] sm:$0xff] }
 0x3a0   :  { %3657 = vmatpush1.bf16.msra.mxu0 %v12511_v16  ;;  %3698 = vmatpush1.bf16.msra.mxu1 %v12512_v11 }
 0x3a1   :  { %3658 = vmatprep.subr.bf16.mxu0 %v12513_v3  ;;  %3699 = vmatprep.subr.bf16.mxu1 %v12514_v6 }
 0x3a4   :  { %3659 = vmatpush1.bf16.msra.mxu0 %v12515_v7  ;;  %3700 = vmatpush1.bf16.msra.mxu1 %v12516_v17  ;;  %v12563_v17 = vld [vmem:[#allocation9_spill] sm:$0xff] }
 0x3a5   :  { %3660 = vmatprep.subr.bf16.mxu0 %v12517_v15  ;;  %3701 = vmatprep.subr.bf16.mxu1 %v12518_v61 }
 0x3a8   :  { %3661 = vmatpush1.bf16.msra.mxu0 %v12519_v14  ;;  %3702 = vmatpush1.bf16.msra.mxu1 %v12520_v62  ;;  %v12564_v62 = vld [vmem:[#allocation10_spill] sm:$0xff] }
 0x3a9   :  { %3662 = vmatprep.subr.bf16.mxu0 %v12521_v12  ;;  %3703 = vmatprep.subr.bf16.mxu1 %v12522_v34 }
 0x3ac   :  { %3663 = vmatpush1.bf16.msra.mxu0 %v12523_v13  ;;  %3704 = vmatpush1.bf16.msra.mxu1 %v12524_v5 }
 0x3ad   :  { %3664 = vmatprep.subr.bf16.mxu0 %v12525_v18  ;;  %3705 = vmatprep.subr.bf16.mxu1 %v12526_v33 }
 0x3b0   :  { %3665 = vmatpush1.bf16.msra.mxu0 %v12527_v0  ;;  %3706 = vmatpush1.bf16.msra.mxu1 %v12528_v4  ;;  %v12565_v4 = vld [vmem:[#allocation29_spill] sm:$0xff] }
 0x3b1   :  { %3666 = vmatprep.subr.bf16.mxu0 %v12529_v2  ;;  %3707 = vmatprep.subr.bf16.mxu1 %v12530_v1 }
 0x3b4   :  { %3667 = vmatpush2.bf16.msra.mxu0 %v12531_v20  ;;  %3708 = vmatpush2.bf16.msra.mxu1 %v12532_v21 }
 0x3b5   :  { %3668 = vmatprep.subr.bf16.mxu0 %v12533_v22  ;;  %3709 = vmatprep.subr.bf16.mxu1 %v12534_v23 }
 0x3b8   :  { %3669 = vmatpush2.bf16.msra.mxu0 %v12535_v24  ;;  %3710 = vmatpush2.bf16.msra.mxu1 %v12536_v25  ;;  %v12566_v24 = vld [vmem:[#allocation31_spill] sm:$0xff] }
 0x3b9   :  { %3670 = vmatprep.subr.bf16.mxu0 %v12537_v27  ;;  %3711 = vmatprep.subr.bf16.mxu1 %v12538_v28 }
 0x3bc   :  { %3671 = vmatpush2.bf16.msra.mxu0 %v12539_v29  ;;  %3712 = vmatpush2.bf16.msra.mxu1 %v12540_v30 }
 0x3bd   :  { %3672 = vmatprep.subr.bf16.mxu0 %v12541_v31  ;;  %3713 = vmatprep.subr.bf16.mxu1 %v12542_v32 }
 0x3c0   :  { %3673 = vmatpush2.bf16.msra.mxu0 %v12543_v37  ;;  %3714 = vmatpush2.bf16.msra.mxu1 %v12544_v38 }
 0x3c1   :  { %3674 = vmatprep.subr.bf16.mxu0 %v12545_v39  ;;  %3715 = vmatprep.subr.bf16.mxu1 %v12546_v41 }
 0x3c4   :  { %3675 = vmatpush2.bf16.msra.mxu0 %v12547_v43  ;;  %3716 = vmatpush2.bf16.msra.mxu1 %v12548_v49  ;;  %v12567_v43 = vld [vmem:[#allocation32_spill] sm:$0xff] }
 0x3c5   :  { %3676 = vmatprep.subr.bf16.mxu0 %v12549_v59  ;;  %3717 = vmatprep.subr.bf16.mxu1 %v12550_v8  ;;  %v12568_v59 = vld [vmem:[#allocation30_spill] sm:$0xff] }
 0x3c8   :  { %3677 = vmatpush2.bf16.msra.mxu0 %v12551_v46  ;;  %3718 = vmatpush2.bf16.msra.mxu1 %v12552_v26 }
 0x3c9   :  { %3678 = vmatprep.subr.bf16.mxu0 %v12553_v42  ;;  %3719 = vmatprep.subr.bf16.mxu1 %v12554_v40 }
 0x3cc   :  { %3679 = vmatpush2.bf16.msra.mxu0 %v12555_v50  ;;  %3720 = vmatpush2.bf16.msra.mxu1 %v12556_v35 }
 0x3cd   :  { %3680 = vmatprep.subr.bf16.mxu0 %v12557_v55  ;;  %3721 = vmatprep.subr.bf16.mxu1 %v12558_v36 }
 0x3d0   :  { %3681 = vmatpush2.bf16.msra.mxu0 %v12559_v19  ;;  %3722 = vmatpush2.bf16.msra.mxu1 %v12560_v44 }
 0x3d1   :  { %3960 = vmatprep.subr.bf16.mxu0 %v10683_v47  ;;  %4001 = vmatprep.subr.bf16.mxu1 %v10688_v45 }
 0x433   :  { %v2869_v10 = vpop.f32.mrf.mxu0  ;;  %v2910_v48 = vpop.f32.mrf.mxu1 }
 0x434   :  { %v2870_v56 = vadd.f32 %v2869_v10, %v12561_v54  ;;  %v2911_v12 = vadd.f32 %v2910_v48, %v12564_v62 }
 0x435   :  { %v2871_v52 = vpop.f32.mrf.mxu0  ;;  %v2912_v53 = vpop.f32.mrf.mxu1 }
 0x436   :  { %v7509_v58 = vmul.f32 -1.442695, %v2870_v56  ;;  %v2872_v63 = vadd.f32 %v2871_v52, %v12562_v60  ;;  %v2913_v15 = vadd.f32 %v2912_v53, %v12563_v17 }
 0x437   :  { %v2873_v16 = vpop.f32.mrf.mxu0  ;;  %v2914_v11 = vpop.f32.mrf.mxu1 }
 0x438   :  { %8782 = vpow2.f32 %v7509_v58  ;;  %v7510_v3 = vmul.f32 -1.442695, %v2872_v63  ;;  %v7511_v61 = vmul.f32 -1.442695, %v2913_v15  ;;  %v10728_v15 = vld [vmem:[%s12170_s2 + $0xcc] ss:$16 sps:$4 sm:$0xff]  }
 0x439   :  { %v2874_v6 = vpop.f32.mrf.mxu0  ;;  %v2915_v7 = vpop.f32.mrf.mxu1 }
 0x43a   :  { %8784 = vpow2.f32 %v7510_v3  ;;  %v10711_v3 = vld [vmem:[%s12170_s2 + $0xe0] ss:$16 sps:$4 sm:$0xff]   ;;  %v10716_v6 = vld [vmem:[%s12170_s2 + $0xe8] ss:$16 sps:$4 sm:$0xff]  }
 0x43b   :  { %8786 = vpow2.f32 %v7511_v61  ;;  %v10737_v61 = vld [vmem:[%s12170_s2 + $0xc0] ss:$16 sps:$4 sm:$0xff]  }
 0x445   :  { %v8783_v14 = vpop.eup %8782 }
 0x446   :  { %v2921_v34 = vadd.f32 1.0, %v8783_v14  ;;  %v10742_v14 = vld [vmem:[%s12170_s2 + $0xc8] ss:$16 sps:$4 sm:$0xff]  }
 0x447   :  { %v8785_v13 = vpop.eup %8784 }
 0x448   :  { %8788 = vrcp.f32 %v2921_v34  ;;  %v2927_v5 = vadd.f32 1.0, %v8785_v13  ;;  %v8787_v0 = vpop.eup %8786  ;;  %v10754_v34 = vld [vmem:[%s12170_s2 + $0xac] ss:$16 sps:$4 sm:$0xff]   ;;  %v10763_v13 = vld [vmem:[%s12170_s2 + $0xa0] ss:$16 sps:$4 sm:$0xff]  }
 0x449   :  { %8790 = vtanh.f32 %v2911_v12  ;;  %v2934_v28 = vadd.f32 1.0, %v8787_v0  ;;  %v10749_v12 = vld [vmem:[%s12170_s2 + $0xa4] ss:$16 sps:$4 sm:$0xff]   ;;  %v10787_v0 = vld [vmem:[%s12170_s2 + $0x80] ss:$16 sps:$4 sm:$0xff]  }
 0x44a   :  { %8792 = vrcp.f32 %v2927_v5  ;;  %v10768_v5 = vld [vmem:[%s12170_s2 + $0xa8] ss:$16 sps:$4 sm:$0xff]  }
 0x453   :  { %v3179_v18 = vpop.f32.mrf.mxu0  ;;  %v3220_v33 = vpop.f32.mrf.mxu1 }
 0x454   :  { %v3227_v2 = vadd.f32 %v3179_v18, %v12565_v4  ;;  %v3229_v8 = vadd.f32 %v3220_v33, %v12568_v59  ;;  %v10775_v18 = vld [vmem:[%s12170_s2 + $0x84] ss:$16 sps:$4 sm:$0xff]   ;;  %v10780_v33 = vld [vmem:[%s12170_s2 + $0x8c] ss:$16 sps:$4 sm:$0xff]   ;;  %v10792_v4 = vld [vmem:[%s12170_s2 + $0x88] ss:$16 sps:$4 sm:$0xff]  }
 0x455   :  { %v8789_v1 = vpop.eup %8788  ;;  %v3181_v20 = vpop.f32.mrf.mxu0  ;;  %v10914_v59 = vld [vmem:[%s12172_s4 + $0xe8] ss:$16 sps:$4 sm:$0xff]  }
 0x456   :  { %v3222_v21 = vpop.f32.mrf.mxu1  ;;  %v8791_v22 = vpop.eup %8790  ;;  %v7544_v23 = vmul.f32 -1.442695, %v3227_v2  ;;  %v3228_v25 = vadd.f32 %v3181_v20, %v12566_v24  ;;  %v10799_v2 = vld [vmem:[%s12170_s2 + $0x64] ss:$16 sps:$4 sm:$0xff]   ;;  %v10811_v20 = vld [vmem:[%s12170_s2 + $0x60] ss:$16 sps:$4 sm:$0xff]  }
 0x457   :  { %v8793_v27 = vpop.eup %8792  ;;  %v3183_v29 = vpop.f32.mrf.mxu0  ;;  %v2938_v31 = vmul.f32 %v8791_v22, %v8789_v1  ;;  %v3230_v49 = vadd.f32 %v3222_v21, %v12567_v43  ;;  %v10804_v1 = vld [vmem:[%s12170_s2 + $0x6c] ss:$16 sps:$4 sm:$0xff]   ;;  %v10816_v21 = vld [vmem:[%s12170_s2 + $0x68] ss:$16 sps:$4 sm:$0xff]   ;;  %v10823_v22 = vld [vmem:[%s12170_s2 + $0x44] ss:$16 sps:$4 sm:$0xff]  }
 0x458   :  { %v3224_v30 = vpop.f32.mrf.mxu1  ;;  %v2937_v32 = vmul.f32 %v8793_v27, %v10575_v51  ;;  %8794 = vpow2.f32 %v7544_v23  ;;  %v7545_v37 = vmul.f32 -1.442695, %v3228_v25  ;;  %v10828_v23 = vld [vmem:[%s12170_s2 + $0x4c] ss:$16 sps:$4 sm:$0xff]   ;;  %v10835_v24 = vld [vmem:[%s12170_s2 + $0x40] ss:$16 sps:$4 sm:$0xff]  }
 0x459   :  { %v3184_v38 = vpop.f32.mrf.mxu0  ;;  %v7546_v46 = vmul.f32 -1.442695, %v3230_v49  ;;  %v10840_v25 = vld [vmem:[%s12170_s2 + $0x48] ss:$16 sps:$4 sm:$0xff]   ;;  %v10847_v27 = vld [vmem:[%s12170_s2 + $0x24] ss:$16 sps:$4 sm:$0xff]  }
 0x45a   :  { %v3225_v39 = vpop.f32.mrf.mxu1  ;;  %8796 = vpow2.f32 %v7545_v37  ;;  %v10699_v41 = vadd.f32 %v2938_v31, %v2937_v32  ;;  %v10859_v29 = vld [vmem:[%s12170_s2 + $0x20] ss:$16 sps:$4 sm:$0xff]   ;;  %v10864_v30 = vld [vmem:[%s12170_s2 + $0x28] ss:$16 sps:$4 sm:$0xff]   ;;  %v10871_v31 = vld [vmem:[%s12170_s2 + $0x4] ss:$16 sps:$4 sm:$0xff]  }
 0x45b   :  { %8798 = vrcp.f32 %v2934_v28  ;;  %v10852_v28 = vld [vmem:[%s12170_s2 + $0x2c] ss:$16 sps:$4 sm:$0xff]   ;;  %v10883_v37 = vld [vmem:[%s12170_s2] ss:$16 sps:$4 sm:$0xff]   ;;  %v10888_v38 = vld [vmem:[%s12170_s2 + $0x8] ss:$16 sps:$4 sm:$0xff]  }
 0x45c   :  { %8800 = vtanh.f32 %v10699_v41  ;;  %v10876_v32 = vld [vmem:[%s12170_s2 + $0xc] ss:$16 sps:$4 sm:$0xff]   ;;  %v10899_v39 = vld [vmem:[%s12172_s4 + $0xe4] ss:$16 sps:$4 sm:$0xff]   ;;  %v10909_v49 = vld [vmem:[%s12172_s4 + $0xe0] ss:$16 sps:$4 sm:$0xff]  }
 0x45d   :  { %8802 = vtanh.f32 %v3229_v8  ;;  %v10904_v43 = vld [vmem:[%s12172_s4 + $0xec] ss:$16 sps:$4 sm:$0xff]   ;;  %v10923_v8 = vld [vmem:[%s12172_s4 + $0xc4] ss:$16 sps:$4 sm:$0xff]  }
 0x45e   :  { %8804 = vpow2.f32 %v7546_v46  ;;  %v10928_v46 = vld [vmem:[%s12172_s4 + $0xcc] ss:$16 sps:$4 sm:$0xff]  }
 0x465   :  { %v8795_v26 = vpop.eup %8794 }
 0x466   :  { %v3235_v42 = vadd.f32 1.0, %v8795_v26  ;;  %v10933_v26 = vld [vmem:[%s12172_s4 + $0xc0] ss:$16 sps:$4 sm:$0xff]  }
 0x467   :  { %v8797_v40 = vpop.eup %8796 }
 0x468   :  { %v8799_v51 = vpop.eup %8798  ;;  %8806 = vrcp.f32 %v3235_v42  ;;  %v3241_v50 = vadd.f32 1.0, %v8797_v40  ;;  %v10938_v42 = vld [vmem:[%s12172_s4 + $0xc8] ss:$16 sps:$4 sm:$0xff]   ;;  %v10947_v40 = vld [vmem:[%s12172_s4 + $0xa4] ss:$16 sps:$4 sm:$0xff]  }
 0x469   :  { %v8801_v35 = vpop.eup %8800 }
 0x46a   :  { %8808 = vrcp.f32 %v3241_v50  ;;  %v2941_v55 = vmul.f32 %v8801_v35, %v8799_v51  ;;  %v8803_v19 = vpop.eup %8802  ;;  %v10952_v51 = vld [vmem:[%s12172_s4 + $0xac] ss:$16 sps:$4 sm:$0xff]   ;;  %v10957_v50 = vld [vmem:[%s12172_s4 + $0xa0] ss:$16 sps:$4 sm:$0xff]   ;;  %v10962_v35 = vld [vmem:[%s12172_s4 + $0xa8] ss:$16 sps:$4 sm:$0xff]  }
 0x46b   :  { %v8805_v44 = vpop.eup %8804  ;;  %12569 = vst [vmem:[#allocation25_spill] sm:$0xff] %v10957_v50  ;;  %12570 = vst [vmem:[#allocation27_spill] sm:$0xff] %v10962_v35 }
 0x46c   :  { %v3261_v36 = vpack.c.bf16 %v2941_v55, %v2941_v55  ;;  %v3248_v52 = vadd.f32 1.0, %v8805_v44  ;;  %v10971_v55 = vld [vmem:[%s12172_s4 + $0x84] ss:$16 sps:$4 sm:$0xff]   ;;  %v10986_v44 = vld [vmem:[%s12172_s4 + $0x88] ss:$16 sps:$4 sm:$0xff]  }
 0x46d   :  { %12571 = vst [vmem:[#allocation28_spill] sm:$0xff] %v10971_v55  ;;  %12574 = vst [vmem:[#allocation12_spill] sm:$0xff] %v10986_v44 }
 0x46e   :  { %3682 = vmatprep.mubr.bf16.mxu0 %v3261_v36  ;;  %3723 = vmatprep.mubr.bf16.mxu1 %v3261_v36  ;;  %8810 = vrcp.f32 %v3248_v52  ;;  %v10976_v36 = vld [vmem:[%s12172_s4 + $0x8c] ss:$16 sps:$4 sm:$0xff]   ;;  %v11010_v52 = vld [vmem:[%s12172_s4 + $0x68] ss:$16 sps:$4 sm:$0xff]  }
 0x46f   :  { %12572 = vst [vmem:[#allocation26_spill] sm:$0xff] %v10976_v36  ;;  %12578 = vst [vmem:[#allocation16_spill] sm:$0xff] %v11010_v52 }
 0x475   :  { %v8807_v10 = vpop.eup %8806 }
 0x476   :  { %v3252_v48 = vmul.f32 %v8807_v10, %v8803_v19  ;;  %v10981_v19 = vld [vmem:[%s12172_s4 + $0x80] ss:$16 sps:$4 sm:$0xff]   ;;  %v10995_v10 = vld [vmem:[%s12172_s4 + $0x64] ss:$16 sps:$4 sm:$0xff]  }
 0x477   :  { %v8809_v56 = vpop.eup %8808  ;;  %12573 = vst [vmem:[#allocation11_spill] sm:$0xff] %v10981_v19  ;;  %12575 = vst [vmem:[#allocation13_spill] sm:$0xff] %v10995_v10 }
 0x478   :  { %v3251_v53 = vmul.f32 %v8809_v56, %v10581_v57  ;;  %v10723_v57 = vld [vmem:[%s12170_s2 + $0xc4] ss:$16 sps:$4 sm:$0xff]   ;;  %v11005_v56 = vld [vmem:[%s12172_s4 + $0x60] ss:$16 sps:$4 sm:$0xff]  }
 0x479   :  { %12577 = vst [vmem:[#allocation15_spill] sm:$0xff] %v11005_v56 }
 0x47a   :  { %v10705_v58 = vadd.f32 %v3252_v48, %v3251_v53  ;;  %v11000_v48 = vld [vmem:[%s12172_s4 + $0x6c] ss:$16 sps:$4 sm:$0xff]   ;;  %v11019_v53 = vld [vmem:[%s12172_s4 + $0x44] ss:$16 sps:$4 sm:$0xff]  }
 0x47b   :  { %v8811_v63 = vpop.eup %8810  ;;  %12576 = vst [vmem:[#allocation14_spill] sm:$0xff] %v11000_v48  ;;  %12579 = vst [vmem:[#allocation17_spill] sm:$0xff] %v11019_v53 }
 0x47c   :  { %8812 = vtanh.f32 %v10705_v58 }
 0x489   :  { %v8813_v16 = vpop.eup %8812 }
 0x48a   :  { %v3255_v11 = vmul.f32 %v8813_v16, %v8811_v63  ;;  %v11024_v63 = vld [vmem:[%s12172_s4 + $0x4c] ss:$16 sps:$4 sm:$0xff]   ;;  %v11029_v16 = vld [vmem:[%s12172_s4 + $0x40] ss:$16 sps:$4 sm:$0xff]  }
 0x48b   :  { %12580 = vst [vmem:[#allocation18_spill] sm:$0xff] %v11024_v63  ;;  %12581 = vst [vmem:[#allocation19_spill] sm:$0xff] %v11029_v16 }
 0x48c   :  { %v10718_v7 = vpack.c.bf16 %v3255_v11, %v3255_v11  ;;  %v11034_v11 = vld [vmem:[%s12172_s4 + $0x48] ss:$16 sps:$4 sm:$0xff]  }
 0x48d   :  { %12582 = vst [vmem:[#allocation20_spill] sm:$0xff] %v11034_v11 }
 0x48e   :  { %3683 = vmatmul.mubr.bf16.vlgmr.msra.gmra.mxu0 %v10718_v7  ;;  %3724 = vmatmul.mubr.bf16.vlgmr.msra.gmra.mxu1 %v10718_v7 }
 0x48f   :  { %3961 = vmatpush1.bf16.msra.mxu0 %v10711_v3  ;;  %4002 = vmatpush1.bf16.msra.mxu1 %v10716_v6 }
 0x490   :  { %3962 = vmatprep.subr.bf16.mxu0 %v10723_v57  ;;  %4003 = vmatprep.subr.bf16.mxu1 %v10728_v15 }
 0x491   :  { %3992 = vmatprep.mubr.bf16.mxu0 %v12422_v9  ;;  %4033 = vmatprep.mubr.bf16.mxu1 %v12422_v9 }
 0x493   :  { %3963 = vmatpush1.bf16.msra.mxu0 %v10737_v61  ;;  %4004 = vmatpush1.bf16.msra.mxu1 %v10742_v14 }
 0x494   :  { %3964 = vmatprep.subr.bf16.mxu0 %v10749_v12  ;;  %4005 = vmatprep.subr.bf16.mxu1 %v10754_v34 }
 0x497   :  { %3965 = vmatpush1.bf16.msra.mxu0 %v10763_v13  ;;  %4006 = vmatpush1.bf16.msra.mxu1 %v10768_v5 }
 0x498   :  { %3966 = vmatprep.subr.bf16.mxu0 %v10775_v18  ;;  %4007 = vmatprep.subr.bf16.mxu1 %v10780_v33 }
 0x49b   :  { %3967 = vmatpush1.bf16.msra.mxu0 %v10787_v0  ;;  %4008 = vmatpush1.bf16.msra.mxu1 %v10792_v4 }
 0x49c   :  { %3968 = vmatprep.subr.bf16.mxu0 %v10799_v2  ;;  %4009 = vmatprep.subr.bf16.mxu1 %v10804_v1 }
 0x49f   :  { %3969 = vmatpush1.bf16.msra.mxu0 %v10811_v20  ;;  %4010 = vmatpush1.bf16.msra.mxu1 %v10816_v21 }
 0x4a0   :  { %3970 = vmatprep.subr.bf16.mxu0 %v10823_v22  ;;  %4011 = vmatprep.subr.bf16.mxu1 %v10828_v23 }
 0x4a3   :  { %3971 = vmatpush1.bf16.msra.mxu0 %v10835_v24  ;;  %4012 = vmatpush1.bf16.msra.mxu1 %v10840_v25 }
 0x4a4   :  { %3972 = vmatprep.subr.bf16.mxu0 %v10847_v27  ;;  %4013 = vmatprep.subr.bf16.mxu1 %v10852_v28 }
 0x4a7   :  { %3973 = vmatpush1.bf16.msra.mxu0 %v10859_v29  ;;  %4014 = vmatpush1.bf16.msra.mxu1 %v10864_v30 }
 0x4a8   :  { %3974 = vmatprep.subr.bf16.mxu0 %v10871_v31  ;;  %4015 = vmatprep.subr.bf16.mxu1 %v10876_v32 }
 0x4ab   :  { %3975 = vmatpush1.bf16.msra.mxu0 %v10883_v37  ;;  %4016 = vmatpush1.bf16.msra.mxu1 %v10888_v38 }
 0x4ac   :  { %4465 = vmatprep.subr.bf16.mxu0 %v10899_v39  ;;  %4506 = vmatprep.subr.bf16.mxu1 %v10904_v43 }
 0x4ae   :  { %3993 = vmatmul.mubr.bf16.vlgmr.msra.gmra.mxu0 %v10718_v7  ;;  %4034 = vmatmul.mubr.bf16.vlgmr.msra.gmra.mxu1 %v10718_v7  ;;  %v11043_v7 = vld [vmem:[%s12172_s4 + $0x24] ss:$16 sps:$4 sm:$0xff]  }
 0x4af   :  { %4466 = vmatpush1.bf16.msra.mxu0 %v10909_v49  ;;  %4507 = vmatpush1.bf16.msra.mxu1 %v10914_v59  ;;  %12583 = vst [vmem:[#allocation21_spill] sm:$0xff] %v11043_v7 }
 0x4b0   :  { %4467 = vmatprep.subr.bf16.mxu0 %v10923_v8  ;;  %4508 = vmatprep.subr.bf16.mxu1 %v10928_v46 }
 0x4b3   :  { %4468 = vmatpush1.bf16.msra.mxu0 %v10933_v26  ;;  %4509 = vmatpush1.bf16.msra.mxu1 %v10938_v42 }
 0x4b4   :  { %4469 = vmatprep.subr.bf16.mxu0 %v10947_v40  ;;  %4510 = vmatprep.subr.bf16.mxu1 %v10952_v51 }
 0x4b7   :  { %4470 = vmatpush1.bf16.msra.mxu0 %v10957_v50  ;;  %4511 = vmatpush1.bf16.msra.mxu1 %v10962_v35 }
 0x4b8   :  { %4471 = vmatprep.subr.bf16.mxu0 %v10971_v55  ;;  %4512 = vmatprep.subr.bf16.mxu1 %v10976_v36 }
 0x4bb   :  { %4472 = vmatpush1.bf16.msra.mxu0 %v10981_v19  ;;  %4513 = vmatpush1.bf16.msra.mxu1 %v10986_v44 }
 0x4bc   :  { %4473 = vmatprep.subr.bf16.mxu0 %v10995_v10  ;;  %4514 = vmatprep.subr.bf16.mxu1 %v11000_v48 }
 0x4bf   :  { %4474 = vmatpush1.bf16.msra.mxu0 %v11005_v56  ;;  %4515 = vmatpush1.bf16.msra.mxu1 %v11010_v52  ;;  %v11048_v52 = vld [vmem:[%s12172_s4 + $0x2c] ss:$16 sps:$4 sm:$0xff]   ;;  %v11226_v56 = vld [vmem:[%s12172_s4 + $0x148] ss:$16 sps:$4 sm:$0xff]  }
 0x4c0   :  { %4475 = vmatprep.subr.bf16.mxu0 %v11019_v53  ;;  %4516 = vmatprep.subr.bf16.mxu1 %v11024_v63  ;;  %12584 = vst [vmem:[#allocation23_spill] sm:$0xff] %v11048_v52  ;;  %v11053_v53 = vld [vmem:[%s12172_s4 + $0x20] ss:$16 sps:$4 sm:$0xff]   ;;  %v11072_v63 = vld [vmem:[%s12172_s4 + $0xc] ss:$16 sps:$4 sm:$0xff]   ;;  %12614 = vst [vmem:[#allocation75_spill] sm:$0xff] %v11226_v56 }
 0x4c1   :  { %12585 = vst [vmem:[#allocation24_spill] sm:$0xff] %v11053_v53  ;;  %12588 = vst [vmem:[#allocation50_spill] sm:$0xff] %v11072_v63 }
 0x4c3   :  { %4476 = vmatpush1.bf16.msra.mxu0 %v11029_v16  ;;  %4517 = vmatpush1.bf16.msra.mxu1 %v11034_v11  ;;  %v11058_v16 = vld [vmem:[%s12172_s4 + $0x28] ss:$16 sps:$4 sm:$0xff]   ;;  %v11067_v11 = vld [vmem:[%s12172_s4 + $0x4] ss:$16 sps:$4 sm:$0xff]  }
 0x4c4   :  { %12586 = vst [vmem:[#allocation22_spill] sm:$0xff] %v11058_v16  ;;  %4477 = vmatprep.subr.bf16.mxu0 %v11043_v7  ;;  %4518 = vmatprep.subr.bf16.mxu1 %v11048_v52  ;;  %12587 = vst [vmem:[#allocation49_spill] sm:$0xff] %v11067_v11  ;;  %v11077_v7 = vld [vmem:[%s12172_s4] ss:$16 sps:$4 sm:$0xff]   ;;  %v11096_v52 = vld [vmem:[%s12172_s4 + $0x1ec] ss:$16 sps:$4 sm:$0xff]  }
 0x4c5   :  { %12589 = vst [vmem:[#allocation51_spill] sm:$0xff] %v11077_v7  ;;  %12592 = vst [vmem:[#allocation54_spill] sm:$0xff] %v11096_v52 }
 0x4c7   :  { %4478 = vmatpush1.bf16.msra.mxu0 %v11053_v53  ;;  %4519 = vmatpush1.bf16.msra.mxu1 %v11058_v16  ;;  %v11082_v53 = vld [vmem:[%s12172_s4 + $0x8] ss:$16 sps:$4 sm:$0xff]   ;;  %v11091_v16 = vld [vmem:[%s12172_s4 + $0x1e4] ss:$16 sps:$4 sm:$0xff]  }
 0x4c8   :  { %12590 = vst [vmem:[#allocation52_spill] sm:$0xff] %v11082_v53  ;;  %4479 = vmatprep.subr.bf16.mxu0 %v11067_v11  ;;  %4520 = vmatprep.subr.bf16.mxu1 %v11072_v63  ;;  %12591 = vst [vmem:[#allocation53_spill] sm:$0xff] %v11091_v16  ;;  %v11101_v11 = vld [vmem:[%s12172_s4 + $0x1e0] ss:$16 sps:$4 sm:$0xff]   ;;  %v11120_v63 = vld [vmem:[%s12172_s4 + $0x1cc] ss:$16 sps:$4 sm:$0xff]  }
 0x4c9   :  { %12593 = vst [vmem:[#allocation55_spill] sm:$0xff] %v11101_v11  ;;  %12596 = vst [vmem:[#allocation58_spill] sm:$0xff] %v11120_v63 }
 0x4cb   :  { %4480 = vmatpush1.bf16.msra.mxu0 %v11077_v7  ;;  %4521 = vmatpush1.bf16.msra.mxu1 %v11082_v53  ;;  %v11106_v7 = vld [vmem:[%s12172_s4 + $0x1e8] ss:$16 sps:$4 sm:$0xff]   ;;  %v11115_v53 = vld [vmem:[%s12172_s4 + $0x1c4] ss:$16 sps:$4 sm:$0xff]  }
 0x4cc   :  { %12594 = vst [vmem:[#allocation56_spill] sm:$0xff] %v11106_v7  ;;  %4481 = vmatprep.subr.bf16.mxu0 %v11091_v16  ;;  %4522 = vmatprep.subr.bf16.mxu1 %v11096_v52  ;;  %12595 = vst [vmem:[#allocation57_spill] sm:$0xff] %v11115_v53  ;;  %v11125_v16 = vld [vmem:[%s12172_s4 + $0x1c0] ss:$16 sps:$4 sm:$0xff]   ;;  %v11144_v52 = vld [vmem:[%s12172_s4 + $0x1ac] ss:$16 sps:$4 sm:$0xff]  }
 0x4cd   :  { %12597 = vst [vmem:[#allocation59_spill] sm:$0xff] %v11125_v16  ;;  %12600 = vst [vmem:[#allocation62_spill] sm:$0xff] %v11144_v52 }
 0x4cf   :  { %4482 = vmatpush2.bf16.msra.mxu0 %v11101_v11  ;;  %4523 = vmatpush2.bf16.msra.mxu1 %v11106_v7  ;;  %v11130_v11 = vld [vmem:[%s12172_s4 + $0x1c8] ss:$16 sps:$4 sm:$0xff]   ;;  %v11139_v7 = vld [vmem:[%s12172_s4 + $0x1a4] ss:$16 sps:$4 sm:$0xff]  }
 0x4d0   :  { %12598 = vst [vmem:[#allocation60_spill] sm:$0xff] %v11130_v11  ;;  %4483 = vmatprep.subr.bf16.mxu0 %v11115_v53  ;;  %4524 = vmatprep.subr.bf16.mxu1 %v11120_v63  ;;  %12599 = vst [vmem:[#allocation61_spill] sm:$0xff] %v11139_v7  ;;  %v11149_v53 = vld [vmem:[%s12172_s4 + $0x1a0] ss:$16 sps:$4 sm:$0xff]   ;;  %v11168_v63 = vld [vmem:[%s12172_s4 + $0x18c] ss:$16 sps:$4 sm:$0xff]  }
 0x4d1   :  { %12601 = vst [vmem:[#allocation63_spill] sm:$0xff] %v11149_v53  ;;  %12604 = vst [vmem:[#allocation66_spill] sm:$0xff] %v11168_v63 }
 0x4d3   :  { %4484 = vmatpush2.bf16.msra.mxu0 %v11125_v16  ;;  %4525 = vmatpush2.bf16.msra.mxu1 %v11130_v11  ;;  %v11154_v16 = vld [vmem:[%s12172_s4 + $0x1a8] ss:$16 sps:$4 sm:$0xff]   ;;  %v11163_v11 = vld [vmem:[%s12172_s4 + $0x184] ss:$16 sps:$4 sm:$0xff]  }
 0x4d4   :  { %12602 = vst [vmem:[#allocation64_spill] sm:$0xff] %v11154_v16  ;;  %4485 = vmatprep.subr.bf16.mxu0 %v11139_v7  ;;  %4526 = vmatprep.subr.bf16.mxu1 %v11144_v52  ;;  %12603 = vst [vmem:[#allocation65_spill] sm:$0xff] %v11163_v11  ;;  %v11173_v7 = vld [vmem:[%s12172_s4 + $0x180] ss:$16 sps:$4 sm:$0xff]  }
 0x4d5   :  { %12605 = vst [vmem:[#allocation67_spill] sm:$0xff] %v11173_v7  ;;  %v11192_v52 = vld [vmem:[%s12172_s4 + $0x160] ss:$16 sps:$4 sm:$0xff]  }
 0x4d6   :  { %12608 = vst [vmem:[#allocation70_spill] sm:$0xff] %v11192_v52 }
 0x4d7   :  { %4486 = vmatpush2.bf16.msra.mxu0 %v11149_v53  ;;  %4527 = vmatpush2.bf16.msra.mxu1 %v11154_v16  ;;  %v11178_v53 = vld [vmem:[%s12172_s4 + $0x188] ss:$16 sps:$4 sm:$0xff]   ;;  %v11185_v16 = vld [vmem:[%s12172_s4 + $0x164] ss:$16 sps:$4 sm:$0xff]  }
 0x4d8   :  { %12606 = vst [vmem:[#allocation68_spill] sm:$0xff] %v11178_v53  ;;  %4487 = vmatprep.subr.bf16.mxu0 %v11163_v11  ;;  %4528 = vmatprep.subr.bf16.mxu1 %v11168_v63  ;;  %12607 = vst [vmem:[#allocation69_spill] sm:$0xff] %v11185_v16  ;;  %v11197_v11 = vld [vmem:[%s12172_s4 + $0x168] ss:$16 sps:$4 sm:$0xff]   ;;  %v11202_v63 = vld [vmem:[%s12172_s4 + $0x16c] ss:$16 sps:$4 sm:$0xff]  }
 0x4d9   :  { %12609 = vst [vmem:[#allocation71_spill] sm:$0xff] %v11197_v11  ;;  %12610 = vst [vmem:[#allocation72_spill] sm:$0xff] %v11202_v63 }
 0x4db   :  { %4488 = vmatpush2.bf16.msra.mxu0 %v11173_v7  ;;  %4529 = vmatpush2.bf16.msra.mxu1 %v11178_v53  ;;  %v11208_v53 = vld [vmem:[%s12172_s4 + $0x144] ss:$16 sps:$4 sm:$0xff]   ;;  %v11213_v7 = vld [vmem:[%s12172_s4 + $0x14c] ss:$16 sps:$4 sm:$0xff]  }
 0x4dc   :  { %4489 = vmatprep.subr.bf16.mxu0 %v11185_v16  ;;  %12611 = vst [vmem:[#allocation73_spill] sm:$0xff] %v11208_v53  ;;  %12612 = vst [vmem:[#allocation76_spill] sm:$0xff] %v11213_v7  ;;  %4530 = vmatprep.subr.bf16.mxu1 %v11202_v63  ;;  %v11221_v16 = vld [vmem:[%s12172_s4 + $0x140] ss:$16 sps:$4 sm:$0xff]  }
 0x4dd   :  { %12613 = vst [vmem:[#allocation74_spill] sm:$0xff] %v11221_v16 }
 0x4df   :  { %4490 = vmatpush2.bf16.msra.mxu0 %v11192_v52  ;;  %4531 = vmatpush2.bf16.msra.mxu1 %v11197_v11  ;;  %v11233_v52 = vld [vmem:[%s12172_s4 + $0x124] ss:$16 sps:$4 sm:$0xff]   ;;  %v11238_v11 = vld [vmem:[%s12172_s4 + $0x12c] ss:$16 sps:$4 sm:$0xff]  }
 0x4e0   :  { %4491 = vmatprep.subr.bf16.mxu0 %v11208_v53  ;;  %4532 = vmatprep.subr.bf16.mxu1 %v11213_v7  ;;  %12615 = vst [vmem:[#allocation77_spill] sm:$0xff] %v11233_v52  ;;  %12616 = vst [vmem:[#allocation78_spill] sm:$0xff] %v11238_v11  ;;  %v11245_v53 = vld [vmem:[%s12172_s4 + $0x120] ss:$16 sps:$4 sm:$0xff]   ;;  %v11250_v7 = vld [vmem:[%s12172_s4 + $0x128] ss:$16 sps:$4 sm:$0xff]  }
 0x4e1   :  { %12617 = vst [vmem:[#allocation79_spill] sm:$0xff] %v11245_v53  ;;  %12618 = vst [vmem:[#allocation80_spill] sm:$0xff] %v11250_v7 }
 0x4e3   :  { %4492 = vmatpush2.bf16.msra.mxu0 %v11221_v16  ;;  %4533 = vmatpush2.bf16.msra.mxu1 %v11226_v56  ;;  %v11257_v16 = vld [vmem:[%s12172_s4 + $0x104] ss:$16 sps:$4 sm:$0xff]   ;;  %v11262_v56 = vld [vmem:[%s12172_s4 + $0x10c] ss:$16 sps:$4 sm:$0xff]  }
 0x4e4   :  { %4493 = vmatprep.subr.bf16.mxu0 %v11233_v52  ;;  %4534 = vmatprep.subr.bf16.mxu1 %v11238_v11  ;;  %12619 = vst [vmem:[#allocation81_spill] sm:$0xff] %v11257_v16  ;;  %12620 = vst [vmem:[#allocation82_spill] sm:$0xff] %v11262_v56  ;;  %v11269_v52 = vld [vmem:[%s12172_s4 + $0x100] ss:$16 sps:$4 sm:$0xff]   ;;  %v11274_v11 = vld [vmem:[%s12172_s4 + $0x108] ss:$16 sps:$4 sm:$0xff]  }
 0x4e5   :  { %12621 = vst [vmem:[#allocation83_spill] sm:$0xff] %v11269_v52  ;;  %12622 = vst [vmem:[#allocation84_spill] sm:$0xff] %v11274_v11 }
 0x4e7   :  { %4494 = vmatpush2.bf16.msra.mxu0 %v11245_v53  ;;  %4535 = vmatpush2.bf16.msra.mxu1 %v11250_v7 }
 0x4e8   :  { %4495 = vmatprep.subr.bf16.mxu0 %v11257_v16  ;;  %4536 = vmatprep.subr.bf16.mxu1 %v11262_v56 }
 0x4eb   :  { %4496 = vmatpush2.bf16.msra.mxu0 %v11269_v52  ;;  %4537 = vmatpush2.bf16.msra.mxu1 %v11274_v11 }
 0x4ec   :  { %4775 = vmatprep.subr.bf16.mxu0 %v10683_v47  ;;  %4816 = vmatprep.subr.bf16.mxu1 %v10688_v45 }
 0x54e   :  { %v3684_v7 = vpop.f32.mrf.mxu0  ;;  %v3725_v53 = vpop.f32.mrf.mxu1 }
 0x54f   :  { %v3685_v63 = vadd.f32 %v3684_v7, %v12561_v54  ;;  %v3726_v35 = vadd.f32 %v3725_v53, %v12564_v62 }
 0x550   :  { %v3686_v48 = vpop.f32.mrf.mxu0  ;;  %v3727_v10 = vpop.f32.mrf.mxu1 }
 0x551   :  { %v7611_v44 = vmul.f32 -1.442695, %v3685_v63  ;;  %v3687_v19 = vadd.f32 %v3686_v48, %v12562_v60  ;;  %v3728_v47 = vadd.f32 %v3727_v10, %v12563_v17  ;;  %v12624_v17 = vld [vmem:[#allocation35_spill] sm:$0xff] }
 0x552   :  { %v3688_v16 = vpop.f32.mrf.mxu0  ;;  %v3729_v36 = vpop.f32.mrf.mxu1 }
 0x553   :  { %8814 = vpow2.f32 %v7611_v44  ;;  %v7612_v56 = vmul.f32 -1.442695, %v3687_v19  ;;  %v7613_v11 = vmul.f32 -1.442695, %v3728_v47  ;;  %v12623_v19 = vld [vmem:[#allocation33_spill] sm:$0xff] }
 0x554   :  { %v3689_v52 = vpop.f32.mrf.mxu0  ;;  %v3730_v55 = vpop.f32.mrf.mxu1 }
 0x555   :  { %8816 = vpow2.f32 %v7612_v56 }
 0x556   :  { %8818 = vpow2.f32 %v7613_v11 }
 0x560   :  { %v8815_v45 = vpop.eup %8814 }
 0x561   :  { %v3736_v50 = vadd.f32 1.0, %v8815_v45 }
 0x562   :  { %v8817_v7 = vpop.eup %8816 }
 0x563   :  { %8820 = vrcp.f32 %v3736_v50  ;;  %v3742_v63 = vadd.f32 1.0, %v8817_v7  ;;  %v8819_v44 = vpop.eup %8818 }
 0x564   :  { %8822 = vtanh.f32 %v3726_v35  ;;  %v3749_v45 = vadd.f32 1.0, %v8819_v44 }
 0x565   :  { %8824 = vrcp.f32 %v3742_v63 }
 0x56e   :  { %v3994_v48 = vpop.f32.mrf.mxu0  ;;  %v4035_v36 = vpop.f32.mrf.mxu1 }
 0x56f   :  { %v4042_v52 = vadd.f32 %v3994_v48, %v12623_v19  ;;  %v12625_v19 = vld [vmem:[#allocation36_spill] sm:$0xff] }
 0x570   :  { %v8821_v55 = vpop.eup %8820  ;;  %v3996_v56 = vpop.f32.mrf.mxu0 }
 0x571   :  { %v4037_v16 = vpop.f32.mrf.mxu1  ;;  %v8823_v10 = vpop.eup %8822  ;;  %v7646_v47 = vmul.f32 -1.442695, %v4042_v52  ;;  %v4043_v60 = vadd.f32 %v3996_v56, %v12624_v17  ;;  %v12626_v17 = vld [vmem:[#allocation34_spill] sm:$0xff] }
 0x572   :  { %v8825_v53 = vpop.eup %8824  ;;  %v3998_v62 = vpop.f32.mrf.mxu0  ;;  %v3753_v50 = vmul.f32 %v8823_v10, %v8821_v55  ;;  %v4045_v52 = vadd.f32 %v4037_v16, %v12625_v19  ;;  %v4044_v56 = vadd.f32 %v4035_v36, %v12626_v17 }
 0x573   :  { %v4039_v11 = vpop.f32.mrf.mxu1  ;;  %v3752_v35 = vmul.f32 %v8825_v53, %v10699_v41  ;;  %8826 = vpow2.f32 %v7646_v47  ;;  %v7647_v7 = vmul.f32 -1.442695, %v4043_v60 }
 0x574   :  { %v3999_v63 = vpop.f32.mrf.mxu0  ;;  %v7648_v44 = vmul.f32 -1.442695, %v4045_v52 }
 0x575   :  { %v4040_v54 = vpop.f32.mrf.mxu1  ;;  %8828 = vpow2.f32 %v7647_v7  ;;  %v11289_v48 = vadd.f32 %v3753_v50, %v3752_v35 }
 0x576   :  { %8830 = vrcp.f32 %v3749_v45 }
 0x577   :  { %8832 = vtanh.f32 %v11289_v48 }
 0x578   :  { %8834 = vtanh.f32 %v4044_v56 }
 0x579   :  { %8836 = vpow2.f32 %v7648_v44  ;;  %v12668_v44 = vld [vmem:[#allocation71_spill] sm:$0xff] }
 0x580   :  { %v8827_v62 = vpop.eup %8826 }
 0x581   :  { %v4050_v11 = vadd.f32 1.0, %v8827_v62  ;;  %v12669_v62 = vld [vmem:[#allocation73_spill] sm:$0xff] }
 0x582   :  { %v8829_v55 = vpop.eup %8828 }
 0x583   :  { %v8831_v41 = vpop.eup %8830  ;;  %8838 = vrcp.f32 %v4050_v11  ;;  %v4056_v60 = vadd.f32 1.0, %v8829_v55  ;;  %v12670_v11 = vld [vmem:[#allocation76_spill] sm:$0xff]  ;;  %v12671_v55 = vld [vmem:[#allocation74_spill] sm:$0xff] }
 0x584   :  { %v8833_v54 = vpop.eup %8832 }
 0x585   :  { %8840 = vrcp.f32 %v4056_v60  ;;  %v3756_v10 = vmul.f32 %v8833_v54, %v8831_v41  ;;  %v8835_v53 = vpop.eup %8834  ;;  %v12672_v41 = vld [vmem:[#allocation75_spill] sm:$0xff]  ;;  %v12673_v60 = vld [vmem:[#allocation77_spill] sm:$0xff]  ;;  %v12674_v54 = vld [vmem:[#allocation78_spill] sm:$0xff] }
 0x586   :  { %v8837_v45 = vpop.eup %8836 }
 0x587   :  { %v4076_v47 = vpack.c.bf16 %v3756_v10, %v3756_v10  ;;  %v4063_v35 = vadd.f32 1.0, %v8837_v45  ;;  %v12675_v10 = vld [vmem:[#allocation79_spill] sm:$0xff]  ;;  %v12678_v45 = vld [vmem:[#allocation82_spill] sm:$0xff] }
 0x589   :  { %4497 = vmatprep.mubr.bf16.mxu0 %v4076_v47  ;;  %4538 = vmatprep.mubr.bf16.mxu1 %v4076_v47  ;;  %8842 = vrcp.f32 %v4063_v35  ;;  %v12676_v47 = vld [vmem:[#allocation80_spill] sm:$0xff] }
 0x58a   :  { %v11402_v35 = vld [vmem:[%s12170_s2 + $0xec] ss:$16 sps:$4 sm:$0xff]  }
 0x590   :  { %v8839_v16 = vpop.eup %8838 }
 0x591   :  { %v4067_v50 = vmul.f32 %v8839_v16, %v8835_v53  ;;  %v12677_v53 = vld [vmem:[#allocation81_spill] sm:$0xff]  ;;  %v12679_v16 = vld [vmem:[#allocation83_spill] sm:$0xff] }
 0x592   :  { %v8841_v36 = vpop.eup %8840 }
 0x593   :  { %v4066_v7 = vmul.f32 %v8841_v36, %v10705_v58  ;;  %v12627_v58 = vld [vmem:[#allocation25_spill] sm:$0xff] }
 0x594   :  { %v11397_v36 = vld [vmem:[%s12170_s2 + $0xe4] ss:$16 sps:$4 sm:$0xff]  }
 0x595   :  { %v11295_v63 = vadd.f32 %v4067_v50, %v4066_v7  ;;  %v12680_v50 = vld [vmem:[#allocation84_spill] sm:$0xff] }
 0x596   :  { %v8843_v19 = vpop.eup %8842 }
 0x597   :  { %8844 = vtanh.f32 %v11295_v63 }
 0x5a4   :  { %v8845_v52 = vpop.eup %8844 }
 0x5a5   :  { %v4070_v17 = vmul.f32 %v8845_v52, %v8843_v19  ;;  %v12681_v52 = vld [vmem:[#allocation7_spill] sm:$0xff] }
 0x5a7   :  { %v4075_v56 = vpack.c.bf16 %v4070_v17, %v4070_v17 }
 0x5a9   :  { %4498 = vmatmul.mubr.bf16.vlgmr.msra.gmra.mxu0 %v4075_v56  ;;  %4539 = vmatmul.mubr.bf16.vlgmr.msra.gmra.mxu1 %v4075_v56 }
 0x5aa   :  { %4776 = vmatpush1.bf16.msra.mxu0 %v10711_v3  ;;  %4817 = vmatpush1.bf16.msra.mxu1 %v10716_v6  ;;  %v12628_v3 = vld [vmem:[#allocation27_spill] sm:$0xff]  ;;  %v12629_v6 = vld [vmem:[#allocation28_spill] sm:$0xff] }
 0x5ab   :  { %4777 = vmatprep.subr.bf16.mxu0 %v10723_v57  ;;  %4818 = vmatprep.subr.bf16.mxu1 %v10728_v15  ;;  %v12630_v57 = vld [vmem:[#allocation26_spill] sm:$0xff]  ;;  %v12631_v15 = vld [vmem:[#allocation11_spill] sm:$0xff] }
 0x5ac   :  { %4807 = vmatprep.mubr.bf16.mxu0 %v12422_v9  ;;  %4848 = vmatprep.mubr.bf16.mxu1 %v12422_v9 }
 0x5ae   :  { %4778 = vmatpush1.bf16.msra.mxu0 %v10737_v61  ;;  %4819 = vmatpush1.bf16.msra.mxu1 %v10742_v14  ;;  %v12632_v61 = vld [vmem:[#allocation12_spill] sm:$0xff]  ;;  %v12633_v14 = vld [vmem:[#allocation13_spill] sm:$0xff] }
 0x5af   :  { %4779 = vmatprep.subr.bf16.mxu0 %v10749_v12  ;;  %4820 = vmatprep.subr.bf16.mxu1 %v10754_v34  ;;  %v12634_v12 = vld [vmem:[#allocation14_spill] sm:$0xff]  ;;  %v12635_v34 = vld [vmem:[#allocation15_spill] sm:$0xff] }
 0x5b2   :  { %4780 = vmatpush1.bf16.msra.mxu0 %v10763_v13  ;;  %4821 = vmatpush1.bf16.msra.mxu1 %v10768_v5  ;;  %v12636_v13 = vld [vmem:[#allocation16_spill] sm:$0xff]  ;;  %v12637_v5 = vld [vmem:[#allocation17_spill] sm:$0xff] }
 0x5b3   :  { %4781 = vmatprep.subr.bf16.mxu0 %v10775_v18  ;;  %4822 = vmatprep.subr.bf16.mxu1 %v10780_v33  ;;  %v12638_v18 = vld [vmem:[#allocation18_spill] sm:$0xff]  ;;  %v12639_v33 = vld [vmem:[#allocation19_spill] sm:$0xff] }
 0x5b6   :  { %4782 = vmatpush1.bf16.msra.mxu0 %v10787_v0  ;;  %4823 = vmatpush1.bf16.msra.mxu1 %v10792_v4  ;;  %v12640_v0 = vld [vmem:[#allocation20_spill] sm:$0xff]  ;;  %v12641_v4 = vld [vmem:[#allocation21_spill] sm:$0xff] }
 0x5b7   :  { %4783 = vmatprep.subr.bf16.mxu0 %v10799_v2  ;;  %4824 = vmatprep.subr.bf16.mxu1 %v10804_v1  ;;  %v12642_v2 = vld [vmem:[#allocation23_spill] sm:$0xff]  ;;  %v12643_v1 = vld [vmem:[#allocation24_spill] sm:$0xff] }
 0x5ba   :  { %4784 = vmatpush1.bf16.msra.mxu0 %v10811_v20  ;;  %4825 = vmatpush1.bf16.msra.mxu1 %v10816_v21  ;;  %v12644_v20 = vld [vmem:[#allocation22_spill] sm:$0xff]  ;;  %v12645_v21 = vld [vmem:[#allocation49_spill] sm:$0xff] }
 0x5bb   :  { %4785 = vmatprep.subr.bf16.mxu0 %v10823_v22  ;;  %4826 = vmatprep.subr.bf16.mxu1 %v10828_v23  ;;  %v12646_v22 = vld [vmem:[#allocation50_spill] sm:$0xff]  ;;  %v12647_v23 = vld [vmem:[#allocation51_spill] sm:$0xff] }
 0x5be   :  { %4786 = vmatpush1.bf16.msra.mxu0 %v10835_v24  ;;  %4827 = vmatpush1.bf16.msra.mxu1 %v10840_v25  ;;  %v12648_v24 = vld [vmem:[#allocation52_spill] sm:$0xff]  ;;  %v12649_v25 = vld [vmem:[#allocation53_spill] sm:$0xff] }
 0x5bf   :  { %4787 = vmatprep.subr.bf16.mxu0 %v10847_v27  ;;  %4828 = vmatprep.subr.bf16.mxu1 %v10852_v28  ;;  %v12650_v27 = vld [vmem:[#allocation54_spill] sm:$0xff]  ;;  %v12651_v28 = vld [vmem:[#allocation55_spill] sm:$0xff] }
 0x5c2   :  { %4788 = vmatpush1.bf16.msra.mxu0 %v10859_v29  ;;  %4829 = vmatpush1.bf16.msra.mxu1 %v10864_v30  ;;  %v12652_v29 = vld [vmem:[#allocation56_spill] sm:$0xff]  ;;  %v12653_v30 = vld [vmem:[#allocation57_spill] sm:$0xff] }
 0x5c3   :  { %4789 = vmatprep.subr.bf16.mxu0 %v10871_v31  ;;  %4830 = vmatprep.subr.bf16.mxu1 %v10876_v32  ;;  %v12654_v31 = vld [vmem:[#allocation58_spill] sm:$0xff]  ;;  %v12655_v32 = vld [vmem:[#allocation59_spill] sm:$0xff] }
 0x5c6   :  { %4790 = vmatpush1.bf16.msra.mxu0 %v10883_v37  ;;  %4831 = vmatpush1.bf16.msra.mxu1 %v10888_v38  ;;  %v12656_v37 = vld [vmem:[#allocation60_spill] sm:$0xff]  ;;  %v12657_v38 = vld [vmem:[#allocation61_spill] sm:$0xff] }
 0x5c7   :  { %5280 = vmatprep.subr.bf16.mxu0 %v10899_v39  ;;  %5321 = vmatprep.subr.bf16.mxu1 %v10904_v43  ;;  %v12658_v39 = vld [vmem:[#allocation62_spill] sm:$0xff]  ;;  %v12659_v43 = vld [vmem:[#allocation63_spill] sm:$0xff] }
 0x5c9   :  { %4808 = vmatmul.mubr.bf16.vlgmr.msra.gmra.mxu0 %v4075_v56  ;;  %4849 = vmatmul.mubr.bf16.vlgmr.msra.gmra.mxu1 %v4075_v56 }
 0x5ca   :  { %5281 = vmatpush1.bf16.msra.mxu0 %v10909_v49  ;;  %5322 = vmatpush1.bf16.msra.mxu1 %v10914_v59  ;;  %v12660_v49 = vld [vmem:[#allocation64_spill] sm:$0xff]  ;;  %v12661_v59 = vld [vmem:[#allocation65_spill] sm:$0xff] }
 0x5cb   :  { %5282 = vmatprep.subr.bf16.mxu0 %v10923_v8  ;;  %5323 = vmatprep.subr.bf16.mxu1 %v10928_v46  ;;  %v12662_v8 = vld [vmem:[#allocation66_spill] sm:$0xff]  ;;  %v12663_v46 = vld [vmem:[#allocation67_spill] sm:$0xff] }
 0x5ce   :  { %5283 = vmatpush1.bf16.msra.mxu0 %v10933_v26  ;;  %5324 = vmatpush1.bf16.msra.mxu1 %v10938_v42  ;;  %v12664_v26 = vld [vmem:[#allocation68_spill] sm:$0xff]  ;;  %v12665_v42 = vld [vmem:[#allocation69_spill] sm:$0xff] }
 0x5cf   :  { %5284 = vmatprep.subr.bf16.mxu0 %v10947_v40  ;;  %5325 = vmatprep.subr.bf16.mxu1 %v10952_v51  ;;  %v12666_v40 = vld [vmem:[#allocation72_spill] sm:$0xff]  ;;  %v12667_v51 = vld [vmem:[#allocation70_spill] sm:$0xff] }
 0x5d2   :  { %5285 = vmatpush1.bf16.msra.mxu0 %v12627_v58  ;;  %5326 = vmatpush1.bf16.msra.mxu1 %v12628_v3 }
 0x5d3   :  { %5286 = vmatprep.subr.bf16.mxu0 %v12629_v6  ;;  %5327 = vmatprep.subr.bf16.mxu1 %v12630_v57  ;;  %v12682_v6 = vld [vmem:[#allocation8_spill] sm:$0xff] }
 0x5d6   :  { %5287 = vmatpush1.bf16.msra.mxu0 %v12631_v15  ;;  %5328 = vmatpush1.bf16.msra.mxu1 %v12632_v61 }
 0x5d7   :  { %5288 = vmatprep.subr.bf16.mxu0 %v12633_v14  ;;  %5329 = vmatprep.subr.bf16.mxu1 %v12634_v12 }
 0x5da   :  { %5289 = vmatpush1.bf16.msra.mxu0 %v12635_v34  ;;  %5330 = vmatpush1.bf16.msra.mxu1 %v12636_v13  ;;  %v12683_v13 = vld [vmem:[#allocation9_spill] sm:$0xff] }
 0x5db   :  { %5290 = vmatprep.subr.bf16.mxu0 %v12637_v5  ;;  %5331 = vmatprep.subr.bf16.mxu1 %v12638_v18 }
 0x5de   :  { %5291 = vmatpush1.bf16.msra.mxu0 %v12639_v33  ;;  %5332 = vmatpush1.bf16.msra.mxu1 %v12640_v0  ;;  %v12684_v0 = vld [vmem:[#allocation10_spill] sm:$0xff] }
 0x5df   :  { %5292 = vmatprep.subr.bf16.mxu0 %v12641_v4  ;;  %5333 = vmatprep.subr.bf16.mxu1 %v12642_v2 }
 0x5e2   :  { %5293 = vmatpush1.bf16.msra.mxu0 %v12643_v1  ;;  %5334 = vmatpush1.bf16.msra.mxu1 %v12644_v20 }
 0x5e3   :  { %5294 = vmatprep.subr.bf16.mxu0 %v12645_v21  ;;  %5335 = vmatprep.subr.bf16.mxu1 %v12646_v22 }
 0x5e6   :  { %5295 = vmatpush1.bf16.msra.mxu0 %v12647_v23  ;;  %5336 = vmatpush1.bf16.msra.mxu1 %v12648_v24  ;;  %v12685_v24 = vld [vmem:[#allocation37_spill] sm:$0xff] }
 0x5e7   :  { %5296 = vmatprep.subr.bf16.mxu0 %v12649_v25  ;;  %5337 = vmatprep.subr.bf16.mxu1 %v12650_v27 }
 0x5ea   :  { %5297 = vmatpush2.bf16.msra.mxu0 %v12651_v28  ;;  %5338 = vmatpush2.bf16.msra.mxu1 %v12652_v29 }
 0x5eb   :  { %5298 = vmatprep.subr.bf16.mxu0 %v12653_v30  ;;  %5339 = vmatprep.subr.bf16.mxu1 %v12654_v31 }
 0x5ee   :  { %5299 = vmatpush2.bf16.msra.mxu0 %v12655_v32  ;;  %5340 = vmatpush2.bf16.msra.mxu1 %v12656_v37  ;;  %v12686_v32 = vld [vmem:[#allocation39_spill] sm:$0xff] }
 0x5ef   :  { %5300 = vmatprep.subr.bf16.mxu0 %v12657_v38  ;;  %5341 = vmatprep.subr.bf16.mxu1 %v12658_v39 }
 0x5f2   :  { %5301 = vmatpush2.bf16.msra.mxu0 %v12659_v43  ;;  %5342 = vmatpush2.bf16.msra.mxu1 %v12660_v49 }
 0x5f3   :  { %5302 = vmatprep.subr.bf16.mxu0 %v12661_v59  ;;  %5343 = vmatprep.subr.bf16.mxu1 %v12662_v8 }
 0x5f6   :  { %5303 = vmatpush2.bf16.msra.mxu0 %v12663_v46  ;;  %5344 = vmatpush2.bf16.msra.mxu1 %v12664_v26 }
 0x5f7   :  { %5304 = vmatprep.subr.bf16.mxu0 %v12665_v42  ;;  %5345 = vmatprep.subr.bf16.mxu1 %v12666_v40 }
 0x5fa   :  { %5305 = vmatpush2.bf16.msra.mxu0 %v12667_v51  ;;  %5346 = vmatpush2.bf16.msra.mxu1 %v12668_v44  ;;  %v12687_v51 = vld [vmem:[#allocation40_spill] sm:$0xff] }
 0x5fb   :  { %5306 = vmatprep.subr.bf16.mxu0 %v12669_v62  ;;  %5347 = vmatprep.subr.bf16.mxu1 %v12670_v11  ;;  %v12688_v62 = vld [vmem:[#allocation38_spill] sm:$0xff] }
 0x5fe   :  { %5307 = vmatpush2.bf16.msra.mxu0 %v12671_v55  ;;  %5348 = vmatpush2.bf16.msra.mxu1 %v12672_v41 }
 0x5ff   :  { %5308 = vmatprep.subr.bf16.mxu0 %v12673_v60  ;;  %5349 = vmatprep.subr.bf16.mxu1 %v12674_v54 }
 0x602   :  { %5309 = vmatpush2.bf16.msra.mxu0 %v12675_v10  ;;  %5350 = vmatpush2.bf16.msra.mxu1 %v12676_v47 }
 0x603   :  { %5310 = vmatprep.subr.bf16.mxu0 %v12677_v53  ;;  %5351 = vmatprep.subr.bf16.mxu1 %v12678_v45 }
 0x606   :  { %5311 = vmatpush2.bf16.msra.mxu0 %v12679_v16  ;;  %5352 = vmatpush2.bf16.msra.mxu1 %v12680_v50 }
 0x607   :  { %5590 = vmatprep.subr.bf16.mxu0 %v11397_v36  ;;  %5631 = vmatprep.subr.bf16.mxu1 %v11402_v35 }
 0x669   :  { %v4499_v7 = vpop.f32.mrf.mxu0  ;;  %v4540_v19 = vpop.f32.mrf.mxu1 }
 0x66a   :  { %v4500_v17 = vadd.f32 %v4499_v7, %v12681_v52  ;;  %v4541_v4 = vadd.f32 %v4540_v19, %v12684_v0 }
 0x66b   :  { %v4501_v56 = vpop.f32.mrf.mxu0  ;;  %v4542_v58 = vpop.f32.mrf.mxu1 }
 0x66c   :  { %v7713_v3 = vmul.f32 -1.442695, %v4500_v17  ;;  %v4502_v57 = vadd.f32 %v4501_v56, %v12682_v6  ;;  %v4543_v5 = vadd.f32 %v4542_v58, %v12683_v13 }
 0x66d   :  { %v4503_v15 = vpop.f32.mrf.mxu0  ;;  %v4544_v61 = vpop.f32.mrf.mxu1 }
 0x66e   :  { %8846 = vpow2.f32 %v7713_v3  ;;  %v7714_v14 = vmul.f32 -1.442695, %v4502_v57  ;;  %v7715_v18 = vmul.f32 -1.442695, %v4543_v5  ;;  %v11442_v5 = vld [vmem:[%s12170_s2 + $0xcc] ss:$16 sps:$4 sm:$0xff]  }
 0x66f   :  { %v4504_v12 = vpop.f32.mrf.mxu0  ;;  %v4545_v34 = vpop.f32.mrf.mxu1 }
 0x670   :  { %8848 = vpow2.f32 %v7714_v14  ;;  %v11425_v14 = vld [vmem:[%s12170_s2 + $0xe0] ss:$16 sps:$4 sm:$0xff]   ;;  %v11430_v12 = vld [vmem:[%s12170_s2 + $0xe8] ss:$16 sps:$4 sm:$0xff]  }
 0x671   :  { %8850 = vpow2.f32 %v7715_v18  ;;  %v11451_v18 = vld [vmem:[%s12170_s2 + $0xc0] ss:$16 sps:$4 sm:$0xff]  }
 0x67b   :  { %v8847_v33 = vpop.eup %8846 }
 0x67c   :  { %v4551_v2 = vadd.f32 1.0, %v8847_v33  ;;  %v11456_v33 = vld [vmem:[%s12170_s2 + $0xc8] ss:$16 sps:$4 sm:$0xff]  }
 0x67d   :  { %v8849_v1 = vpop.eup %8848 }
 0x67e   :  { %8852 = vrcp.f32 %v4551_v2  ;;  %v4557_v20 = vadd.f32 1.0, %v8849_v1  ;;  %v8851_v23 = vpop.eup %8850  ;;  %v11468_v2 = vld [vmem:[%s12170_s2 + $0xac] ss:$16 sps:$4 sm:$0xff]   ;;  %v11477_v1 = vld [vmem:[%s12170_s2 + $0xa0] ss:$16 sps:$4 sm:$0xff]  }
 0x67f   :  { %8854 = vtanh.f32 %v4541_v4  ;;  %v4564_v39 = vadd.f32 1.0, %v8851_v23  ;;  %v11463_v4 = vld [vmem:[%s12170_s2 + $0xa4] ss:$16 sps:$4 sm:$0xff]   ;;  %v11501_v23 = vld [vmem:[%s12170_s2 + $0x80] ss:$16 sps:$4 sm:$0xff]  }
 0x680   :  { %8856 = vrcp.f32 %v4557_v20  ;;  %v11482_v20 = vld [vmem:[%s12170_s2 + $0xa8] ss:$16 sps:$4 sm:$0xff]  }
 0x689   :  { %v4809_v21 = vpop.f32.mrf.mxu0  ;;  %v4850_v22 = vpop.f32.mrf.mxu1 }
 0x68a   :  { %v4857_v25 = vadd.f32 %v4809_v21, %v12685_v24  ;;  %v4859_v11 = vadd.f32 %v4850_v22, %v12688_v62  ;;  %v11489_v21 = vld [vmem:[%s12170_s2 + $0x84] ss:$16 sps:$4 sm:$0xff]   ;;  %v11494_v22 = vld [vmem:[%s12170_s2 + $0x8c] ss:$16 sps:$4 sm:$0xff]   ;;  %v11506_v24 = vld [vmem:[%s12170_s2 + $0x88] ss:$16 sps:$4 sm:$0xff]  }
 0x68b   :  { %v8853_v27 = vpop.eup %8852  ;;  %v4811_v28 = vpop.f32.mrf.mxu0  ;;  %v11628_v62 = vld [vmem:[%s12172_s4 + $0xe8] ss:$16 sps:$4 sm:$0xff]  }
 0x68c   :  { %v4852_v29 = vpop.f32.mrf.mxu1  ;;  %v8855_v30 = vpop.eup %8854  ;;  %v7748_v31 = vmul.f32 -1.442695, %v4857_v25  ;;  %v4858_v37 = vadd.f32 %v4811_v28, %v12686_v32  ;;  %v11513_v25 = vld [vmem:[%s12170_s2 + $0x64] ss:$16 sps:$4 sm:$0xff]   ;;  %v11525_v28 = vld [vmem:[%s12170_s2 + $0x60] ss:$16 sps:$4 sm:$0xff]  }
 0x68d   :  { %v8857_v38 = vpop.eup %8856  ;;  %v4813_v43 = vpop.f32.mrf.mxu0  ;;  %v4568_v59 = vmul.f32 %v8855_v30, %v8853_v27  ;;  %v4860_v44 = vadd.f32 %v4852_v29, %v12687_v51  ;;  %v11518_v27 = vld [vmem:[%s12170_s2 + $0x6c] ss:$16 sps:$4 sm:$0xff]   ;;  %v11530_v29 = vld [vmem:[%s12170_s2 + $0x68] ss:$16 sps:$4 sm:$0xff]   ;;  %v11537_v30 = vld [vmem:[%s12170_s2 + $0x44] ss:$16 sps:$4 sm:$0xff]  }
 0x68e   :  { %v4854_v49 = vpop.f32.mrf.mxu1  ;;  %v4567_v8 = vmul.f32 %v8857_v38, %v11289_v48  ;;  %8858 = vpow2.f32 %v7748_v31  ;;  %v7749_v46 = vmul.f32 -1.442695, %v4858_v37  ;;  %v11542_v31 = vld [vmem:[%s12170_s2 + $0x4c] ss:$16 sps:$4 sm:$0xff]   ;;  %v11549_v32 = vld [vmem:[%s12170_s2 + $0x40] ss:$16 sps:$4 sm:$0xff]  }
 0x68f   :  { %v4814_v26 = vpop.f32.mrf.mxu0  ;;  %v7750_v55 = vmul.f32 -1.442695, %v4860_v44  ;;  %v11554_v37 = vld [vmem:[%s12170_s2 + $0x48] ss:$16 sps:$4 sm:$0xff]   ;;  %v11561_v38 = vld [vmem:[%s12170_s2 + $0x24] ss:$16 sps:$4 sm:$0xff]  }
 0x690   :  { %v4855_v42 = vpop.f32.mrf.mxu1  ;;  %8860 = vpow2.f32 %v7749_v46  ;;  %v11413_v40 = vadd.f32 %v4568_v59, %v4567_v8  ;;  %v11573_v43 = vld [vmem:[%s12170_s2 + $0x20] ss:$16 sps:$4 sm:$0xff]   ;;  %v11578_v49 = vld [vmem:[%s12170_s2 + $0x28] ss:$16 sps:$4 sm:$0xff]   ;;  %v11585_v59 = vld [vmem:[%s12170_s2 + $0x4] ss:$16 sps:$4 sm:$0xff]  }
 0x691   :  { %8862 = vrcp.f32 %v4564_v39  ;;  %v11566_v39 = vld [vmem:[%s12170_s2 + $0x2c] ss:$16 sps:$4 sm:$0xff]   ;;  %v11597_v46 = vld [vmem:[%s12170_s2] ss:$16 sps:$4 sm:$0xff]   ;;  %v11602_v26 = vld [vmem:[%s12170_s2 + $0x8] ss:$16 sps:$4 sm:$0xff]  }
 0x692   :  { %8864 = vtanh.f32 %v11413_v40  ;;  %v11590_v8 = vld [vmem:[%s12170_s2 + $0xc] ss:$16 sps:$4 sm:$0xff]   ;;  %v11613_v42 = vld [vmem:[%s12172_s4 + $0xe4] ss:$16 sps:$4 sm:$0xff]   ;;  %v11623_v44 = vld [vmem:[%s12172_s4 + $0xe0] ss:$16 sps:$4 sm:$0xff]  }
 0x693   :  { %8866 = vtanh.f32 %v4859_v11  ;;  %v11618_v51 = vld [vmem:[%s12172_s4 + $0xec] ss:$16 sps:$4 sm:$0xff]   ;;  %v11637_v11 = vld [vmem:[%s12172_s4 + $0xc4] ss:$16 sps:$4 sm:$0xff]  }
 0x694   :  { %8868 = vpow2.f32 %v7750_v55  ;;  %v11642_v55 = vld [vmem:[%s12172_s4 + $0xcc] ss:$16 sps:$4 sm:$0xff]  }
 0x69b   :  { %v8859_v41 = vpop.eup %8858 }
 0x69c   :  { %v4865_v60 = vadd.f32 1.0, %v8859_v41  ;;  %v11647_v41 = vld [vmem:[%s12172_s4 + $0xc0] ss:$16 sps:$4 sm:$0xff]  }
 0x69d   :  { %v8861_v54 = vpop.eup %8860 }
 0x69e   :  { %v8863_v48 = vpop.eup %8862  ;;  %8870 = vrcp.f32 %v4865_v60  ;;  %v4871_v10 = vadd.f32 1.0, %v8861_v54  ;;  %v11652_v60 = vld [vmem:[%s12172_s4 + $0xc8] ss:$16 sps:$4 sm:$0xff]   ;;  %v11661_v54 = vld [vmem:[%s12172_s4 + $0xa4] ss:$16 sps:$4 sm:$0xff]  }
 0x69f   :  { %v8865_v47 = vpop.eup %8864 }
 0x6a0   :  { %8872 = vrcp.f32 %v4871_v10  ;;  %v4571_v53 = vmul.f32 %v8865_v47, %v8863_v48  ;;  %v8867_v16 = vpop.eup %8866  ;;  %v11666_v48 = vld [vmem:[%s12172_s4 + $0xac] ss:$16 sps:$4 sm:$0xff]   ;;  %v11671_v10 = vld [vmem:[%s12172_s4 + $0xa0] ss:$16 sps:$4 sm:$0xff]   ;;  %v11676_v47 = vld [vmem:[%s12172_s4 + $0xa8] ss:$16 sps:$4 sm:$0xff]  }
 0x6a1   :  { %v8869_v50 = vpop.eup %8868  ;;  %12689 = vst [vmem:[#allocation85_spill] sm:$0xff] %v11671_v10  ;;  %12690 = vst [vmem:[#allocation86_spill] sm:$0xff] %v11676_v47 }
 0x6a2   :  { %v4891_v45 = vpack.c.bf16 %v4571_v53, %v4571_v53  ;;  %v4878_v56 = vadd.f32 1.0, %v8869_v50  ;;  %v11685_v53 = vld [vmem:[%s12172_s4 + $0x84] ss:$16 sps:$4 sm:$0xff]   ;;  %v11700_v50 = vld [vmem:[%s12172_s4 + $0x88] ss:$16 sps:$4 sm:$0xff]  }
 0x6a3   :  { %12691 = vst [vmem:[#allocation87_spill] sm:$0xff] %v11685_v53  ;;  %12694 = vst [vmem:[#allocation31_spill] sm:$0xff] %v11700_v50 }
 0x6a4   :  { %5312 = vmatprep.mubr.bf16.mxu0 %v4891_v45  ;;  %5353 = vmatprep.mubr.bf16.mxu1 %v4891_v45  ;;  %8874 = vrcp.f32 %v4878_v56  ;;  %v11690_v45 = vld [vmem:[%s12172_s4 + $0x8c] ss:$16 sps:$4 sm:$0xff]   ;;  %v11724_v56 = vld [vmem:[%s12172_s4 + $0x68] ss:$16 sps:$4 sm:$0xff]  }
 0x6a5   :  { %12692 = vst [vmem:[#allocation88_spill] sm:$0xff] %v11690_v45  ;;  %12698 = vst [vmem:[#allocation35_spill] sm:$0xff] %v11724_v56 }
 0x6ab   :  { %v8871_v7 = vpop.eup %8870 }
 0x6ac   :  { %v4882_v19 = vmul.f32 %v8871_v7, %v8867_v16  ;;  %v11695_v16 = vld [vmem:[%s12172_s4 + $0x80] ss:$16 sps:$4 sm:$0xff]   ;;  %v11709_v7 = vld [vmem:[%s12172_s4 + $0x64] ss:$16 sps:$4 sm:$0xff]  }
 0x6ad   :  { %v8873_v17 = vpop.eup %8872  ;;  %12693 = vst [vmem:[#allocation29_spill] sm:$0xff] %v11695_v16  ;;  %12695 = vst [vmem:[#allocation32_spill] sm:$0xff] %v11709_v7 }
 0x6ae   :  { %v4881_v58 = vmul.f32 %v8873_v17, %v11295_v63  ;;  %v11437_v63 = vld [vmem:[%s12170_s2 + $0xc4] ss:$16 sps:$4 sm:$0xff]   ;;  %v11719_v17 = vld [vmem:[%s12172_s4 + $0x60] ss:$16 sps:$4 sm:$0xff]  }
 0x6af   :  { %12697 = vst [vmem:[#allocation33_spill] sm:$0xff] %v11719_v17 }
 0x6b0   :  { %v11419_v3 = vadd.f32 %v4882_v19, %v4881_v58  ;;  %v11714_v19 = vld [vmem:[%s12172_s4 + $0x6c] ss:$16 sps:$4 sm:$0xff]   ;;  %v11733_v58 = vld [vmem:[%s12172_s4 + $0x44] ss:$16 sps:$4 sm:$0xff]  }
 0x6b1   :  { %v8875_v57 = vpop.eup %8874  ;;  %12696 = vst [vmem:[#allocation30_spill] sm:$0xff] %v11714_v19  ;;  %12699 = vst [vmem:[#allocation36_spill] sm:$0xff] %v11733_v58 }
 0x6b2   :  { %8876 = vtanh.f32 %v11419_v3 }
 0x6bf   :  { %v8877_v15 = vpop.eup %8876 }
 0x6c0   :  { %v4885_v61 = vmul.f32 %v8877_v15, %v8875_v57  ;;  %v11738_v57 = vld [vmem:[%s12172_s4 + $0x4c] ss:$16 sps:$4 sm:$0xff]   ;;  %v11743_v15 = vld [vmem:[%s12172_s4 + $0x40] ss:$16 sps:$4 sm:$0xff]  }
 0x6c1   :  { %12700 = vst [vmem:[#allocation34_spill] sm:$0xff] %v11738_v57  ;;  %12701 = vst [vmem:[#allocation25_spill] sm:$0xff] %v11743_v15 }
 0x6c2   :  { %v11432_v34 = vpack.c.bf16 %v4885_v61, %v4885_v61  ;;  %v11748_v61 = vld [vmem:[%s12172_s4 + $0x48] ss:$16 sps:$4 sm:$0xff]  }
 0x6c3   :  { %12702 = vst [vmem:[#allocation27_spill] sm:$0xff] %v11748_v61 }
 0x6c4   :  { %5313 = vmatmul.mubr.bf16.vlgmr.msra.gmra.mxu0 %v11432_v34  ;;  %5354 = vmatmul.mubr.bf16.vlgmr.msra.gmra.mxu1 %v11432_v34 }
 0x6c5   :  { %5591 = vmatpush1.bf16.msra.mxu0 %v11425_v14  ;;  %5632 = vmatpush1.bf16.msra.mxu1 %v11430_v12 }
 0x6c6   :  { %5592 = vmatprep.subr.bf16.mxu0 %v11437_v63  ;;  %5633 = vmatprep.subr.bf16.mxu1 %v11442_v5 }
 0x6c7   :  { %5622 = vmatprep.mubr.bf16.mxu0 %v12422_v9  ;;  %5663 = vmatprep.mubr.bf16.mxu1 %v12422_v9 }
 0x6c9   :  { %5593 = vmatpush1.bf16.msra.mxu0 %v11451_v18  ;;  %5634 = vmatpush1.bf16.msra.mxu1 %v11456_v33 }
 0x6ca   :  { %5594 = vmatprep.subr.bf16.mxu0 %v11463_v4  ;;  %5635 = vmatprep.subr.bf16.mxu1 %v11468_v2 }
 0x6cd   :  { %5595 = vmatpush1.bf16.msra.mxu0 %v11477_v1  ;;  %5636 = vmatpush1.bf16.msra.mxu1 %v11482_v20 }
 0x6ce   :  { %5596 = vmatprep.subr.bf16.mxu0 %v11489_v21  ;;  %5637 = vmatprep.subr.bf16.mxu1 %v11494_v22 }
 0x6d1   :  { %5597 = vmatpush1.bf16.msra.mxu0 %v11501_v23  ;;  %5638 = vmatpush1.bf16.msra.mxu1 %v11506_v24 }
 0x6d2   :  { %5598 = vmatprep.subr.bf16.mxu0 %v11513_v25  ;;  %5639 = vmatprep.subr.bf16.mxu1 %v11518_v27 }
 0x6d5   :  { %5599 = vmatpush1.bf16.msra.mxu0 %v11525_v28  ;;  %5640 = vmatpush1.bf16.msra.mxu1 %v11530_v29 }
 0x6d6   :  { %5600 = vmatprep.subr.bf16.mxu0 %v11537_v30  ;;  %5641 = vmatprep.subr.bf16.mxu1 %v11542_v31 }
 0x6d9   :  { %5601 = vmatpush1.bf16.msra.mxu0 %v11549_v32  ;;  %5642 = vmatpush1.bf16.msra.mxu1 %v11554_v37 }
 0x6da   :  { %5602 = vmatprep.subr.bf16.mxu0 %v11561_v38  ;;  %5643 = vmatprep.subr.bf16.mxu1 %v11566_v39 }
 0x6dd   :  { %5603 = vmatpush1.bf16.msra.mxu0 %v11573_v43  ;;  %5644 = vmatpush1.bf16.msra.mxu1 %v11578_v49 }
 0x6de   :  { %5604 = vmatprep.subr.bf16.mxu0 %v11585_v59  ;;  %5645 = vmatprep.subr.bf16.mxu1 %v11590_v8 }
 0x6e1   :  { %5605 = vmatpush1.bf16.msra.mxu0 %v11597_v46  ;;  %5646 = vmatpush1.bf16.msra.mxu1 %v11602_v26 }
 0x6e2   :  { %6095 = vmatprep.subr.bf16.mxu0 %v11613_v42  ;;  %6136 = vmatprep.subr.bf16.mxu1 %v11618_v51 }
 0x6e4   :  { %5623 = vmatmul.mubr.bf16.vlgmr.msra.gmra.mxu0 %v11432_v34  ;;  %5664 = vmatmul.mubr.bf16.vlgmr.msra.gmra.mxu1 %v11432_v34  ;;  %v11757_v34 = vld [vmem:[%s12172_s4 + $0x24] ss:$16 sps:$4 sm:$0xff]  }
 0x6e5   :  { %6096 = vmatpush1.bf16.msra.mxu0 %v11623_v44  ;;  %6137 = vmatpush1.bf16.msra.mxu1 %v11628_v62  ;;  %12703 = vst [vmem:[#allocation28_spill] sm:$0xff] %v11757_v34 }
 0x6e6   :  { %6097 = vmatprep.subr.bf16.mxu0 %v11637_v11  ;;  %6138 = vmatprep.subr.bf16.mxu1 %v11642_v55 }
 0x6e9   :  { %6098 = vmatpush1.bf16.msra.mxu0 %v11647_v41  ;;  %6139 = vmatpush1.bf16.msra.mxu1 %v11652_v60 }
 0x6ea   :  { %6099 = vmatprep.subr.bf16.mxu0 %v11661_v54  ;;  %6140 = vmatprep.subr.bf16.mxu1 %v11666_v48 }
 0x6ed   :  { %6100 = vmatpush1.bf16.msra.mxu0 %v11671_v10  ;;  %6141 = vmatpush1.bf16.msra.mxu1 %v11676_v47 }
 0x6ee   :  { %6101 = vmatprep.subr.bf16.mxu0 %v11685_v53  ;;  %6142 = vmatprep.subr.bf16.mxu1 %v11690_v45 }
 0x6f1   :  { %6102 = vmatpush1.bf16.msra.mxu0 %v11695_v16  ;;  %6143 = vmatpush1.bf16.msra.mxu1 %v11700_v50 }
 0x6f2   :  { %6103 = vmatprep.subr.bf16.mxu0 %v11709_v7  ;;  %6144 = vmatprep.subr.bf16.mxu1 %v11714_v19 }
 0x6f5   :  { %6104 = vmatpush1.bf16.msra.mxu0 %v11719_v17  ;;  %6145 = vmatpush1.bf16.msra.mxu1 %v11724_v56  ;;  %v11762_v56 = vld [vmem:[%s12172_s4 + $0x2c] ss:$16 sps:$4 sm:$0xff]   ;;  %v11940_v17 = vld [vmem:[%s12172_s4 + $0x148] ss:$16 sps:$4 sm:$0xff]  }
 0x6f6   :  { %6105 = vmatprep.subr.bf16.mxu0 %v11733_v58  ;;  %6146 = vmatprep.subr.bf16.mxu1 %v11738_v57  ;;  %12704 = vst [vmem:[#allocation26_spill] sm:$0xff] %v11762_v56  ;;  %v11767_v58 = vld [vmem:[%s12172_s4 + $0x20] ss:$16 sps:$4 sm:$0xff]   ;;  %v11786_v57 = vld [vmem:[%s12172_s4 + $0xc] ss:$16 sps:$4 sm:$0xff]   ;;  %12734 = vst [vmem:[#allocation64_spill] sm:$0xff] %v11940_v17 }
 0x6f7   :  { %12705 = vst [vmem:[#allocation11_spill] sm:$0xff] %v11767_v58  ;;  %12708 = vst [vmem:[#allocation14_spill] sm:$0xff] %v11786_v57 }
 0x6f9   :  { %6106 = vmatpush1.bf16.msra.mxu0 %v11743_v15  ;;  %6147 = vmatpush1.bf16.msra.mxu1 %v11748_v61  ;;  %v11772_v15 = vld [vmem:[%s12172_s4 + $0x28] ss:$16 sps:$4 sm:$0xff]   ;;  %v11781_v61 = vld [vmem:[%s12172_s4 + $0x4] ss:$16 sps:$4 sm:$0xff]  }
 0x6fa   :  { %12706 = vst [vmem:[#allocation12_spill] sm:$0xff] %v11772_v15  ;;  %6107 = vmatprep.subr.bf16.mxu0 %v11757_v34  ;;  %6148 = vmatprep.subr.bf16.mxu1 %v11762_v56  ;;  %12707 = vst [vmem:[#allocation13_spill] sm:$0xff] %v11781_v61  ;;  %v11791_v34 = vld [vmem:[%s12172_s4] ss:$16 sps:$4 sm:$0xff]   ;;  %v11810_v56 = vld [vmem:[%s12172_s4 + $0x1ec] ss:$16 sps:$4 sm:$0xff]  }
 0x6fb   :  { %12709 = vst [vmem:[#allocation15_spill] sm:$0xff] %v11791_v34  ;;  %12712 = vst [vmem:[#allocation18_spill] sm:$0xff] %v11810_v56 }
 0x6fd   :  { %6108 = vmatpush1.bf16.msra.mxu0 %v11767_v58  ;;  %6149 = vmatpush1.bf16.msra.mxu1 %v11772_v15  ;;  %v11796_v58 = vld [vmem:[%s12172_s4 + $0x8] ss:$16 sps:$4 sm:$0xff]   ;;  %v11805_v15 = vld [vmem:[%s12172_s4 + $0x1e4] ss:$16 sps:$4 sm:$0xff]  }
 0x6fe   :  { %12710 = vst [vmem:[#allocation16_spill] sm:$0xff] %v11796_v58  ;;  %6109 = vmatprep.subr.bf16.mxu0 %v11781_v61  ;;  %6150 = vmatprep.subr.bf16.mxu1 %v11786_v57  ;;  %12711 = vst [vmem:[#allocation17_spill] sm:$0xff] %v11805_v15  ;;  %v11815_v61 = vld [vmem:[%s12172_s4 + $0x1e0] ss:$16 sps:$4 sm:$0xff]   ;;  %v11834_v57 = vld [vmem:[%s12172_s4 + $0x1cc] ss:$16 sps:$4 sm:$0xff]  }
 0x6ff   :  { %12713 = vst [vmem:[#allocation19_spill] sm:$0xff] %v11815_v61  ;;  %12716 = vst [vmem:[#allocation23_spill] sm:$0xff] %v11834_v57 }
 0x701   :  { %6110 = vmatpush1.bf16.msra.mxu0 %v11791_v34  ;;  %6151 = vmatpush1.bf16.msra.mxu1 %v11796_v58  ;;  %v11820_v34 = vld [vmem:[%s12172_s4 + $0x1e8] ss:$16 sps:$4 sm:$0xff]   ;;  %v11829_v58 = vld [vmem:[%s12172_s4 + $0x1c4] ss:$16 sps:$4 sm:$0xff]  }
 0x702   :  { %12714 = vst [vmem:[#allocation20_spill] sm:$0xff] %v11820_v34  ;;  %6111 = vmatprep.subr.bf16.mxu0 %v11805_v15  ;;  %6152 = vmatprep.subr.bf16.mxu1 %v11810_v56  ;;  %12715 = vst [vmem:[#allocation21_spill] sm:$0xff] %v11829_v58  ;;  %v11839_v15 = vld [vmem:[%s12172_s4 + $0x1c0] ss:$16 sps:$4 sm:$0xff]   ;;  %v11858_v56 = vld [vmem:[%s12172_s4 + $0x1ac] ss:$16 sps:$4 sm:$0xff]  }
 0x703   :  { %12717 = vst [vmem:[#allocation24_spill] sm:$0xff] %v11839_v15  ;;  %12720 = vst [vmem:[#allocation50_spill] sm:$0xff] %v11858_v56 }
 0x705   :  { %6112 = vmatpush2.bf16.msra.mxu0 %v11815_v61  ;;  %6153 = vmatpush2.bf16.msra.mxu1 %v11820_v34  ;;  %v11844_v61 = vld [vmem:[%s12172_s4 + $0x1c8] ss:$16 sps:$4 sm:$0xff]   ;;  %v11853_v34 = vld [vmem:[%s12172_s4 + $0x1a4] ss:$16 sps:$4 sm:$0xff]  }
 0x706   :  { %12718 = vst [vmem:[#allocation22_spill] sm:$0xff] %v11844_v61  ;;  %6113 = vmatprep.subr.bf16.mxu0 %v11829_v58  ;;  %6154 = vmatprep.subr.bf16.mxu1 %v11834_v57  ;;  %12719 = vst [vmem:[#allocation49_spill] sm:$0xff] %v11853_v34  ;;  %v11863_v58 = vld [vmem:[%s12172_s4 + $0x1a0] ss:$16 sps:$4 sm:$0xff]   ;;  %v11882_v57 = vld [vmem:[%s12172_s4 + $0x18c] ss:$16 sps:$4 sm:$0xff]  }
 0x707   :  { %12721 = vst [vmem:[#allocation51_spill] sm:$0xff] %v11863_v58  ;;  %12724 = vst [vmem:[#allocation54_spill] sm:$0xff] %v11882_v57 }
 0x709   :  { %6114 = vmatpush2.bf16.msra.mxu0 %v11839_v15  ;;  %6155 = vmatpush2.bf16.msra.mxu1 %v11844_v61  ;;  %v11868_v15 = vld [vmem:[%s12172_s4 + $0x1a8] ss:$16 sps:$4 sm:$0xff]   ;;  %v11877_v61 = vld [vmem:[%s12172_s4 + $0x184] ss:$16 sps:$4 sm:$0xff]  }
 0x70a   :  { %12722 = vst [vmem:[#allocation52_spill] sm:$0xff] %v11868_v15  ;;  %6115 = vmatprep.subr.bf16.mxu0 %v11853_v34  ;;  %6156 = vmatprep.subr.bf16.mxu1 %v11858_v56  ;;  %12723 = vst [vmem:[#allocation53_spill] sm:$0xff] %v11877_v61  ;;  %v11887_v34 = vld [vmem:[%s12172_s4 + $0x180] ss:$16 sps:$4 sm:$0xff]  }
 0x70b   :  { %12725 = vst [vmem:[#allocation55_spill] sm:$0xff] %v11887_v34  ;;  %v11906_v56 = vld [vmem:[%s12172_s4 + $0x160] ss:$16 sps:$4 sm:$0xff]  }
 0x70c   :  { %12728 = vst [vmem:[#allocation58_spill] sm:$0xff] %v11906_v56 }
 0x70d   :  { %6116 = vmatpush2.bf16.msra.mxu0 %v11863_v58  ;;  %6157 = vmatpush2.bf16.msra.mxu1 %v11868_v15  ;;  %v11892_v58 = vld [vmem:[%s12172_s4 + $0x188] ss:$16 sps:$4 sm:$0xff]   ;;  %v11899_v15 = vld [vmem:[%s12172_s4 + $0x164] ss:$16 sps:$4 sm:$0xff]  }
 0x70e   :  { %12726 = vst [vmem:[#allocation56_spill] sm:$0xff] %v11892_v58  ;;  %6117 = vmatprep.subr.bf16.mxu0 %v11877_v61  ;;  %6158 = vmatprep.subr.bf16.mxu1 %v11882_v57  ;;  %12727 = vst [vmem:[#allocation57_spill] sm:$0xff] %v11899_v15  ;;  %v11911_v61 = vld [vmem:[%s12172_s4 + $0x168] ss:$16 sps:$4 sm:$0xff]   ;;  %v11916_v57 = vld [vmem:[%s12172_s4 + $0x16c] ss:$16 sps:$4 sm:$0xff]  }
 0x70f   :  { %12729 = vst [vmem:[#allocation59_spill] sm:$0xff] %v11911_v61  ;;  %12730 = vst [vmem:[#allocation60_spill] sm:$0xff] %v11916_v57 }
 0x711   :  { %6118 = vmatpush2.bf16.msra.mxu0 %v11887_v34  ;;  %6159 = vmatpush2.bf16.msra.mxu1 %v11892_v58  ;;  %v11922_v58 = vld [vmem:[%s12172_s4 + $0x144] ss:$16 sps:$4 sm:$0xff]   ;;  %v11927_v34 = vld [vmem:[%s12172_s4 + $0x14c] ss:$16 sps:$4 sm:$0xff]  }
 0x712   :  { %6119 = vmatprep.subr.bf16.mxu0 %v11899_v15  ;;  %12731 = vst [vmem:[#allocation61_spill] sm:$0xff] %v11922_v58  ;;  %12732 = vst [vmem:[#allocation62_spill] sm:$0xff] %v11927_v34  ;;  %6160 = vmatprep.subr.bf16.mxu1 %v11916_v57  ;;  %v11935_v15 = vld [vmem:[%s12172_s4 + $0x140] ss:$16 sps:$4 sm:$0xff]  }
 0x713   :  { %12733 = vst [vmem:[#allocation63_spill] sm:$0xff] %v11935_v15 }
 0x715   :  { %6120 = vmatpush2.bf16.msra.mxu0 %v11906_v56  ;;  %6161 = vmatpush2.bf16.msra.mxu1 %v11911_v61  ;;  %v11947_v56 = vld [vmem:[%s12172_s4 + $0x124] ss:$16 sps:$4 sm:$0xff]   ;;  %v11952_v61 = vld [vmem:[%s12172_s4 + $0x12c] ss:$16 sps:$4 sm:$0xff]  }
 0x716   :  { %6121 = vmatprep.subr.bf16.mxu0 %v11922_v58  ;;  %6162 = vmatprep.subr.bf16.mxu1 %v11927_v34  ;;  %12735 = vst [vmem:[#allocation65_spill] sm:$0xff] %v11947_v56  ;;  %12736 = vst [vmem:[#allocation66_spill] sm:$0xff] %v11952_v61  ;;  %v11959_v58 = vld [vmem:[%s12172_s4 + $0x120] ss:$16 sps:$4 sm:$0xff]   ;;  %v11964_v34 = vld [vmem:[%s12172_s4 + $0x128] ss:$16 sps:$4 sm:$0xff]  }
 0x717   :  { %12737 = vst [vmem:[#allocation67_spill] sm:$0xff] %v11959_v58  ;;  %12738 = vst [vmem:[#allocation68_spill] sm:$0xff] %v11964_v34 }
 0x719   :  { %6122 = vmatpush2.bf16.msra.mxu0 %v11935_v15  ;;  %6163 = vmatpush2.bf16.msra.mxu1 %v11940_v17  ;;  %v11971_v15 = vld [vmem:[%s12172_s4 + $0x104] ss:$16 sps:$4 sm:$0xff]   ;;  %v11976_v17 = vld [vmem:[%s12172_s4 + $0x10c] ss:$16 sps:$4 sm:$0xff]  }
 0x71a   :  { %6123 = vmatprep.subr.bf16.mxu0 %v11947_v56  ;;  %6164 = vmatprep.subr.bf16.mxu1 %v11952_v61  ;;  %12739 = vst [vmem:[#allocation69_spill] sm:$0xff] %v11971_v15  ;;  %12740 = vst [vmem:[#allocation72_spill] sm:$0xff] %v11976_v17  ;;  %v11983_v56 = vld [vmem:[%s12172_s4 + $0x100] ss:$16 sps:$4 sm:$0xff]   ;;  %v11988_v61 = vld [vmem:[%s12172_s4 + $0x108] ss:$16 sps:$4 sm:$0xff]  }
 0x71b   :  { %12741 = vst [vmem:[#allocation70_spill] sm:$0xff] %v11983_v56  ;;  %12742 = vst [vmem:[#allocation71_spill] sm:$0xff] %v11988_v61 }
 0x71d   :  { %6124 = vmatpush2.bf16.msra.mxu0 %v11959_v58  ;;  %6165 = vmatpush2.bf16.msra.mxu1 %v11964_v34 }
 0x71e   :  { %6125 = vmatprep.subr.bf16.mxu0 %v11971_v15  ;;  %6166 = vmatprep.subr.bf16.mxu1 %v11976_v17 }
 0x721   :  { %6126 = vmatpush2.bf16.msra.mxu0 %v11983_v56  ;;  %6167 = vmatpush2.bf16.msra.mxu1 %v11988_v61 }
 0x722   :  { %6405 = vmatprep.subr.bf16.mxu0 %v11397_v36  ;;  %6446 = vmatprep.subr.bf16.mxu1 %v11402_v35 }
 0x784   :  { %v5314_v34 = vpop.f32.mrf.mxu0  ;;  %v5355_v58 = vpop.f32.mrf.mxu1 }
 0x785   :  { %v5315_v57 = vadd.f32 %v5314_v34, %v12681_v52  ;;  %v5356_v47 = vadd.f32 %v5355_v58, %v12684_v0 }
 0x786   :  { %v5316_v19 = vpop.f32.mrf.mxu0  ;;  %v5357_v7 = vpop.f32.mrf.mxu1 }
 0x787   :  { %v7815_v50 = vmul.f32 -1.442695, %v5315_v57  ;;  %v5317_v16 = vadd.f32 %v5316_v19, %v12682_v6  ;;  %v5358_v36 = vadd.f32 %v5357_v7, %v12683_v13  ;;  %v12744_v13 = vld [vmem:[#allocation43_spill] sm:$0xff] }
 0x788   :  { %v5318_v15 = vpop.f32.mrf.mxu0  ;;  %v5359_v45 = vpop.f32.mrf.mxu1 }
 0x789   :  { %8878 = vpow2.f32 %v7815_v50  ;;  %v7816_v17 = vmul.f32 -1.442695, %v5317_v16  ;;  %v7817_v61 = vmul.f32 -1.442695, %v5358_v36  ;;  %v12743_v16 = vld [vmem:[#allocation41_spill] sm:$0xff] }
 0x78a   :  { %v5319_v56 = vpop.f32.mrf.mxu0  ;;  %v5360_v53 = vpop.f32.mrf.mxu1 }
 0x78b   :  { %8880 = vpow2.f32 %v7816_v17 }
 0x78c   :  { %8882 = vpow2.f32 %v7817_v61 }
 0x796   :  { %v8879_v35 = vpop.eup %8878 }
 0x797   :  { %v5366_v10 = vadd.f32 1.0, %v8879_v35 }
 0x798   :  { %v8881_v34 = vpop.eup %8880 }
 0x799   :  { %8884 = vrcp.f32 %v5366_v10  ;;  %v5372_v57 = vadd.f32 1.0, %v8881_v34  ;;  %v8883_v50 = vpop.eup %8882 }
 0x79a   :  { %8886 = vtanh.f32 %v5356_v47  ;;  %v5379_v35 = vadd.f32 1.0, %v8883_v50 }
 0x79b   :  { %8888 = vrcp.f32 %v5372_v57 }
 0x7a4   :  { %v5624_v19 = vpop.f32.mrf.mxu0  ;;  %v5665_v45 = vpop.f32.mrf.mxu1 }
 0x7a5   :  { %v5672_v56 = vadd.f32 %v5624_v19, %v12743_v16  ;;  %v12745_v16 = vld [vmem:[#allocation44_spill] sm:$0xff] }
 0x7a6   :  { %v8885_v53 = vpop.eup %8884  ;;  %v5626_v17 = vpop.f32.mrf.mxu0 }
 0x7a7   :  { %v5667_v15 = vpop.f32.mrf.mxu1  ;;  %v8887_v7 = vpop.eup %8886  ;;  %v7850_v36 = vmul.f32 -1.442695, %v5672_v56  ;;  %v5673_v6 = vadd.f32 %v5626_v17, %v12744_v13  ;;  %v12746_v13 = vld [vmem:[#allocation42_spill] sm:$0xff] }
 0x7a8   :  { %v8889_v58 = vpop.eup %8888  ;;  %v5628_v0 = vpop.f32.mrf.mxu0  ;;  %v5383_v10 = vmul.f32 %v8887_v7, %v8885_v53  ;;  %v5675_v56 = vadd.f32 %v5667_v15, %v12745_v16  ;;  %v5674_v17 = vadd.f32 %v5665_v45, %v12746_v13 }
 0x7a9   :  { %v5669_v61 = vpop.f32.mrf.mxu1  ;;  %v5382_v47 = vmul.f32 %v8889_v58, %v11413_v40  ;;  %8890 = vpow2.f32 %v7850_v36  ;;  %v7851_v34 = vmul.f32 -1.442695, %v5673_v6 }
 0x7aa   :  { %v5629_v57 = vpop.f32.mrf.mxu0  ;;  %v7852_v50 = vmul.f32 -1.442695, %v5675_v56 }
 0x7ab   :  { %v5670_v52 = vpop.f32.mrf.mxu1  ;;  %8892 = vpow2.f32 %v7851_v34  ;;  %v12003_v19 = vadd.f32 %v5383_v10, %v5382_v47 }
 0x7ac   :  { %8894 = vrcp.f32 %v5379_v35 }
 0x7ad   :  { %8896 = vtanh.f32 %v12003_v19 }
 0x7ae   :  { %8898 = vtanh.f32 %v5674_v17 }
 0x7af   :  { %8900 = vpow2.f32 %v7852_v50  ;;  %v12789_v50 = vld [vmem:[#allocation61_spill] sm:$0xff] }
 0x7b6   :  { %v8891_v0 = vpop.eup %8890 }
 0x7b7   :  { %v5680_v61 = vadd.f32 1.0, %v8891_v0  ;;  %v12790_v0 = vld [vmem:[#allocation62_spill] sm:$0xff] }
 0x7b8   :  { %v8893_v53 = vpop.eup %8892 }
 0x7b9   :  { %v8895_v40 = vpop.eup %8894  ;;  %8902 = vrcp.f32 %v5680_v61  ;;  %v5686_v6 = vadd.f32 1.0, %v8893_v53  ;;  %v12791_v61 = vld [vmem:[#allocation63_spill] sm:$0xff]  ;;  %v12792_v53 = vld [vmem:[#allocation64_spill] sm:$0xff] }
 0x7ba   :  { %v8897_v52 = vpop.eup %8896 }
 0x7bb   :  { %8904 = vrcp.f32 %v5686_v6  ;;  %v5386_v7 = vmul.f32 %v8897_v52, %v8895_v40  ;;  %v8899_v58 = vpop.eup %8898  ;;  %v12793_v40 = vld [vmem:[#allocation65_spill] sm:$0xff]  ;;  %v12794_v6 = vld [vmem:[#allocation66_spill] sm:$0xff]  ;;  %v12795_v52 = vld [vmem:[#allocation67_spill] sm:$0xff] }
 0x7bc   :  { %v8901_v35 = vpop.eup %8900 }
 0x7bd   :  { %v5706_v36 = vpack.c.bf16 %v5386_v7, %v5386_v7  ;;  %v5693_v47 = vadd.f32 1.0, %v8901_v35  ;;  %v12796_v7 = vld [vmem:[#allocation68_spill] sm:$0xff]  ;;  %v12799_v35 = vld [vmem:[#allocation70_spill] sm:$0xff] }
 0x7bf   :  { %6127 = vmatprep.mubr.bf16.mxu0 %v5706_v36  ;;  %6168 = vmatprep.mubr.bf16.mxu1 %v5706_v36  ;;  %8906 = vrcp.f32 %v5693_v47  ;;  %v12797_v36 = vld [vmem:[#allocation69_spill] sm:$0xff]  ;;  %v12801_v47 = vld [vmem:[#allocation7_spill] sm:$0xff] }
 0x7c6   :  { %v8903_v15 = vpop.eup %8902 }
 0x7c7   :  { %v5697_v10 = vmul.f32 %v8903_v15, %v8899_v58  ;;  %v12798_v58 = vld [vmem:[#allocation72_spill] sm:$0xff]  ;;  %v12800_v15 = vld [vmem:[#allocation71_spill] sm:$0xff] }
 0x7c8   :  { %v8905_v45 = vpop.eup %8904 }
 0x7c9   :  { %v5696_v34 = vmul.f32 %v8905_v45, %v11419_v3  ;;  %v12748_v3 = vld [vmem:[#allocation86_spill] sm:$0xff] }
 0x7cb   :  { %v12009_v57 = vadd.f32 %v5697_v10, %v5696_v34 }
 0x7cc   :  { %v8907_v16 = vpop.eup %8906 }
 0x7cd   :  { %8908 = vtanh.f32 %v12009_v57 }
 0x7da   :  { %v8909_v56 = vpop.eup %8908 }
 0x7db   :  { %v5700_v13 = vmul.f32 %v8909_v56, %v8907_v16 }
 0x7dd   :  { %v5705_v17 = vpack.c.bf16 %v5700_v13, %v5700_v13 }
 0x7df   :  { %6128 = vmatmul.mubr.bf16.vlgmr.msra.gmra.mxu0 %v5705_v17  ;;  %6169 = vmatmul.mubr.bf16.vlgmr.msra.gmra.mxu1 %v5705_v17 }
 0x7e0   :  { %6406 = vmatpush1.bf16.msra.mxu0 %v11425_v14  ;;  %6447 = vmatpush1.bf16.msra.mxu1 %v11430_v12  ;;  %v12749_v14 = vld [vmem:[#allocation87_spill] sm:$0xff]  ;;  %v12750_v12 = vld [vmem:[#allocation88_spill] sm:$0xff] }
 0x7e1   :  { %6407 = vmatprep.subr.bf16.mxu0 %v11437_v63  ;;  %6448 = vmatprep.subr.bf16.mxu1 %v11442_v5  ;;  %v12751_v63 = vld [vmem:[#allocation29_spill] sm:$0xff]  ;;  %v12752_v5 = vld [vmem:[#allocation31_spill] sm:$0xff] }
 0x7e2   :  { %6437 = vmatprep.mubr.bf16.mxu0 %v12422_v9  ;;  %6478 = vmatprep.mubr.bf16.mxu1 %v12422_v9  ;;  %v12747_v9 = vld [vmem:[#allocation85_spill] sm:$0xff] }
 0x7e4   :  { %6408 = vmatpush1.bf16.msra.mxu0 %v11451_v18  ;;  %6449 = vmatpush1.bf16.msra.mxu1 %v11456_v33  ;;  %v12753_v18 = vld [vmem:[#allocation32_spill] sm:$0xff]  ;;  %v12754_v33 = vld [vmem:[#allocation30_spill] sm:$0xff] }
 0x7e5   :  { %6409 = vmatprep.subr.bf16.mxu0 %v11463_v4  ;;  %6450 = vmatprep.subr.bf16.mxu1 %v11468_v2  ;;  %v12755_v4 = vld [vmem:[#allocation33_spill] sm:$0xff]  ;;  %v12756_v2 = vld [vmem:[#allocation35_spill] sm:$0xff] }
 0x7e8   :  { %6410 = vmatpush1.bf16.msra.mxu0 %v11477_v1  ;;  %6451 = vmatpush1.bf16.msra.mxu1 %v11482_v20  ;;  %v12757_v1 = vld [vmem:[#allocation36_spill] sm:$0xff]  ;;  %v12758_v20 = vld [vmem:[#allocation34_spill] sm:$0xff] }
 0x7e9   :  { %6411 = vmatprep.subr.bf16.mxu0 %v11489_v21  ;;  %6452 = vmatprep.subr.bf16.mxu1 %v11494_v22  ;;  %v12759_v21 = vld [vmem:[#allocation25_spill] sm:$0xff]  ;;  %v12760_v22 = vld [vmem:[#allocation27_spill] sm:$0xff] }
 0x7ec   :  { %6412 = vmatpush1.bf16.msra.mxu0 %v11501_v23  ;;  %6453 = vmatpush1.bf16.msra.mxu1 %v11506_v24  ;;  %v12761_v23 = vld [vmem:[#allocation28_spill] sm:$0xff]  ;;  %v12762_v24 = vld [vmem:[#allocation26_spill] sm:$0xff] }
 0x7ed   :  { %6413 = vmatprep.subr.bf16.mxu0 %v11513_v25  ;;  %6454 = vmatprep.subr.bf16.mxu1 %v11518_v27  ;;  %v12763_v25 = vld [vmem:[#allocation11_spill] sm:$0xff]  ;;  %v12764_v27 = vld [vmem:[#allocation12_spill] sm:$0xff] }
 0x7f0   :  { %6414 = vmatpush1.bf16.msra.mxu0 %v11525_v28  ;;  %6455 = vmatpush1.bf16.msra.mxu1 %v11530_v29  ;;  %v12765_v28 = vld [vmem:[#allocation13_spill] sm:$0xff]  ;;  %v12766_v29 = vld [vmem:[#allocation14_spill] sm:$0xff] }
 0x7f1   :  { %6415 = vmatprep.subr.bf16.mxu0 %v11537_v30  ;;  %6456 = vmatprep.subr.bf16.mxu1 %v11542_v31  ;;  %v12767_v30 = vld [vmem:[#allocation15_spill] sm:$0xff]  ;;  %v12768_v31 = vld [vmem:[#allocation16_spill] sm:$0xff] }
 0x7f4   :  { %6416 = vmatpush1.bf16.msra.mxu0 %v11549_v32  ;;  %6457 = vmatpush1.bf16.msra.mxu1 %v11554_v37  ;;  %v12769_v32 = vld [vmem:[#allocation17_spill] sm:$0xff]  ;;  %v12770_v37 = vld [vmem:[#allocation18_spill] sm:$0xff] }
 0x7f5   :  { %6417 = vmatprep.subr.bf16.mxu0 %v11561_v38  ;;  %6458 = vmatprep.subr.bf16.mxu1 %v11566_v39  ;;  %v12771_v38 = vld [vmem:[#allocation19_spill] sm:$0xff]  ;;  %v12772_v39 = vld [vmem:[#allocation20_spill] sm:$0xff] }
 0x7f8   :  { %6418 = vmatpush1.bf16.msra.mxu0 %v11573_v43  ;;  %6459 = vmatpush1.bf16.msra.mxu1 %v11578_v49  ;;  %v12773_v43 = vld [vmem:[#allocation21_spill] sm:$0xff]  ;;  %v12774_v49 = vld [vmem:[#allocation23_spill] sm:$0xff] }
 0x7f9   :  { %6419 = vmatprep.subr.bf16.mxu0 %v11585_v59  ;;  %6460 = vmatprep.subr.bf16.mxu1 %v11590_v8  ;;  %v12775_v59 = vld [vmem:[#allocation24_spill] sm:$0xff]  ;;  %v12776_v8 = vld [vmem:[#allocation22_spill] sm:$0xff] }
 0x7fc   :  { %6420 = vmatpush1.bf16.msra.mxu0 %v11597_v46  ;;  %6461 = vmatpush1.bf16.msra.mxu1 %v11602_v26  ;;  %v12777_v46 = vld [vmem:[#allocation49_spill] sm:$0xff]  ;;  %v12778_v26 = vld [vmem:[#allocation50_spill] sm:$0xff] }
 0x7fd   :  { %6910 = vmatprep.subr.bf16.mxu0 %v11613_v42  ;;  %6951 = vmatprep.subr.bf16.mxu1 %v11618_v51  ;;  %v12779_v42 = vld [vmem:[#allocation51_spill] sm:$0xff]  ;;  %v12780_v51 = vld [vmem:[#allocation52_spill] sm:$0xff] }
 0x7ff   :  { %6438 = vmatmul.mubr.bf16.vlgmr.msra.gmra.mxu0 %v5705_v17  ;;  %6479 = vmatmul.mubr.bf16.vlgmr.msra.gmra.mxu1 %v5705_v17  ;;  %v12802_v17 = vld [vmem:[#allocation8_spill] sm:$0xff] }
 0x800   :  { %6911 = vmatpush1.bf16.msra.mxu0 %v11623_v44  ;;  %6952 = vmatpush1.bf16.msra.mxu1 %v11628_v62  ;;  %v12781_v44 = vld [vmem:[#allocation53_spill] sm:$0xff]  ;;  %v12782_v62 = vld [vmem:[#allocation54_spill] sm:$0xff] }
 0x801   :  { %6912 = vmatprep.subr.bf16.mxu0 %v11637_v11  ;;  %6953 = vmatprep.subr.bf16.mxu1 %v11642_v55  ;;  %v12783_v11 = vld [vmem:[#allocation55_spill] sm:$0xff]  ;;  %v12784_v55 = vld [vmem:[#allocation56_spill] sm:$0xff] }
 0x804   :  { %6913 = vmatpush1.bf16.msra.mxu0 %v11647_v41  ;;  %6954 = vmatpush1.bf16.msra.mxu1 %v11652_v60  ;;  %v12785_v41 = vld [vmem:[#allocation57_spill] sm:$0xff]  ;;  %v12786_v60 = vld [vmem:[#allocation60_spill] sm:$0xff] }
 0x805   :  { %6914 = vmatprep.subr.bf16.mxu0 %v11661_v54  ;;  %6955 = vmatprep.subr.bf16.mxu1 %v11666_v48  ;;  %v12787_v54 = vld [vmem:[#allocation58_spill] sm:$0xff]  ;;  %v12788_v48 = vld [vmem:[#allocation59_spill] sm:$0xff] }
 0x808   :  { %6915 = vmatpush1.bf16.msra.mxu0 %v12747_v9  ;;  %6956 = vmatpush1.bf16.msra.mxu1 %v12748_v3 }
 0x809   :  { %6916 = vmatprep.subr.bf16.mxu0 %v12749_v14  ;;  %6957 = vmatprep.subr.bf16.mxu1 %v12750_v12 }
 0x80c   :  { %6917 = vmatpush1.bf16.msra.mxu0 %v12751_v63  ;;  %6958 = vmatpush1.bf16.msra.mxu1 %v12752_v5 }
 0x80d   :  { %6918 = vmatprep.subr.bf16.mxu0 %v12753_v18  ;;  %6959 = vmatprep.subr.bf16.mxu1 %v12754_v33  ;;  %v12803_v18 = vld [vmem:[#allocation9_spill] sm:$0xff] }
 0x810   :  { %6919 = vmatpush1.bf16.msra.mxu0 %v12755_v4  ;;  %6960 = vmatpush1.bf16.msra.mxu1 %v12756_v2 }
 0x811   :  { %6920 = vmatprep.subr.bf16.mxu0 %v12757_v1  ;;  %6961 = vmatprep.subr.bf16.mxu1 %v12758_v20  ;;  %v12804_v1 = vld [vmem:[#allocation10_spill] sm:$0xff] }
 0x814   :  { %6921 = vmatpush1.bf16.msra.mxu0 %v12759_v21  ;;  %6962 = vmatpush1.bf16.msra.mxu1 %v12760_v22 }
 0x815   :  { %6922 = vmatprep.subr.bf16.mxu0 %v12761_v23  ;;  %6963 = vmatprep.subr.bf16.mxu1 %v12762_v24 }
 0x818   :  { %6923 = vmatpush1.bf16.msra.mxu0 %v12763_v25  ;;  %6964 = vmatpush1.bf16.msra.mxu1 %v12764_v27 }
 0x819   :  { %6924 = vmatprep.subr.bf16.mxu0 %v12765_v28  ;;  %6965 = vmatprep.subr.bf16.mxu1 %v12766_v29  ;;  %v12805_v28 = vld [vmem:[#allocation45_spill] sm:$0xff] }
 0x81c   :  { %6925 = vmatpush1.bf16.msra.mxu0 %v12767_v30  ;;  %6966 = vmatpush1.bf16.msra.mxu1 %v12768_v31 }
 0x81d   :  { %6926 = vmatprep.subr.bf16.mxu0 %v12769_v32  ;;  %6967 = vmatprep.subr.bf16.mxu1 %v12770_v37 }
 0x820   :  { %6927 = vmatpush2.bf16.msra.mxu0 %v12771_v38  ;;  %6968 = vmatpush2.bf16.msra.mxu1 %v12772_v39  ;;  %v12806_v39 = vld [vmem:[#allocation47_spill] sm:$0xff] }
 0x821   :  { %6928 = vmatprep.subr.bf16.mxu0 %v12773_v43  ;;  %6969 = vmatprep.subr.bf16.mxu1 %v12774_v49 }
 0x824   :  { %6929 = vmatpush2.bf16.msra.mxu0 %v12775_v59  ;;  %6970 = vmatpush2.bf16.msra.mxu1 %v12776_v8 }
 0x825   :  { %6930 = vmatprep.subr.bf16.mxu0 %v12777_v46  ;;  %6971 = vmatprep.subr.bf16.mxu1 %v12778_v26 }
 0x828   :  { %6931 = vmatpush2.bf16.msra.mxu0 %v12779_v42  ;;  %6972 = vmatpush2.bf16.msra.mxu1 %v12780_v51 }
 0x829   :  { %6932 = vmatprep.subr.bf16.mxu0 %v12781_v44  ;;  %6973 = vmatprep.subr.bf16.mxu1 %v12782_v62 }
 0x82c   :  { %6933 = vmatpush2.bf16.msra.mxu0 %v12783_v11  ;;  %6974 = vmatpush2.bf16.msra.mxu1 %v12784_v55  ;;  %v12807_v55 = vld [vmem:[#allocation48_spill] sm:$0xff] }
 0x82d   :  { %6934 = vmatprep.subr.bf16.mxu0 %v12785_v41  ;;  %6975 = vmatprep.subr.bf16.mxu1 %v12786_v60  ;;  %v12808_v60 = vld [vmem:[#allocation46_spill] sm:$0xff] }
 0x830   :  { %6935 = vmatpush2.bf16.msra.mxu0 %v12787_v54  ;;  %6976 = vmatpush2.bf16.msra.mxu1 %v12788_v48 }
 0x831   :  { %6936 = vmatprep.subr.bf16.mxu0 %v12789_v50  ;;  %6977 = vmatprep.subr.bf16.mxu1 %v12790_v0 }
 0x834   :  { %6937 = vmatpush2.bf16.msra.mxu0 %v12791_v61  ;;  %6978 = vmatpush2.bf16.msra.mxu1 %v12792_v53 }
 0x835   :  { %6938 = vmatprep.subr.bf16.mxu0 %v12793_v40  ;;  %6979 = vmatprep.subr.bf16.mxu1 %v12794_v6 }
 0x838   :  { %6939 = vmatpush2.bf16.msra.mxu0 %v12795_v52  ;;  %6980 = vmatpush2.bf16.msra.mxu1 %v12796_v7 }
 0x839   :  { %6940 = vmatprep.subr.bf16.mxu0 %v12797_v36  ;;  %6981 = vmatprep.subr.bf16.mxu1 %v12798_v58 }
 0x83c   :  { %6941 = vmatpush2.bf16.msra.mxu0 %v12799_v35  ;;  %6982 = vmatpush2.bf16.msra.mxu1 %v12800_v15 }
 0x89f   :  { %v6129_v10 = vpop.f32.mrf.mxu0  ;;  %v6170_v45 = vpop.f32.mrf.mxu1 }
 0x8a0   :  { %v6130_v34 = vadd.f32 %v6129_v10, %v12801_v47  ;;  %v6171_v20 = vadd.f32 %v6170_v45, %v12804_v1 }
 0x8a1   :  { %v6131_v16 = vpop.f32.mrf.mxu0  ;;  %v6172_v56 = vpop.f32.mrf.mxu1 }
 0x8a2   :  { %v7917_v13 = vmul.f32 -1.442695, %v6130_v34  ;;  %v6132_v9 = vadd.f32 %v6131_v16, %v12802_v17  ;;  %v6173_v33 = vadd.f32 %v6172_v56, %v12803_v18 }
 0x8a3   :  { %v6133_v3 = vpop.f32.mrf.mxu0  ;;  %v6174_v14 = vpop.f32.mrf.mxu1 }
 0x8a4   :  { %8910 = vpow2.f32 %v7917_v13  ;;  %v7918_v12 = vmul.f32 -1.442695, %v6132_v9  ;;  %v7919_v4 = vmul.f32 -1.442695, %v6173_v33  ;;  %v9005_v3 = vmov 0.0   ;;  %v8695_v14 = vld [vmem:[%s12178_s6 + $0x30] sm:$0xff]  }
 0x8a5   :  { %v6134_v63 = vpop.f32.mrf.mxu0  ;;  %v6175_v5 = vpop.f32.mrf.mxu1  ;;  %8043 = vmatprep.subr.bf16.mxu0 %v9005_v3  ;;  %v8699_v33 = vld [vmem:[%s12178_s6 + $0x10] sm:$0xff]  }
 0x8a6   :  { %8912 = vpow2.f32 %v7918_v12  ;;  %v8696_v12 = vld [vmem:[%s12178_s6 + $0x28] sm:$0xff]   ;;  %v8697_v63 = vld [vmem:[%s12178_s6 + $0x20] sm:$0xff]   ;;  %v8698_v5 = vld [vmem:[%s12178_s6 + $0x18] sm:$0xff]  }
 0x8a7   :  { %8914 = vpow2.f32 %v7919_v4  ;;  %v8700_v4 = vld [vmem:[%s12178_s6 + $0x8] sm:$0xff]  }
 0x8b1   :  { %v8911_v2 = vpop.eup %8910 }
 0x8b2   :  { %v6181_v21 = vadd.f32 1.0, %v8911_v2  ;;  %v8701_v2 = vld [vmem:[%s12178_s6] sm:$0xff]  }
 0x8b3   :  { %v8913_v22 = vpop.eup %8912 }
 0x8b4   :  { %8916 = vrcp.f32 %v6181_v21  ;;  %v6187_v23 = vadd.f32 1.0, %v8913_v22  ;;  %v8915_v27 = vpop.eup %8914 }
 0x8b5   :  { %8918 = vtanh.f32 %v6171_v20  ;;  %v6194_v59 = vadd.f32 1.0, %v8915_v27 }
 0x8b6   :  { %8920 = vrcp.f32 %v6187_v23 }
 0x8bf   :  { %v6439_v24 = vpop.f32.mrf.mxu0  ;;  %v6480_v25 = vpop.f32.mrf.mxu1 }
 0x8c0   :  { %v6487_v29 = vadd.f32 %v6439_v24, %v12805_v28  ;;  %v6489_v54 = vadd.f32 %v6480_v25, %v12808_v60 }
 0x8c1   :  { %v8917_v30 = vpop.eup %8916  ;;  %v6441_v31 = vpop.f32.mrf.mxu0 }
 0x8c2   :  { %v6482_v32 = vpop.f32.mrf.mxu1  ;;  %v8919_v37 = vpop.eup %8918  ;;  %v7952_v38 = vmul.f32 -1.442695, %v6487_v29  ;;  %v6488_v43 = vadd.f32 %v6441_v31, %v12806_v39 }
 0x8c3   :  { %v8921_v49 = vpop.eup %8920  ;;  %v6443_v8 = vpop.f32.mrf.mxu0  ;;  %v6198_v26 = vmul.f32 %v8919_v37, %v8917_v30  ;;  %v6490_v41 = vadd.f32 %v6482_v32, %v12807_v55 }
 0x8c4   :  { %v6484_v46 = vpop.f32.mrf.mxu1  ;;  %v6197_v42 = vmul.f32 %v8921_v49, %v12003_v19  ;;  %8922 = vpow2.f32 %v7952_v38  ;;  %v7953_v51 = vmul.f32 -1.442695, %v6488_v43 }
 0x8c5   :  { %v6444_v44 = vpop.f32.mrf.mxu0  ;;  %v7954_v48 = vmul.f32 -1.442695, %v6490_v41 }
 0x8c6   :  { %v6485_v62 = vpop.f32.mrf.mxu1  ;;  %8924 = vpow2.f32 %v7953_v51  ;;  %v12115_v11 = vadd.f32 %v6198_v26, %v6197_v42 }
 0x8c7   :  { %8926 = vrcp.f32 %v6194_v59 }
 0x8c8   :  { %8928 = vtanh.f32 %v12115_v11 }
 0x8c9   :  { %8930 = vtanh.f32 %v6489_v54 }
 0x8ca   :  { %8932 = vpow2.f32 %v7954_v48 }
 0x8d1   :  { %v8923_v50 = vpop.eup %8922 }
 0x8d2   :  { %v6495_v0 = vadd.f32 1.0, %v8923_v50 }
 0x8d3   :  { %v8925_v61 = vpop.eup %8924 }
 0x8d4   :  { %v8927_v19 = vpop.eup %8926  ;;  %8934 = vrcp.f32 %v6495_v0  ;;  %v6501_v53 = vadd.f32 1.0, %v8925_v61 }
 0x8d5   :  { %v8929_v40 = vpop.eup %8928 }
 0x8d6   :  { %8936 = vrcp.f32 %v6501_v53  ;;  %v6201_v6 = vmul.f32 %v8929_v40, %v8927_v19  ;;  %v8931_v7 = vpop.eup %8930 }
 0x8d7   :  { %v8933_v36 = vpop.eup %8932 }
 0x8d8   :  { %v6521_v52 = vpack.c.bf16 %v6201_v6, %v6201_v6  ;;  %v6508_v10 = vadd.f32 1.0, %v8933_v36 }
 0x8da   :  { %6942 = vmatprep.mubr.bf16.mxu0 %v6521_v52  ;;  %6983 = vmatprep.mubr.bf16.mxu1 %v6521_v52  ;;  %8938 = vrcp.f32 %v6508_v10 }
 0x8e1   :  { %v8935_v58 = vpop.eup %8934 }
 0x8e2   :  { %v6512_v35 = vmul.f32 %v8935_v58, %v8931_v7 }
 0x8e3   :  { %v8937_v15 = vpop.eup %8936 }
 0x8e4   :  { %v6511_v45 = vmul.f32 %v8937_v15, %v12009_v57  ;;  %v8694_v57 = vld [vmem:[%s12178_s6 + $0x38] sm:$0xff]  }
 0x8e6   :  { %v6513_v34 = vadd.f32 %v6512_v35, %v6511_v45 }
 0x8e7   :  { %v8939_v16 = vpop.eup %8938 }
 0x8e8   :  { %7145 = vst [vmem:[%s12176_s12] sm:$0xff] %v6513_v34  ;;  %8940 = vtanh.f32 %v6513_v34 }
 0x8f5   :  { %v8941_v56 = vpop.eup %8940 }
 0x8f6   :  { %v6515_v13 = vmul.f32 %v8941_v56, %v8939_v16 }
 0x8f8   :  { %v6520_v9 = vpack.c.bf16 %v6515_v13, %v6515_v13  ;;  %7140 = vst [vmem:[%s12177_s11] sm:$0xff] %v6515_v13 }
 0x8fa   :  { %6943 = vmatmul.mubr.bf16.vlgmr.msra.gmra.mxu0 %v6520_v9  ;;  %6984 = vmatmul.mubr.bf16.vlgmr.msra.gmra.mxu1 %v6520_v9 }
 0x8fb   :  { %8044 = vmatpush3.bf16.msra.mxu0 %v8694_v57  ;;  %8059 = vmatprep.mubr.msk.bf16.mxu0 %vm9006_vm0, %v9005_v3 }
 0x8fc   :  { %8045 = vmatprep.subr.bf16.mxu0 %v9005_v3 }
 0x8ff   :  { %8046 = vmatpush3.bf16.msra.mxu0 %v8695_v14 }
 0x900   :  { %8047 = vmatprep.subr.bf16.mxu0 %v9005_v3 }
 0x903   :  { %8048 = vmatpush3.bf16.msra.mxu0 %v8696_v12 }
 0x904   :  { %8049 = vmatprep.subr.bf16.mxu0 %v9005_v3 }
 0x907   :  { %8050 = vmatpush3.bf16.msra.mxu0 %v8697_v63 }
 0x908   :  { %8051 = vmatprep.subr.bf16.mxu0 %v9005_v3 }
 0x90b   :  { %8052 = vmatpush3.bf16.msra.mxu0 %v8698_v5 }
 0x90c   :  { %8053 = vmatprep.subr.bf16.mxu0 %v9005_v3 }
 0x90f   :  { %8054 = vmatpush3.bf16.msra.mxu0 %v8699_v33 }
 0x910   :  { %8055 = vmatprep.subr.bf16.mxu0 %v9005_v3 }
 0x913   :  { %8056 = vmatpush3.bf16.msra.mxu0 %v8700_v4 }
 0x914   :  { %8057 = vmatprep.subr.bf16.mxu0 %v9005_v3 }
 0x917   :  { %8058 = vmatpush3.bf16.msra.mxu0 %v8701_v2 }
 0x9ba   :  { %v6944_v20 = vpop.f32.mrf.mxu0  ;;  %v6985_v21 = vpop.f32.mrf.mxu1 }
 0x9bb   :  { %v6945_v22 = vadd.f32 %v6944_v20, %v12801_v47  ;;  %v6986_v43 = vadd.f32 %v6985_v21, %v12804_v1 }
 0x9bc   :  { %v6946_v23 = vpop.f32.mrf.mxu0  ;;  %v6987_v24 = vpop.f32.mrf.mxu1 }
 0x9bd   :  { %v8019_v25 = vmul.f32 -1.442695, %v6945_v22  ;;  %v6947_v27 = vadd.f32 %v6946_v23, %v12802_v17  ;;  %v6988_v37 = vadd.f32 %v6987_v24, %v12803_v18 }
 0x9be   :  { %v6948_v28 = vpop.f32.mrf.mxu0  ;;  %v6989_v29 = vpop.f32.mrf.mxu1 }
 0x9bf   :  { %8942 = vpow2.f32 %v8019_v25  ;;  %v8020_v30 = vmul.f32 -1.442695, %v6947_v27  ;;  %v8021_v38 = vmul.f32 -1.442695, %v6988_v37 }
 0x9c0   :  { %v6949_v31 = vpop.f32.mrf.mxu0  ;;  %v6990_v32 = vpop.f32.mrf.mxu1 }
 0x9c1   :  { %8944 = vpow2.f32 %v8020_v30 }
 0x9c2   :  { %8946 = vpow2.f32 %v8021_v38 }
 0x9cc   :  { %v8943_v39 = vpop.eup %8942 }
 0x9cd   :  { %v6996_v49 = vadd.f32 1.0, %v8943_v39 }
 0x9ce   :  { %v8945_v47 = vpop.eup %8944 }
 0x9cf   :  { %8948 = vrcp.f32 %v6996_v49  ;;  %v7002_v59 = vadd.f32 1.0, %v8945_v47  ;;  %v8947_v17 = vpop.eup %8946 }
 0x9d0   :  { %8950 = vtanh.f32 %v6986_v43  ;;  %v7009_v42 = vadd.f32 1.0, %v8947_v17 }
 0x9d1   :  { %8952 = vrcp.f32 %v7002_v59 }
 0x9d2   :  { %8954 = vrcp.f32 %v7009_v42 }
 0x9dc   :  { %v8949_v8 = vpop.eup %8948 }
 0x9dd   :  { %v8951_v46 = vpop.eup %8950 }
 0x9de   :  { %v8953_v26 = vpop.eup %8952  ;;  %v7013_v51 = vmul.f32 %v8951_v46, %v8949_v8 }
 0x9df   :  { %v7012_v44 = vmul.f32 %v8953_v26, %v12115_v11  ;;  %v8955_v1 = vpop.eup %8954  ;;  %v8022_v11 = vld [vmem:[%s12179_s7] ss:$0 sm:$0xff] }
 0x9e1   :  { %v7014_v18 = vadd.f32 %v7013_v51, %v7012_v44 }
 0x9e3   :  { %8033 = vst [vmem:[%s12176_s12 + $0x8] sm:$0xff] %v7014_v18  ;;  %8956 = vtanh.f32 %v7014_v18 }
 0x9f0   :  { %v8957_v62 = vpop.eup %8956 }
 0x9f1   :  { %v7016_v55 = vmul.f32 %v8957_v62, %v8955_v1 }
 0x9f3   :  { %v7020_v41 = vpack.c.bf16 %v7016_v55, %v7016_v55  ;;  %8032 = vst [vmem:[%s12177_s11 + $0x8] sm:$0xff] %v7016_v55 }
 0x9f5   :  { %8060 = vmatmul.mubr.bf16.vlgmr.msra.gmra.mxu0 %v7020_v41 }
 0xab5   :  { %v7126_v60 = vpop.f32.mrf.mxu0 }
 0xab6   :  { %v7127_v54 = vadd.f32 %v8022_v11, %v7126_v60 }
 0xab7   :  { %v8061_v48 = vpop.f32.mrf.mxu0 }
 0xab8   :  { %v8031_v50 = vmul.f32 -1.442695, %v7127_v54 }
 0xab9   :  { %v7129_v0 = vpop.f32.mrf.mxu0 }
 0xaba   :  { %8958 = vpow2.f32 %v8031_v50 }
 0xabb   :  { %v8062_v61 = vpop.f32.mrf.mxu0 }
 0xac7   :  { %v8959_v19 = vpop.eup %8958 }
 0xac8   :  { %v7135_v53 = vadd.f32 1.0, %v8959_v19 }
 0xaca   :  { %8960 = vrcp.f32 %v7135_v53 }
 0xad7   :  { %v8961_v40 = vpop.eup %8960 }
 0xad8   :  { %7138 = vst [vmem:[%s12180_s10] sm:$0xff] %v8961_v40 }

</bundles_post_ra>
